<compile_context>
chip_gen: v6e
topology: v6e:2x2x1
jax: 0.10.0
libtpu: 0.0.40
codegen_flags: <defaults>
</compile_context>

<pallas_src>
import functools

import numpy as np
import jax
import jax.numpy as jnp
from jax.experimental import pallas as pl

# ----------------------------- configuration -------------------------------
VOCAB = 64          # synthetic vocab (real Qwen: 152k)
VPAD = 128          # lane-dense padded vocab for logits / one-hot / lm_head
HIDDEN = 32         # synthetic hidden (Qwen-7B: 3584)
N_HEADS = 4
HEAD_DIM = HIDDEN // N_HEADS
HALF = HEAD_DIM // 2
N_LAYERS = 2
FFN = 64
MAX_CTX = 8         # max_context_length
NUM_MEM = 4         # num_mem (compressed tokens)
QA_LEN = 8
BATCH = 2
LORA_R = 4
LORA_ALPHA = 8
LORA_SCALE = LORA_ALPHA / LORA_R
RMS_EPS = 1e-6
ROPE_THETA = 10000.0
IGNORE_INDEX = -100
NEG_INF = -1e30


# -------------------------- in-kernel helper math ---------------------------
def _rms(x, w):
    # x: (BS, H) f32, w: (1, H)
    var = jnp.mean(x * x, axis=-1, keepdims=True)
    return x * jax.lax.rsqrt(var + RMS_EPS) * w.astype(jnp.float32)


def _dot(a, b):
    # bf16 operands, f32 accumulate (native MXU mode).
    return jnp.dot(a.astype(jnp.bfloat16), b.astype(jnp.bfloat16),
                   preferred_element_type=jnp.float32)


def _dot_nt(a, b):
    # a (M, D) @ b (N, D)^T -> (M, N), contraction on last dims.
    return jax.lax.dot_general(
        a.astype(jnp.bfloat16), b.astype(jnp.bfloat16),
        dimension_numbers=(((1,), (1,)), ((), ())),
        preferred_element_type=jnp.float32)


# ------------------------- single fused stack kernel ------------------------
def _fused_kernel(enc_in_ref, dec_init_ref, sel_ref,
                  cos_e_ref, sin_e_ref, mask_e_ref,
                  cos_d_ref, sin_d_ref, mask_d_ref,
                  rope_ref, anorm_ref, mnorm_ref,
                  wqkv_enc_ref, wqkv_dec_ref, bqkv_ref,
                  wo_ref, wgu_ref, wd_ref, fnorm_ref,
                  lmw_ref, onehot_ref, out_ref):
    """Encoder stack (LoRA merged) -> decoder stack (base weights) -> LM head
    + masked cross entropy, all in one kernel invocation (no grid)."""
    rope_p = rope_ref[...]                      # (H, H) signed head-wise perm

    def layer(x, cos, sin, bias, wqkv_l, l):
        # ------------------------ attention block ------------------------
        xn = _rms(x, anorm_ref[l])
        xnb = xn.astype(jnp.bfloat16)
        # 1/sqrt(head_dim) is pre-folded into the q columns of wqkv / bqkv.
        qkv = _dot(xnb, wqkv_l) + bqkv_ref[l]                    # (BS, 3H) f32
        q = qkv[:, :HIDDEN]
        k = qkv[:, HIDDEN:2 * HIDDEN]
        v = qkv[:, 2 * HIDDEN:]

        # RoPE: rotate_half == signed permutation matmul on the idle MXU;
        # rope(x) = x*cos + (x @ rope_p)*sin (scale folding commutes with it).
        q = q * cos + _dot(q, rope_p) * sin
        k = k * cos + _dot(k, rope_p) * sin

        # Per-head attention on the flat (BS, ...) view; heads are lane
        # slices; batch separation + causality come from one additive bias.
        # Each head's PV output is accumulated directly through its wo row
        # slice into the residual (no concat of head outputs).
        wo_l = wo_ref[l]
        for h in range(N_HEADS):
            sl = slice(h * HEAD_DIM, (h + 1) * HEAD_DIM)
            s = _dot_nt(q[:, sl], k[:, sl]) + bias               # (BS, BS)
            s = s - jnp.max(s, axis=-1, keepdims=True)
            p = jnp.exp(s)
            p = p * pl.reciprocal(jnp.sum(p, axis=-1, keepdims=True),
                                  approx=True)
            o_h = _dot(p, v[:, sl])                              # (BS, DH)
            x = x + _dot(o_h, wo_l[sl, :])                       # no bias

        # --------------------------- MLP block ---------------------------
        xn2 = _rms(x, mnorm_ref[l])
        gu = _dot(xn2.astype(jnp.bfloat16), wgu_ref[l])          # (BS, 2F)
        g = gu[:, :FFN]
        u = gu[:, FFN:]
        return x + _dot(jax.nn.silu(g) * u, wd_ref[l])           # no bias

    # ------------------ encoder pass (LoRA merged into wqkv) ------------------
    x = enc_in_ref[...].astype(jnp.float32)
    cos_e = cos_e_ref[...]
    sin_e = sin_e_ref[...]
    bias_e = mask_e_ref[...]
    for l in range(N_LAYERS):                                    # unrolled
        x = layer(x, cos_e, sin_e, bias_e, wqkv_enc_ref[l], l)
    xf_enc = _rms(x, fnorm_ref[...])            # hidden_states[-1] (post norm)

    # -------- decoder input assembled in VMEM: mem rows from encoder --------
    # sel (BS_d, BS_e) picks the last num_mem encoder rows per batch into the
    # decoder memory slots; dec_init holds the qa embeddings (zeros elsewhere).
    x = _dot(sel_ref[...], xf_enc) + dec_init_ref[...].astype(jnp.float32)

    # ----------------- decoder pass (adapter disabled weights) ---------------
    cos_d = cos_d_ref[...]
    sin_d = sin_d_ref[...]
    bias_d = mask_d_ref[...]
    for l in range(N_LAYERS):                                    # unrolled
        x = layer(x, cos_d, sin_d, bias_d, wqkv_dec_ref[l], l)
    xf = _rms(x, fnorm_ref[...])

    # --------- LM head + masked cross entropy on lane-padded logits ---------
    logits = _dot(xf, lmw_ref[...])                              # (BS_d, VPAD)
    col = jax.lax.broadcasted_iota(jnp.int32, logits.shape, 1)
    logits = jnp.where(col >= VOCAB, NEG_INF, logits)            # kill padding
    m = jnp.max(logits, axis=-1, keepdims=True)
    lse = m + jnp.log(jnp.sum(jnp.exp(logits - m), axis=-1, keepdims=True))
    oh = onehot_ref[...]                                         # 0-row if ignored
    picked = jnp.sum(logits * oh, axis=-1, keepdims=True)
    valid = jnp.sum(oh, axis=-1, keepdims=True)
    loss_sum = jnp.sum((lse - picked) * valid)                   # divide in glue

    # One lane-dense store: loss_sum is stashed in unused padded lane [0, VOCAB].
    row = jax.lax.broadcasted_iota(jnp.int32, logits.shape, 0)
    out_ref[...] = jnp.where((row == 0) & (col == VOCAB), loss_sum, logits)


def _fused_forward_call(enc_in, dec_init, sel, cos_e, sin_e, mask_e,
                        cos_d, sin_d, mask_d, rope_perm, anorm, mnorm,
                        wqkv_enc, wqkv_dec, bqkv, wo, wgu, wd, fnorm,
                        lm_pad, onehot):
    BS_d = dec_init.shape[0]
    # No grid: all operands are tiny and fully VMEM-resident; the whole
    # encoder+decoder forward is one kernel invocation.
    return pl.pallas_call(
        _fused_kernel,
        out_shape=jax.ShapeDtypeStruct((BS_d, VPAD), jnp.float32),
    )(enc_in, dec_init, sel, cos_e, sin_e, mask_e, cos_d, sin_d, mask_d,
      rope_perm, anorm, mnorm, wqkv_enc, wqkv_dec, bqkv, wo, wgu, wd,
      fnorm, lm_pad, onehot)


# --------------------------- trace-time constants ---------------------------
def _rope_tables(B, S):
    pos = np.arange(S, dtype=np.float32)
    inv = 1.0 / (ROPE_THETA ** (np.arange(0, HEAD_DIM, 2,
                                          dtype=np.float32) / HEAD_DIM))
    freqs = pos[:, None] * inv[None, :]                      # (S, DH/2)
    emb = np.concatenate([freqs, freqs], axis=-1)            # (S, DH)
    cos = np.tile(np.cos(emb), (B, N_HEADS)).astype(np.float32)   # (B*S, H)
    sin = np.tile(np.sin(emb), (B, N_HEADS)).astype(np.float32)
    return jnp.asarray(cos), jnp.asarray(sin)


def _rope_perm():
    # y = x @ P  ==  rotate_half applied head-wise with the sign folded in.
    P = np.zeros((HIDDEN, HIDDEN), dtype=np.float32)
    for h in range(N_HEADS):
        base = h * HEAD_DIM
        for j in range(HALF):
            P[base + HALF + j, base + j] = -1.0     # out[:half] = -x[half:]
            P[base + j, base + HALF + j] = 1.0      # out[half:] =  x[:half]
    return jnp.asarray(P, dtype=jnp.bfloat16)


def _attn_mask(B, S):
    r = np.arange(B * S)
    same_batch = (r[:, None] // S) == (r[None, :] // S)
    causal = (r[None, :] % S) <= (r[:, None] % S)
    bias = np.where(same_batch & causal, 0.0, NEG_INF).astype(np.float32)
    return jnp.asarray(bias)


def _mem_select(B, S_enc, S_dec):
    # Row-selection matrix: decoder memory slot j of batch b <- encoder row
    # b*S_enc + (S_enc - NUM_MEM + j); qa rows stay zero (filled by dec_init).
    sel = np.zeros((B * S_dec, B * S_enc), dtype=np.float32)
    for b in range(B):
        for j in range(NUM_MEM):
            sel[b * S_dec + j, b * S_enc + (S_enc - NUM_MEM) + j] = 1.0
    return jnp.asarray(sel, dtype=jnp.bfloat16)


def _prep_qkv(params):
    """Trace-time (constant-folded) weight prep:
    * merge LoRA q/v adapters into the encoder's qkv weights,
    * fold the 1/sqrt(head_dim) attention scale into q columns + q bias."""
    f32 = jnp.float32
    wqkv = params['wqkv'].astype(f32)                        # (L, H, 3H)
    bqkv = params['bqkv'].astype(f32)                        # (L, 1, 3H)

    dq = LORA_SCALE * jnp.einsum('lhr,lrk->lhk',
                                 params['lora_aq'].astype(f32),
                                 params['lora_bq'].astype(f32))
    dv = LORA_SCALE * jnp.einsum('lhr,lrk->lhk',
                                 params['lora_av'].astype(f32),
                                 params['lora_bv'].astype(f32))
    wqkv_enc = wqkv.at[:, :, :HIDDEN].add(dq)
    wqkv_enc = wqkv_enc.at[:, :, 2 * HIDDEN:].add(dv)

    scale = 1.0 / (HEAD_DIM ** 0.5)
    fold = lambda w: w.at[:, :, :HIDDEN].multiply(scale)
    return (fold(wqkv_enc).astype(jnp.bfloat16),             # encoder (LoRA on)
            fold(wqkv).astype(jnp.bfloat16),                 # decoder (LoRA off)
            fold(bqkv))                                      # shared bias, f32


# ------------------------- synthetic Qwen parameters ------------------------
def init_params(key):
    keys = iter(jax.random.split(key, 32))

    def nrm(shape, scale=0.02):
        return (jax.random.normal(next(keys), shape, jnp.float32)
                * scale).astype(jnp.bfloat16)

    L, H, F, R = N_LAYERS, HIDDEN, FFN, LORA_R
    return {
        'embed': nrm((VOCAB, H)),
        # torch.randn(1, num_mem, hidden, dtype=bf16)
        'mem': jax.random.normal(next(keys), (1, NUM_MEM, H),
                                 jnp.float32).astype(jnp.bfloat16),
        'final_norm': jnp.ones((1, H), jnp.bfloat16),
        'lm_head': nrm((H, VOCAB)),
        # per-layer weights stacked along a leading layer axis
        'attn_norm': jnp.ones((L, 1, H), jnp.bfloat16),
        'mlp_norm': jnp.ones((L, 1, H), jnp.bfloat16),
        'wqkv': nrm((L, H, 3 * H)),
        'bqkv': nrm((L, 1, 3 * H)),
        'wo': nrm((L, H, H)),
        'wgu': nrm((L, H, 2 * F)),
        'wd': nrm((L, F, H)),
        # "loaded" LoRA adapters on q_proj / v_proj (merged at trace time)
        'lora_aq': nrm((L, H, R)), 'lora_bq': nrm((L, R, H)),
        'lora_av': nrm((L, H, R)), 'lora_bv': nrm((L, R, H)),
        'rope_perm': _rope_perm(),
    }


# ------------------------------ model forward -------------------------------
def icae_qwen_qa_forward(params, input_ids, labels):
    text_tokens = input_ids[:, :MAX_CTX]
    qa_tokens = input_ids[:, MAX_CTX:]
    B = input_ids.shape[0]

    wqkv_enc, wqkv_dec, bqkv = _prep_qkv(params)

    # --- glue: encoder inputs_embeds = [text embeddings ; memory tokens] ---
    text_emb = jnp.take(params['embed'], text_tokens, axis=0)
    mem = jnp.broadcast_to(params['mem'], (B, NUM_MEM, HIDDEN))    # .repeat
    enc_in = jnp.concatenate([text_emb, mem], axis=1).astype(jnp.bfloat16)
    S_enc = enc_in.shape[1]

    # --- glue: qa embeddings placed in decoder slots (mem slots in-kernel) ---
    qa_emb = jnp.take(params['embed'], qa_tokens, axis=0)
    dec_init = jnp.concatenate(
        [jnp.zeros((B, NUM_MEM, HIDDEN), qa_emb.dtype), qa_emb],
        axis=1).astype(jnp.bfloat16)
    S_dec = dec_init.shape[1]

    cos_e, sin_e = _rope_tables(B, S_enc)
    cos_d, sin_d = _rope_tables(B, S_dec)
    mask_e = _attn_mask(B, S_enc)
    mask_d = _attn_mask(B, S_dec)
    sel = _mem_select(B, S_enc, S_dec)

    labels_flat = labels.reshape(-1)
    onehot = jax.nn.one_hot(labels_flat, VPAD, dtype=jnp.float32)  # -100 -> 0s
    lm_pad = jnp.zeros((HIDDEN, VPAD), jnp.bfloat16)
    lm_pad = lm_pad.at[:, :VOCAB].set(params['lm_head'])           # lane pad

    out = _fused_forward_call(
        enc_in.reshape(B * S_enc, HIDDEN),
        dec_init.reshape(B * S_dec, HIDDEN),
        sel, cos_e, sin_e, mask_e, cos_d, sin_d, mask_d,
        params['rope_perm'], params['attn_norm'], params['mlp_norm'],
        wqkv_enc, wqkv_dec, bqkv,
        params['wo'], params['wgu'], params['wd'], params['final_norm'],
        lm_pad, onehot)

    logits = out[:, :VOCAB].reshape(B, S_dec, VOCAB)
    loss_sum = out[0, VOCAB]                       # stashed in a padded lane
    n_valid = jnp.sum((labels_flat != IGNORE_INDEX).astype(jnp.float32))
    loss = loss_sum / jnp.maximum(n_valid, 1.0)    # CE mean over valid tokens
    return {'loss': loss, 'logits': logits}


# TODO(synk): pretrained Qwen checkpoint / tokenizer / PEFT LoRA-file loading
# has no Pallas equivalent; weights here are synthetic and deterministic.

# ----------------------------------- main -----------------------------------
if __name__ == "__main__":
    key = jax.random.PRNGKey(0)
    kp, kin, klab = jax.random.split(key, 3)

    params = init_params(kp)

    total_len = MAX_CTX + QA_LEN                 # input_ids length
    dec_len = NUM_MEM + QA_LEN                   # decoder / labels length
    input_ids = jax.random.randint(kin, (BATCH, total_len), 0, VOCAB,
                                   dtype=jnp.int32)
    labels = jax.random.randint(klab, (BATCH, dec_len), 0, VOCAB,
                                dtype=jnp.int32)
    labels = labels.at[:, :NUM_MEM].set(IGNORE_INDEX)   # ignore memory slots

    fwd = jax.jit(functools.partial(icae_qwen_qa_forward, params))
    out = fwd(input_ids, labels)
    jax.block_until_ready(out)

    assert out['logits'].shape == (BATCH, dec_len, VOCAB)
    assert out['loss'].shape == ()
    assert bool(jnp.isfinite(out['loss']))
    print("KERNEL_OK")
</pallas_src>

<mosaic_0001>
module attributes {stable_mosaic.version = 11 : i64} {
  func.func @_fused_kernel(%arg0: memref<24x32xbf16, #tpu.memory_space<vmem>>, %arg1: memref<24x32xbf16, #tpu.memory_space<vmem>>, %arg2: memref<24x24xbf16, #tpu.memory_space<vmem>>, %arg3: memref<24x32xf32, #tpu.memory_space<vmem>>, %arg4: memref<24x32xf32, #tpu.memory_space<vmem>>, %arg5: memref<24x24xf32, #tpu.memory_space<vmem>>, %arg6: memref<24x32xf32, #tpu.memory_space<vmem>>, %arg7: memref<24x32xf32, #tpu.memory_space<vmem>>, %arg8: memref<24x24xf32, #tpu.memory_space<vmem>>, %arg9: memref<32x32xbf16, #tpu.memory_space<vmem>>, %arg10: memref<2x1x32xbf16, #tpu.memory_space<vmem>>, %arg11: memref<2x1x32xbf16, #tpu.memory_space<vmem>>, %arg12: memref<2x32x96xbf16, #tpu.memory_space<vmem>>, %arg13: memref<2x32x96xbf16, #tpu.memory_space<vmem>>, %arg14: memref<2x1x96xf32, #tpu.memory_space<vmem>>, %arg15: memref<2x32x32xbf16, #tpu.memory_space<vmem>>, %arg16: memref<2x32x128xbf16, #tpu.memory_space<vmem>>, %arg17: memref<2x64x32xbf16, #tpu.memory_space<vmem>>, %arg18: memref<1x32xbf16, #tpu.memory_space<vmem>>, %arg19: memref<32x128xbf16, #tpu.memory_space<vmem>>, %arg20: memref<24x128xf32, #tpu.memory_space<vmem>>, %arg21: memref<24x128xf32, #tpu.memory_space<vmem>>) attributes {dimension_semantics = [], scalar_prefetch = 0 : i64, scratch_operands = 0 : i64, tpu.core_type = #tpu.core_type<tc>} {
    %c0 = arith.constant 0 : index
    %c0_0 = arith.constant 0 : index
    %0 = vector.load %arg9[%c0, %c0_0] : memref<32x32xbf16, #tpu.memory_space<vmem>>, vector<32x32xbf16>
    %c0_1 = arith.constant 0 : index
    %c0_2 = arith.constant 0 : index
    %1 = vector.load %arg0[%c0_1, %c0_2] : memref<24x32xbf16, #tpu.memory_space<vmem>>, vector<24x32xbf16>
    %2 = arith.extf %1 : vector<24x32xbf16> to vector<24x32xf32>
    %c0_3 = arith.constant 0 : index
    %c0_4 = arith.constant 0 : index
    %3 = vector.load %arg3[%c0_3, %c0_4] : memref<24x32xf32, #tpu.memory_space<vmem>>, vector<24x32xf32>
    %c0_5 = arith.constant 0 : index
    %c0_6 = arith.constant 0 : index
    %4 = vector.load %arg4[%c0_5, %c0_6] : memref<24x32xf32, #tpu.memory_space<vmem>>, vector<24x32xf32>
    %c0_7 = arith.constant 0 : index
    %c0_8 = arith.constant 0 : index
    %5 = vector.load %arg5[%c0_7, %c0_8] : memref<24x24xf32, #tpu.memory_space<vmem>>, vector<24x24xf32>
    %c0_9 = arith.constant 0 : index
    %c0_10 = arith.constant 0 : index
    %c0_11 = arith.constant 0 : index
    %6 = vector.load %arg12[%c0_9, %c0_10, %c0_11] : memref<2x32x96xbf16, #tpu.memory_space<vmem>>, vector<1x32x96xbf16>
    %7 = vector.shape_cast %6 : vector<1x32x96xbf16> to vector<32x96xbf16>
    %c0_12 = arith.constant 0 : index
    %c0_13 = arith.constant 0 : index
    %c0_14 = arith.constant 0 : index
    %8 = vector.load %arg10[%c0_12, %c0_13, %c0_14] : memref<2x1x32xbf16, #tpu.memory_space<vmem>>, vector<1x1x32xbf16>
    %9 = vector.shape_cast %8 : vector<1x1x32xbf16> to vector<1x32xbf16>
    %10 = arith.mulf %2, %2 : vector<24x32xf32>
    %cst = arith.constant dense<0.000000e+00> : vector<24xf32>
    %11 = vector.multi_reduction <add>, %10, %cst [1] : vector<24x32xf32> to vector<24xf32>
    %12 = vector.shape_cast %11 : vector<24xf32> to vector<24x1xf32>
    %cst_15 = arith.constant 3.200000e+01 : f32
    %13 = vector.broadcast %cst_15 : f32 to vector<24x1xf32>
    %14 = arith.divf %12, %13 : vector<24x1xf32>
    %cst_16 = arith.constant 9.99999997E-7 : f32
    %15 = vector.broadcast %cst_16 : f32 to vector<24x1xf32>
    %16 = arith.addf %14, %15 : vector<24x1xf32>
    %17 = math.rsqrt %16 : vector<24x1xf32>
    %18 = vector.broadcast %17 : vector<24x1xf32> to vector<24x32xf32>
    %19 = arith.mulf %2, %18 : vector<24x32xf32>
    %20 = arith.extf %9 : vector<1x32xbf16> to vector<1x32xf32>
    %21 = vector.broadcast %20 : vector<1x32xf32> to vector<24x32xf32>
    %22 = arith.mulf %19, %21 : vector<24x32xf32>
    %23 = arith.truncf %22 : vector<24x32xf32> to vector<24x32xbf16>
    %cst_17 = arith.constant dense<0.000000e+00> : vector<24x96xf32>
    %24 = tpu.matmul %23, %7, %cst_17 {dimension_numbers = #tpu.dot_dimension_numbers<[1], [0], [0], [1], [0, 0, 1, 1], [], []>} : vector<24x32xbf16>, vector<32x96xbf16>, vector<24x96xf32> -> vector<24x96xf32>
    %c0_18 = arith.constant 0 : index
    %c0_19 = arith.constant 0 : index
    %c0_20 = arith.constant 0 : index
    %25 = vector.load %arg14[%c0_18, %c0_19, %c0_20] : memref<2x1x96xf32, #tpu.memory_space<vmem>>, vector<1x1x96xf32>
    %26 = vector.shape_cast %25 : vector<1x1x96xf32> to vector<1x96xf32>
    %27 = vector.broadcast %26 : vector<1x96xf32> to vector<24x96xf32>
    %28 = arith.addf %24, %27 : vector<24x96xf32>
    %29 = vector.extract_strided_slice %28 {offsets = [0, 0], sizes = [24, 32], strides = [1, 1]} : vector<24x96xf32> to vector<24x32xf32>
    %30 = vector.extract_strided_slice %28 {offsets = [0, 32], sizes = [24, 32], strides = [1, 1]} : vector<24x96xf32> to vector<24x32xf32>
    %31 = vector.extract_strided_slice %28 {offsets = [0, 64], sizes = [24, 32], strides = [1, 1]} : vector<24x96xf32> to vector<24x32xf32>
    %32 = arith.mulf %29, %3 : vector<24x32xf32>
    %33 = arith.truncf %29 : vector<24x32xf32> to vector<24x32xbf16>
    %cst_21 = arith.constant dense<0.000000e+00> : vector<24x32xf32>
    %34 = tpu.matmul %33, %0, %cst_21 {dimension_numbers = #tpu.dot_dimension_numbers<[1], [0], [0], [1], [0, 0, 1, 1], [], []>} : vector<24x32xbf16>, vector<32x32xbf16>, vector<24x32xf32> -> vector<24x32xf32>
    %35 = arith.mulf %34, %4 : vector<24x32xf32>
    %36 = arith.addf %32, %35 : vector<24x32xf32>
    %37 = arith.mulf %30, %3 : vector<24x32xf32>
    %38 = arith.truncf %30 : vector<24x32xf32> to vector<24x32xbf16>
    %cst_22 = arith.constant dense<0.000000e+00> : vector<24x32xf32>
    %39 = tpu.matmul %38, %0, %cst_22 {dimension_numbers = #tpu.dot_dimension_numbers<[1], [0], [0], [1], [0, 0, 1, 1], [], []>} : vector<24x32xbf16>, vector<32x32xbf16>, vector<24x32xf32> -> vector<24x32xf32>
    %40 = arith.mulf %39, %4 : vector<24x32xf32>
    %41 = arith.addf %37, %40 : vector<24x32xf32>
    %c0_23 = arith.constant 0 : index
    %c0_24 = arith.constant 0 : index
    %c0_25 = arith.constant 0 : index
    %42 = vector.load %arg15[%c0_23, %c0_24, %c0_25] : memref<2x32x32xbf16, #tpu.memory_space<vmem>>, vector<1x32x32xbf16>
    %43 = vector.shape_cast %42 : vector<1x32x32xbf16> to vector<32x32xbf16>
    %44 = vector.extract_strided_slice %36 {offsets = [0, 0], sizes = [24, 8], strides = [1, 1]} : vector<24x32xf32> to vector<24x8xf32>
    %45 = vector.extract_strided_slice %41 {offsets = [0, 0], sizes = [24, 8], strides = [1, 1]} : vector<24x32xf32> to vector<24x8xf32>
    %46 = arith.truncf %44 : vector<24x8xf32> to vector<24x8xbf16>
    %47 = arith.truncf %45 : vector<24x8xf32> to vector<24x8xbf16>
    %cst_26 = arith.constant dense<0.000000e+00> : vector<24x24xf32>
    %48 = tpu.matmul %46, %47, %cst_26 {dimension_numbers = #tpu.dot_dimension_numbers<[1], [1], [0], [0], [0, 0, 1, 0], [], []>} : vector<24x8xbf16>, vector<24x8xbf16>, vector<24x24xf32> -> vector<24x24xf32>
    %49 = arith.addf %48, %5 : vector<24x24xf32>
    %cst_27 = arith.constant dense<0xFF800000> : vector<24xf32>
    %50 = vector.multi_reduction <maximumf>, %49, %cst_27 [1] : vector<24x24xf32> to vector<24xf32>
    %51 = vector.shape_cast %50 : vector<24xf32> to vector<24x1xf32>
    %52 = vector.broadcast %51 : vector<24x1xf32> to vector<24x24xf32>
    %53 = arith.subf %49, %52 : vector<24x24xf32>
    %54 = math.exp %53 : vector<24x24xf32>
    %cst_28 = arith.constant dense<0.000000e+00> : vector<24xf32>
    %55 = vector.multi_reduction <add>, %54, %cst_28 [1] : vector<24x24xf32> to vector<24xf32>
    %56 = vector.shape_cast %55 : vector<24xf32> to vector<24x1xf32>
    %57 = tpu.reciprocal %56 {approx = true} : vector<24x1xf32> -> vector<24x1xf32>
    %58 = vector.broadcast %57 : vector<24x1xf32> to vector<24x24xf32>
    %59 = arith.mulf %54, %58 : vector<24x24xf32>
    %60 = vector.extract_strided_slice %31 {offsets = [0, 0], sizes = [24, 8], strides = [1, 1]} : vector<24x32xf32> to vector<24x8xf32>
    %61 = arith.truncf %59 : vector<24x24xf32> to vector<24x24xbf16>
    %62 = arith.truncf %60 : vector<24x8xf32> to vector<24x8xbf16>
    %cst_29 = arith.constant dense<0.000000e+00> : vector<24x8xf32>
    %63 = tpu.matmul %61, %62, %cst_29 {dimension_numbers = #tpu.dot_dimension_numbers<[1], [0], [0], [1], [0, 0, 1, 1], [], []>} : vector<24x24xbf16>, vector<24x8xbf16>, vector<24x8xf32> -> vector<24x8xf32>
    %64 = vector.extract_strided_slice %43 {offsets = [0, 0], sizes = [8, 32], strides = [1, 1]} : vector<32x32xbf16> to vector<8x32xbf16>
    %65 = arith.truncf %63 : vector<24x8xf32> to vector<24x8xbf16>
    %cst_30 = arith.constant dense<0.000000e+00> : vector<24x32xf32>
    %66 = tpu.matmul %65, %64, %cst_30 {dimension_numbers = #tpu.dot_dimension_numbers<[1], [0], [0], [1], [0, 0, 1, 1], [], []>} : vector<24x8xbf16>, vector<8x32xbf16>, vector<24x32xf32> -> vector<24x32xf32>
    %67 = arith.addf %2, %66 : vector<24x32xf32>
    %68 = vector.extract_strided_slice %36 {offsets = [0, 8], sizes = [24, 8], strides = [1, 1]} : vector<24x32xf32> to vector<24x8xf32>
    %69 = vector.extract_strided_slice %41 {offsets = [0, 8], sizes = [24, 8], strides = [1, 1]} : vector<24x32xf32> to vector<24x8xf32>
    %70 = arith.truncf %68 : vector<24x8xf32> to vector<24x8xbf16>
    %71 = arith.truncf %69 : vector<24x8xf32> to vector<24x8xbf16>
    %cst_31 = arith.constant dense<0.000000e+00> : vector<24x24xf32>
    %72 = tpu.matmul %70, %71, %cst_31 {dimension_numbers = #tpu.dot_dimension_numbers<[1], [1], [0], [0], [0, 0, 1, 0], [], []>} : vector<24x8xbf16>, vector<24x8xbf16>, vector<24x24xf32> -> vector<24x24xf32>
    %73 = arith.addf %72, %5 : vector<24x24xf32>
    %cst_32 = arith.constant dense<0xFF800000> : vector<24xf32>
    %74 = vector.multi_reduction <maximumf>, %73, %cst_32 [1] : vector<24x24xf32> to vector<24xf32>
    %75 = vector.shape_cast %74 : vector<24xf32> to vector<24x1xf32>
    %76 = vector.broadcast %75 : vector<24x1xf32> to vector<24x24xf32>
    %77 = arith.subf %73, %76 : vector<24x24xf32>
    %78 = math.exp %77 : vector<24x24xf32>
    %cst_33 = arith.constant dense<0.000000e+00> : vector<24xf32>
    %79 = vector.multi_reduction <add>, %78, %cst_33 [1] : vector<24x24xf32> to vector<24xf32>
    %80 = vector.shape_cast %79 : vector<24xf32> to vector<24x1xf32>
    %81 = tpu.reciprocal %80 {approx = true} : vector<24x1xf32> -> vector<24x1xf32>
    %82 = vector.broadcast %81 : vector<24x1xf32> to vector<24x24xf32>
    %83 = arith.mulf %78, %82 : vector<24x24xf32>
    %84 = vector.extract_strided_slice %31 {offsets = [0, 8], sizes = [24, 8], strides = [1, 1]} : vector<24x32xf32> to vector<24x8xf32>
    %85 = arith.truncf %83 : vector<24x24xf32> to vector<24x24xbf16>
    %86 = arith.truncf %84 : vector<24x8xf32> to vector<24x8xbf16>
    %cst_34 = arith.constant dense<0.000000e+00> : vector<24x8xf32>
    %87 = tpu.matmul %85, %86, %cst_34 {dimension_numbers = #tpu.dot_dimension_numbers<[1], [0], [0], [1], [0, 0, 1, 1], [], []>} : vector<24x24xbf16>, vector<24x8xbf16>, vector<24x8xf32> -> vector<24x8xf32>
    %88 = vector.extract_strided_slice %43 {offsets = [8, 0], sizes = [8, 32], strides = [1, 1]} : vector<32x32xbf16> to vector<8x32xbf16>
    %89 = arith.truncf %87 : vector<24x8xf32> to vector<24x8xbf16>
    %cst_35 = arith.constant dense<0.000000e+00> : vector<24x32xf32>
    %90 = tpu.matmul %89, %88, %cst_35 {dimension_numbers = #tpu.dot_dimension_numbers<[1], [0], [0], [1], [0, 0, 1, 1], [], []>} : vector<24x8xbf16>, vector<8x32xbf16>, vector<24x32xf32> -> vector<24x32xf32>
    %91 = arith.addf %67, %90 : vector<24x32xf32>
    %92 = vector.extract_strided_slice %36 {offsets = [0, 16], sizes = [24, 8], strides = [1, 1]} : vector<24x32xf32> to vector<24x8xf32>
    %93 = vector.extract_strided_slice %41 {offsets = [0, 16], sizes = [24, 8], strides = [1, 1]} : vector<24x32xf32> to vector<24x8xf32>
    %94 = arith.truncf %92 : vector<24x8xf32> to vector<24x8xbf16>
    %95 = arith.truncf %93 : vector<24x8xf32> to vector<24x8xbf16>
    %cst_36 = arith.constant dense<0.000000e+00> : vector<24x24xf32>
    %96 = tpu.matmul %94, %95, %cst_36 {dimension_numbers = #tpu.dot_dimension_numbers<[1], [1], [0], [0], [0, 0, 1, 0], [], []>} : vector<24x8xbf16>, vector<24x8xbf16>, vector<24x24xf32> -> vector<24x24xf32>
    %97 = arith.addf %96, %5 : vector<24x24xf32>
    %cst_37 = arith.constant dense<0xFF800000> : vector<24xf32>
    %98 = vector.multi_reduction <maximumf>, %97, %cst_37 [1] : vector<24x24xf32> to vector<24xf32>
    %99 = vector.shape_cast %98 : vector<24xf32> to vector<24x1xf32>
    %100 = vector.broadcast %99 : vector<24x1xf32> to vector<24x24xf32>
    %101 = arith.subf %97, %100 : vector<24x24xf32>
    %102 = math.exp %101 : vector<24x24xf32>
    %cst_38 = arith.constant dense<0.000000e+00> : vector<24xf32>
    %103 = vector.multi_reduction <add>, %102, %cst_38 [1] : vector<24x24xf32> to vector<24xf32>
    %104 = vector.shape_cast %103 : vector<24xf32> to vector<24x1xf32>
    %105 = tpu.reciprocal %104 {approx = true} : vector<24x1xf32> -> vector<24x1xf32>
    %106 = vector.broadcast %105 : vector<24x1xf32> to vector<24x24xf32>
    %107 = arith.mulf %102, %106 : vector<24x24xf32>
    %108 = vector.extract_strided_slice %31 {offsets = [0, 16], sizes = [24, 8], strides = [1, 1]} : vector<24x32xf32> to vector<24x8xf32>
    %109 = arith.truncf %107 : vector<24x24xf32> to vector<24x24xbf16>
    %110 = arith.truncf %108 : vector<24x8xf32> to vector<24x8xbf16>
    %cst_39 = arith.constant dense<0.000000e+00> : vector<24x8xf32>
    %111 = tpu.matmul %109, %110, %cst_39 {dimension_numbers = #tpu.dot_dimension_numbers<[1], [0], [0], [1], [0, 0, 1, 1], [], []>} : vector<24x24xbf16>, vector<24x8xbf16>, vector<24x8xf32> -> vector<24x8xf32>
    %112 = vector.extract_strided_slice %43 {offsets = [16, 0], sizes = [8, 32], strides = [1, 1]} : vector<32x32xbf16> to vector<8x32xbf16>
    %113 = arith.truncf %111 : vector<24x8xf32> to vector<24x8xbf16>
    %cst_40 = arith.constant dense<0.000000e+00> : vector<24x32xf32>
    %114 = tpu.matmul %113, %112, %cst_40 {dimension_numbers = #tpu.dot_dimension_numbers<[1], [0], [0], [1], [0, 0, 1, 1], [], []>} : vector<24x8xbf16>, vector<8x32xbf16>, vector<24x32xf32> -> vector<24x32xf32>
    %115 = arith.addf %91, %114 : vector<24x32xf32>
    %116 = vector.extract_strided_slice %36 {offsets = [0, 24], sizes = [24, 8], strides = [1, 1]} : vector<24x32xf32> to vector<24x8xf32>
    %117 = vector.extract_strided_slice %41 {offsets = [0, 24], sizes = [24, 8], strides = [1, 1]} : vector<24x32xf32> to vector<24x8xf32>
    %118 = arith.truncf %116 : vector<24x8xf32> to vector<24x8xbf16>
    %119 = arith.truncf %117 : vector<24x8xf32> to vector<24x8xbf16>
    %cst_41 = arith.constant dense<0.000000e+00> : vector<24x24xf32>
    %120 = tpu.matmul %118, %119, %cst_41 {dimension_numbers = #tpu.dot_dimension_numbers<[1], [1], [0], [0], [0, 0, 1, 0], [], []>} : vector<24x8xbf16>, vector<24x8xbf16>, vector<24x24xf32> -> vector<24x24xf32>
    %121 = arith.addf %120, %5 : vector<24x24xf32>
    %cst_42 = arith.constant dense<0xFF800000> : vector<24xf32>
    %122 = vector.multi_reduction <maximumf>, %121, %cst_42 [1] : vector<24x24xf32> to vector<24xf32>
    %123 = vector.shape_cast %122 : vector<24xf32> to vector<24x1xf32>
    %124 = vector.broadcast %123 : vector<24x1xf32> to vector<24x24xf32>
    %125 = arith.subf %121, %124 : vector<24x24xf32>
    %126 = math.exp %125 : vector<24x24xf32>
    %cst_43 = arith.constant dense<0.000000e+00> : vector<24xf32>
    %127 = vector.multi_reduction <add>, %126, %cst_43 [1] : vector<24x24xf32> to vector<24xf32>
    %128 = vector.shape_cast %127 : vector<24xf32> to vector<24x1xf32>
    %129 = tpu.reciprocal %128 {approx = true} : vector<24x1xf32> -> vector<24x1xf32>
    %130 = vector.broadcast %129 : vector<24x1xf32> to vector<24x24xf32>
    %131 = arith.mulf %126, %130 : vector<24x24xf32>
    %132 = vector.extract_strided_slice %31 {offsets = [0, 24], sizes = [24, 8], strides = [1, 1]} : vector<24x32xf32> to vector<24x8xf32>
    %133 = arith.truncf %131 : vector<24x24xf32> to vector<24x24xbf16>
    %134 = arith.truncf %132 : vector<24x8xf32> to vector<24x8xbf16>
    %cst_44 = arith.constant dense<0.000000e+00> : vector<24x8xf32>
    %135 = tpu.matmul %133, %134, %cst_44 {dimension_numbers = #tpu.dot_dimension_numbers<[1], [0], [0], [1], [0, 0, 1, 1], [], []>} : vector<24x24xbf16>, vector<24x8xbf16>, vector<24x8xf32> -> vector<24x8xf32>
    %136 = vector.extract_strided_slice %43 {offsets = [24, 0], sizes = [8, 32], strides = [1, 1]} : vector<32x32xbf16> to vector<8x32xbf16>
    %137 = arith.truncf %135 : vector<24x8xf32> to vector<24x8xbf16>
    %cst_45 = arith.constant dense<0.000000e+00> : vector<24x32xf32>
    %138 = tpu.matmul %137, %136, %cst_45 {dimension_numbers = #tpu.dot_dimension_numbers<[1], [0], [0], [1], [0, 0, 1, 1], [], []>} : vector<24x8xbf16>, vector<8x32xbf16>, vector<24x32xf32> -> vector<24x32xf32>
    %139 = arith.addf %115, %138 : vector<24x32xf32>
    %c0_46 = arith.constant 0 : index
    %c0_47 = arith.constant 0 : index
    %c0_48 = arith.constant 0 : index
    %140 = vector.load %arg11[%c0_46, %c0_47, %c0_48] : memref<2x1x32xbf16, #tpu.memory_space<vmem>>, vector<1x1x32xbf16>
    %141 = vector.shape_cast %140 : vector<1x1x32xbf16> to vector<1x32xbf16>
    %142 = arith.mulf %139, %139 : vector<24x32xf32>
    %cst_49 = arith.constant dense<0.000000e+00> : vector<24xf32>
    %143 = vector.multi_reduction <add>, %142, %cst_49 [1] : vector<24x32xf32> to vector<24xf32>
    %144 = vector.shape_cast %143 : vector<24xf32> to vector<24x1xf32>
    %cst_50 = arith.constant 3.200000e+01 : f32
    %145 = vector.broadcast %cst_50 : f32 to vector<24x1xf32>
    %146 = arith.divf %144, %145 : vector<24x1xf32>
    %cst_51 = arith.constant 9.99999997E-7 : f32
    %147 = vector.broadcast %cst_51 : f32 to vector<24x1xf32>
    %148 = arith.addf %146, %147 : vector<24x1xf32>
    %149 = math.rsqrt %148 : vector<24x1xf32>
    %150 = vector.broadcast %149 : vector<24x1xf32> to vector<24x32xf32>
    %151 = arith.mulf %139, %150 : vector<24x32xf32>
    %152 = arith.extf %141 : vector<1x32xbf16> to vector<1x32xf32>
    %153 = vector.broadcast %152 : vector<1x32xf32> to vector<24x32xf32>
    %154 = arith.mulf %151, %153 : vector<24x32xf32>
    %155 = arith.truncf %154 : vector<24x32xf32> to vector<24x32xbf16>
    %c0_52 = arith.constant 0 : index
    %c0_53 = arith.constant 0 : index
    %c0_54 = arith.constant 0 : index
    %156 = vector.load %arg16[%c0_52, %c0_53, %c0_54] : memref<2x32x128xbf16, #tpu.memory_space<vmem>>, vector<1x32x128xbf16>
    %157 = vector.shape_cast %156 : vector<1x32x128xbf16> to vector<32x128xbf16>
    %cst_55 = arith.constant dense<0.000000e+00> : vector<24x128xf32>
    %158 = tpu.matmul %155, %157, %cst_55 {dimension_numbers = #tpu.dot_dimension_numbers<[1], [0], [0], [1], [0, 0, 1, 1], [], []>} : vector<24x32xbf16>, vector<32x128xbf16>, vector<24x128xf32> -> vector<24x128xf32>
    %159 = vector.extract_strided_slice %158 {offsets = [0, 0], sizes = [24, 64], strides = [1, 1]} : vector<24x128xf32> to vector<24x64xf32>
    %160 = vector.extract_strided_slice %158 {offsets = [0, 64], sizes = [24, 64], strides = [1, 1]} : vector<24x128xf32> to vector<24x64xf32>
    %161 = arith.negf %159 : vector<24x64xf32>
    %162 = math.exp %161 : vector<24x64xf32>
    %cst_56 = arith.constant 1.000000e+00 : f32
    %163 = vector.broadcast %cst_56 : f32 to vector<24x64xf32>
    %164 = arith.addf %163, %162 : vector<24x64xf32>
    %165 = arith.divf %163, %164 : vector<24x64xf32>
    %166 = arith.mulf %159, %165 : vector<24x64xf32>
    %167 = arith.mulf %166, %160 : vector<24x64xf32>
    %c0_57 = arith.constant 0 : index
    %c0_58 = arith.constant 0 : index
    %c0_59 = arith.constant 0 : index
    %168 = vector.load %arg17[%c0_57, %c0_58, %c0_59] : memref<2x64x32xbf16, #tpu.memory_space<vmem>>, vector<1x64x32xbf16>
    %169 = vector.shape_cast %168 : vector<1x64x32xbf16> to vector<64x32xbf16>
    %170 = arith.truncf %167 : vector<24x64xf32> to vector<24x64xbf16>
    %cst_60 = arith.constant dense<0.000000e+00> : vector<24x32xf32>
    %171 = tpu.matmul %170, %169, %cst_60 {dimension_numbers = #tpu.dot_dimension_numbers<[1], [0], [0], [1], [0, 0, 1, 1], [], []>} : vector<24x64xbf16>, vector<64x32xbf16>, vector<24x32xf32> -> vector<24x32xf32>
    %172 = arith.addf %139, %171 : vector<24x32xf32>
    %c1 = arith.constant 1 : index
    %c0_61 = arith.constant 0 : index
    %c0_62 = arith.constant 0 : index
    %173 = vector.load %arg12[%c1, %c0_61, %c0_62] : memref<2x32x96xbf16, #tpu.memory_space<vmem>>, vector<1x32x96xbf16>
    %174 = vector.shape_cast %173 : vector<1x32x96xbf16> to vector<32x96xbf16>
    %c1_63 = arith.constant 1 : index
    %c0_64 = arith.constant 0 : index
    %c0_65 = arith.constant 0 : index
    %175 = vector.load %arg10[%c1_63, %c0_64, %c0_65] : memref<2x1x32xbf16, #tpu.memory_space<vmem>>, vector<1x1x32xbf16>
    %176 = vector.shape_cast %175 : vector<1x1x32xbf16> to vector<1x32xbf16>
    %177 = arith.mulf %172, %172 : vector<24x32xf32>
    %cst_66 = arith.constant dense<0.000000e+00> : vector<24xf32>
    %178 = vector.multi_reduction <add>, %177, %cst_66 [1] : vector<24x32xf32> to vector<24xf32>
    %179 = vector.shape_cast %178 : vector<24xf32> to vector<24x1xf32>
    %cst_67 = arith.constant 3.200000e+01 : f32
    %180 = vector.broadcast %cst_67 : f32 to vector<24x1xf32>
    %181 = arith.divf %179, %180 : vector<24x1xf32>
    %cst_68 = arith.constant 9.99999997E-7 : f32
    %182 = vector.broadcast %cst_68 : f32 to vector<24x1xf32>
    %183 = arith.addf %181, %182 : vector<24x1xf32>
    %184 = math.rsqrt %183 : vector<24x1xf32>
    %185 = vector.broadcast %184 : vector<24x1xf32> to vector<24x32xf32>
    %186 = arith.mulf %172, %185 : vector<24x32xf32>
    %187 = arith.extf %176 : vector<1x32xbf16> to vector<1x32xf32>
    %188 = vector.broadcast %187 : vector<1x32xf32> to vector<24x32xf32>
    %189 = arith.mulf %186, %188 : vector<24x32xf32>
    %190 = arith.truncf %189 : vector<24x32xf32> to vector<24x32xbf16>
    %cst_69 = arith.constant dense<0.000000e+00> : vector<24x96xf32>
    %191 = tpu.matmul %190, %174, %cst_69 {dimension_numbers = #tpu.dot_dimension_numbers<[1], [0], [0], [1], [0, 0, 1, 1], [], []>} : vector<24x32xbf16>, vector<32x96xbf16>, vector<24x96xf32> -> vector<24x96xf32>
    %c1_70 = arith.constant 1 : index
    %c0_71 = arith.constant 0 : index
    %c0_72 = arith.constant 0 : index
    %192 = vector.load %arg14[%c1_70, %c0_71, %c0_72] : memref<2x1x96xf32, #tpu.memory_space<vmem>>, vector<1x1x96xf32>
    %193 = vector.shape_cast %192 : vector<1x1x96xf32> to vector<1x96xf32>
    %194 = vector.broadcast %193 : vector<1x96xf32> to vector<24x96xf32>
    %195 = arith.addf %191, %194 : vector<24x96xf32>
    %196 = vector.extract_strided_slice %195 {offsets = [0, 0], sizes = [24, 32], strides = [1, 1]} : vector<24x96xf32> to vector<24x32xf32>
    %197 = vector.extract_strided_slice %195 {offsets = [0, 32], sizes = [24, 32], strides = [1, 1]} : vector<24x96xf32> to vector<24x32xf32>
    %198 = vector.extract_strided_slice %195 {offsets = [0, 64], sizes = [24, 32], strides = [1, 1]} : vector<24x96xf32> to vector<24x32xf32>
    %199 = arith.mulf %196, %3 : vector<24x32xf32>
    %200 = arith.truncf %196 : vector<24x32xf32> to vector<24x32xbf16>
    %cst_73 = arith.constant dense<0.000000e+00> : vector<24x32xf32>
    %201 = tpu.matmul %200, %0, %cst_73 {dimension_numbers = #tpu.dot_dimension_numbers<[1], [0], [0], [1], [0, 0, 1, 1], [], []>} : vector<24x32xbf16>, vector<32x32xbf16>, vector<24x32xf32> -> vector<24x32xf32>
    %202 = arith.mulf %201, %4 : vector<24x32xf32>
    %203 = arith.addf %199, %202 : vector<24x32xf32>
    %204 = arith.mulf %197, %3 : vector<24x32xf32>
    %205 = arith.truncf %197 : vector<24x32xf32> to vector<24x32xbf16>
    %cst_74 = arith.constant dense<0.000000e+00> : vector<24x32xf32>
    %206 = tpu.matmul %205, %0, %cst_74 {dimension_numbers = #tpu.dot_dimension_numbers<[1], [0], [0], [1], [0, 0, 1, 1], [], []>} : vector<24x32xbf16>, vector<32x32xbf16>, vector<24x32xf32> -> vector<24x32xf32>
    %207 = arith.mulf %206, %4 : vector<24x32xf32>
    %208 = arith.addf %204, %207 : vector<24x32xf32>
    %c1_75 = arith.constant 1 : index
    %c0_76 = arith.constant 0 : index
    %c0_77 = arith.constant 0 : index
    %209 = vector.load %arg15[%c1_75, %c0_76, %c0_77] : memref<2x32x32xbf16, #tpu.memory_space<vmem>>, vector<1x32x32xbf16>
    %210 = vector.shape_cast %209 : vector<1x32x32xbf16> to vector<32x32xbf16>
    %211 = vector.extract_strided_slice %203 {offsets = [0, 0], sizes = [24, 8], strides = [1, 1]} : vector<24x32xf32> to vector<24x8xf32>
    %212 = vector.extract_strided_slice %208 {offsets = [0, 0], sizes = [24, 8], strides = [1, 1]} : vector<24x32xf32> to vector<24x8xf32>
    %213 = arith.truncf %211 : vector<24x8xf32> to vector<24x8xbf16>
    %214 = arith.truncf %212 : vector<24x8xf32> to vector<24x8xbf16>
    %cst_78 = arith.constant dense<0.000000e+00> : vector<24x24xf32>
    %215 = tpu.matmul %213, %214, %cst_78 {dimension_numbers = #tpu.dot_dimension_numbers<[1], [1], [0], [0], [0, 0, 1, 0], [], []>} : vector<24x8xbf16>, vector<24x8xbf16>, vector<24x24xf32> -> vector<24x24xf32>
    %216 = arith.addf %215, %5 : vector<24x24xf32>
    %cst_79 = arith.constant dense<0xFF800000> : vector<24xf32>
    %217 = vector.multi_reduction <maximumf>, %216, %cst_79 [1] : vector<24x24xf32> to vector<24xf32>
    %218 = vector.shape_cast %217 : vector<24xf32> to vector<24x1xf32>
    %219 = vector.broadcast %218 : vector<24x1xf32> to vector<24x24xf32>
    %220 = arith.subf %216, %219 : vector<24x24xf32>
    %221 = math.exp %220 : vector<24x24xf32>
    %cst_80 = arith.constant dense<0.000000e+00> : vector<24xf32>
    %222 = vector.multi_reduction <add>, %221, %cst_80 [1] : vector<24x24xf32> to vector<24xf32>
    %223 = vector.shape_cast %222 : vector<24xf32> to vector<24x1xf32>
    %224 = tpu.reciprocal %223 {approx = true} : vector<24x1xf32> -> vector<24x1xf32>
    %225 = vector.broadcast %224 : vector<24x1xf32> to vector<24x24xf32>
    %226 = arith.mulf %221, %225 : vector<24x24xf32>
    %227 = vector.extract_strided_slice %198 {offsets = [0, 0], sizes = [24, 8], strides = [1, 1]} : vector<24x32xf32> to vector<24x8xf32>
    %228 = arith.truncf %226 : vector<24x24xf32> to vector<24x24xbf16>
    %229 = arith.truncf %227 : vector<24x8xf32> to vector<24x8xbf16>
    %cst_81 = arith.constant dense<0.000000e+00> : vector<24x8xf32>
    %230 = tpu.matmul %228, %229, %cst_81 {dimension_numbers = #tpu.dot_dimension_numbers<[1], [0], [0], [1], [0, 0, 1, 1], [], []>} : vector<24x24xbf16>, vector<24x8xbf16>, vector<24x8xf32> -> vector<24x8xf32>
    %231 = vector.extract_strided_slice %210 {offsets = [0, 0], sizes = [8, 32], strides = [1, 1]} : vector<32x32xbf16> to vector<8x32xbf16>
    %232 = arith.truncf %230 : vector<24x8xf32> to vector<24x8xbf16>
    %cst_82 = arith.constant dense<0.000000e+00> : vector<24x32xf32>
    %233 = tpu.matmul %232, %231, %cst_82 {dimension_numbers = #tpu.dot_dimension_numbers<[1], [0], [0], [1], [0, 0, 1, 1], [], []>} : vector<24x8xbf16>, vector<8x32xbf16>, vector<24x32xf32> -> vector<24x32xf32>
    %234 = arith.addf %172, %233 : vector<24x32xf32>
    %235 = vector.extract_strided_slice %203 {offsets = [0, 8], sizes = [24, 8], strides = [1, 1]} : vector<24x32xf32> to vector<24x8xf32>
    %236 = vector.extract_strided_slice %208 {offsets = [0, 8], sizes = [24, 8], strides = [1, 1]} : vector<24x32xf32> to vector<24x8xf32>
    %237 = arith.truncf %235 : vector<24x8xf32> to vector<24x8xbf16>
    %238 = arith.truncf %236 : vector<24x8xf32> to vector<24x8xbf16>
    %cst_83 = arith.constant dense<0.000000e+00> : vector<24x24xf32>
    %239 = tpu.matmul %237, %238, %cst_83 {dimension_numbers = #tpu.dot_dimension_numbers<[1], [1], [0], [0], [0, 0, 1, 0], [], []>} : vector<24x8xbf16>, vector<24x8xbf16>, vector<24x24xf32> -> vector<24x24xf32>
    %240 = arith.addf %239, %5 : vector<24x24xf32>
    %cst_84 = arith.constant dense<0xFF800000> : vector<24xf32>
    %241 = vector.multi_reduction <maximumf>, %240, %cst_84 [1] : vector<24x24xf32> to vector<24xf32>
    %242 = vector.shape_cast %241 : vector<24xf32> to vector<24x1xf32>
    %243 = vector.broadcast %242 : vector<24x1xf32> to vector<24x24xf32>
    %244 = arith.subf %240, %243 : vector<24x24xf32>
    %245 = math.exp %244 : vector<24x24xf32>
    %cst_85 = arith.constant dense<0.000000e+00> : vector<24xf32>
    %246 = vector.multi_reduction <add>, %245, %cst_85 [1] : vector<24x24xf32> to vector<24xf32>
    %247 = vector.shape_cast %246 : vector<24xf32> to vector<24x1xf32>
    %248 = tpu.reciprocal %247 {approx = true} : vector<24x1xf32> -> vector<24x1xf32>
    %249 = vector.broadcast %248 : vector<24x1xf32> to vector<24x24xf32>
    %250 = arith.mulf %245, %249 : vector<24x24xf32>
    %251 = vector.extract_strided_slice %198 {offsets = [0, 8], sizes = [24, 8], strides = [1, 1]} : vector<24x32xf32> to vector<24x8xf32>
    %252 = arith.truncf %250 : vector<24x24xf32> to vector<24x24xbf16>
    %253 = arith.truncf %251 : vector<24x8xf32> to vector<24x8xbf16>
    %cst_86 = arith.constant dense<0.000000e+00> : vector<24x8xf32>
    %254 = tpu.matmul %252, %253, %cst_86 {dimension_numbers = #tpu.dot_dimension_numbers<[1], [0], [0], [1], [0, 0, 1, 1], [], []>} : vector<24x24xbf16>, vector<24x8xbf16>, vector<24x8xf32> -> vector<24x8xf32>
    %255 = vector.extract_strided_slice %210 {offsets = [8, 0], sizes = [8, 32], strides = [1, 1]} : vector<32x32xbf16> to vector<8x32xbf16>
    %256 = arith.truncf %254 : vector<24x8xf32> to vector<24x8xbf16>
    %cst_87 = arith.constant dense<0.000000e+00> : vector<24x32xf32>
    %257 = tpu.matmul %256, %255, %cst_87 {dimension_numbers = #tpu.dot_dimension_numbers<[1], [0], [0], [1], [0, 0, 1, 1], [], []>} : vector<24x8xbf16>, vector<8x32xbf16>, vector<24x32xf32> -> vector<24x32xf32>
    %258 = arith.addf %234, %257 : vector<24x32xf32>
    %259 = vector.extract_strided_slice %203 {offsets = [0, 16], sizes = [24, 8], strides = [1, 1]} : vector<24x32xf32> to vector<24x8xf32>
    %260 = vector.extract_strided_slice %208 {offsets = [0, 16], sizes = [24, 8], strides = [1, 1]} : vector<24x32xf32> to vector<24x8xf32>
    %261 = arith.truncf %259 : vector<24x8xf32> to vector<24x8xbf16>
    %262 = arith.truncf %260 : vector<24x8xf32> to vector<24x8xbf16>
    %cst_88 = arith.constant dense<0.000000e+00> : vector<24x24xf32>
    %263 = tpu.matmul %261, %262, %cst_88 {dimension_numbers = #tpu.dot_dimension_numbers<[1], [1], [0], [0], [0, 0, 1, 0], [], []>} : vector<24x8xbf16>, vector<24x8xbf16>, vector<24x24xf32> -> vector<24x24xf32>
    %264 = arith.addf %263, %5 : vector<24x24xf32>
    %cst_89 = arith.constant dense<0xFF800000> : vector<24xf32>
    %265 = vector.multi_reduction <maximumf>, %264, %cst_89 [1] : vector<24x24xf32> to vector<24xf32>
    %266 = vector.shape_cast %265 : vector<24xf32> to vector<24x1xf32>
    %267 = vector.broadcast %266 : vector<24x1xf32> to vector<24x24xf32>
    %268 = arith.subf %264, %267 : vector<24x24xf32>
    %269 = math.exp %268 : vector<24x24xf32>
    %cst_90 = arith.constant dense<0.000000e+00> : vector<24xf32>
    %270 = vector.multi_reduction <add>, %269, %cst_90 [1] : vector<24x24xf32> to vector<24xf32>
    %271 = vector.shape_cast %270 : vector<24xf32> to vector<24x1xf32>
    %272 = tpu.reciprocal %271 {approx = true} : vector<24x1xf32> -> vector<24x1xf32>
    %273 = vector.broadcast %272 : vector<24x1xf32> to vector<24x24xf32>
    %274 = arith.mulf %269, %273 : vector<24x24xf32>
    %275 = vector.extract_strided_slice %198 {offsets = [0, 16], sizes = [24, 8], strides = [1, 1]} : vector<24x32xf32> to vector<24x8xf32>
    %276 = arith.truncf %274 : vector<24x24xf32> to vector<24x24xbf16>
    %277 = arith.truncf %275 : vector<24x8xf32> to vector<24x8xbf16>
    %cst_91 = arith.constant dense<0.000000e+00> : vector<24x8xf32>
    %278 = tpu.matmul %276, %277, %cst_91 {dimension_numbers = #tpu.dot_dimension_numbers<[1], [0], [0], [1], [0, 0, 1, 1], [], []>} : vector<24x24xbf16>, vector<24x8xbf16>, vector<24x8xf32> -> vector<24x8xf32>
    %279 = vector.extract_strided_slice %210 {offsets = [16, 0], sizes = [8, 32], strides = [1, 1]} : vector<32x32xbf16> to vector<8x32xbf16>
    %280 = arith.truncf %278 : vector<24x8xf32> to vector<24x8xbf16>
    %cst_92 = arith.constant dense<0.000000e+00> : vector<24x32xf32>
    %281 = tpu.matmul %280, %279, %cst_92 {dimension_numbers = #tpu.dot_dimension_numbers<[1], [0], [0], [1], [0, 0, 1, 1], [], []>} : vector<24x8xbf16>, vector<8x32xbf16>, vector<24x32xf32> -> vector<24x32xf32>
    %282 = arith.addf %258, %281 : vector<24x32xf32>
    %283 = vector.extract_strided_slice %203 {offsets = [0, 24], sizes = [24, 8], strides = [1, 1]} : vector<24x32xf32> to vector<24x8xf32>
    %284 = vector.extract_strided_slice %208 {offsets = [0, 24], sizes = [24, 8], strides = [1, 1]} : vector<24x32xf32> to vector<24x8xf32>
    %285 = arith.truncf %283 : vector<24x8xf32> to vector<24x8xbf16>
    %286 = arith.truncf %284 : vector<24x8xf32> to vector<24x8xbf16>
    %cst_93 = arith.constant dense<0.000000e+00> : vector<24x24xf32>
    %287 = tpu.matmul %285, %286, %cst_93 {dimension_numbers = #tpu.dot_dimension_numbers<[1], [1], [0], [0], [0, 0, 1, 0], [], []>} : vector<24x8xbf16>, vector<24x8xbf16>, vector<24x24xf32> -> vector<24x24xf32>
    %288 = arith.addf %287, %5 : vector<24x24xf32>
    %cst_94 = arith.constant dense<0xFF800000> : vector<24xf32>
    %289 = vector.multi_reduction <maximumf>, %288, %cst_94 [1] : vector<24x24xf32> to vector<24xf32>
    %290 = vector.shape_cast %289 : vector<24xf32> to vector<24x1xf32>
    %291 = vector.broadcast %290 : vector<24x1xf32> to vector<24x24xf32>
    %292 = arith.subf %288, %291 : vector<24x24xf32>
    %293 = math.exp %292 : vector<24x24xf32>
    %cst_95 = arith.constant dense<0.000000e+00> : vector<24xf32>
    %294 = vector.multi_reduction <add>, %293, %cst_95 [1] : vector<24x24xf32> to vector<24xf32>
    %295 = vector.shape_cast %294 : vector<24xf32> to vector<24x1xf32>
    %296 = tpu.reciprocal %295 {approx = true} : vector<24x1xf32> -> vector<24x1xf32>
    %297 = vector.broadcast %296 : vector<24x1xf32> to vector<24x24xf32>
    %298 = arith.mulf %293, %297 : vector<24x24xf32>
    %299 = vector.extract_strided_slice %198 {offsets = [0, 24], sizes = [24, 8], strides = [1, 1]} : vector<24x32xf32> to vector<24x8xf32>
    %300 = arith.truncf %298 : vector<24x24xf32> to vector<24x24xbf16>
    %301 = arith.truncf %299 : vector<24x8xf32> to vector<24x8xbf16>
    %cst_96 = arith.constant dense<0.000000e+00> : vector<24x8xf32>
    %302 = tpu.matmul %300, %301, %cst_96 {dimension_numbers = #tpu.dot_dimension_numbers<[1], [0], [0], [1], [0, 0, 1, 1], [], []>} : vector<24x24xbf16>, vector<24x8xbf16>, vector<24x8xf32> -> vector<24x8xf32>
    %303 = vector.extract_strided_slice %210 {offsets = [24, 0], sizes = [8, 32], strides = [1, 1]} : vector<32x32xbf16> to vector<8x32xbf16>
    %304 = arith.truncf %302 : vector<24x8xf32> to vector<24x8xbf16>
    %cst_97 = arith.constant dense<0.000000e+00> : vector<24x32xf32>
    %305 = tpu.matmul %304, %303, %cst_97 {dimension_numbers = #tpu.dot_dimension_numbers<[1], [0], [0], [1], [0, 0, 1, 1], [], []>} : vector<24x8xbf16>, vector<8x32xbf16>, vector<24x32xf32> -> vector<24x32xf32>
    %306 = arith.addf %282, %305 : vector<24x32xf32>
    %c1_98 = arith.constant 1 : index
    %c0_99 = arith.constant 0 : index
    %c0_100 = arith.constant 0 : index
    %307 = vector.load %arg11[%c1_98, %c0_99, %c0_100] : memref<2x1x32xbf16, #tpu.memory_space<vmem>>, vector<1x1x32xbf16>
    %308 = vector.shape_cast %307 : vector<1x1x32xbf16> to vector<1x32xbf16>
    %309 = arith.mulf %306, %306 : vector<24x32xf32>
    %cst_101 = arith.constant dense<0.000000e+00> : vector<24xf32>
    %310 = vector.multi_reduction <add>, %309, %cst_101 [1] : vector<24x32xf32> to vector<24xf32>
    %311 = vector.shape_cast %310 : vector<24xf32> to vector<24x1xf32>
    %cst_102 = arith.constant 3.200000e+01 : f32
    %312 = vector.broadcast %cst_102 : f32 to vector<24x1xf32>
    %313 = arith.divf %311, %312 : vector<24x1xf32>
    %cst_103 = arith.constant 9.99999997E-7 : f32
    %314 = vector.broadcast %cst_103 : f32 to vector<24x1xf32>
    %315 = arith.addf %313, %314 : vector<24x1xf32>
    %316 = math.rsqrt %315 : vector<24x1xf32>
    %317 = vector.broadcast %316 : vector<24x1xf32> to vector<24x32xf32>
    %318 = arith.mulf %306, %317 : vector<24x32xf32>
    %319 = arith.extf %308 : vector<1x32xbf16> to vector<1x32xf32>
    %320 = vector.broadcast %319 : vector<1x32xf32> to vector<24x32xf32>
    %321 = arith.mulf %318, %320 : vector<24x32xf32>
    %322 = arith.truncf %321 : vector<24x32xf32> to vector<24x32xbf16>
    %c1_104 = arith.constant 1 : index
    %c0_105 = arith.constant 0 : index
    %c0_106 = arith.constant 0 : index
    %323 = vector.load %arg16[%c1_104, %c0_105, %c0_106] : memref<2x32x128xbf16, #tpu.memory_space<vmem>>, vector<1x32x128xbf16>
    %324 = vector.shape_cast %323 : vector<1x32x128xbf16> to vector<32x128xbf16>
    %cst_107 = arith.constant dense<0.000000e+00> : vector<24x128xf32>
    %325 = tpu.matmul %322, %324, %cst_107 {dimension_numbers = #tpu.dot_dimension_numbers<[1], [0], [0], [1], [0, 0, 1, 1], [], []>} : vector<24x32xbf16>, vector<32x128xbf16>, vector<24x128xf32> -> vector<24x128xf32>
    %326 = vector.extract_strided_slice %325 {offsets = [0, 0], sizes = [24, 64], strides = [1, 1]} : vector<24x128xf32> to vector<24x64xf32>
    %327 = vector.extract_strided_slice %325 {offsets = [0, 64], sizes = [24, 64], strides = [1, 1]} : vector<24x128xf32> to vector<24x64xf32>
    %328 = arith.negf %326 : vector<24x64xf32>
    %329 = math.exp %328 : vector<24x64xf32>
    %cst_108 = arith.constant 1.000000e+00 : f32
    %330 = vector.broadcast %cst_108 : f32 to vector<24x64xf32>
    %331 = arith.addf %330, %329 : vector<24x64xf32>
    %332 = arith.divf %330, %331 : vector<24x64xf32>
    %333 = arith.mulf %326, %332 : vector<24x64xf32>
    %334 = arith.mulf %333, %327 : vector<24x64xf32>
    %c1_109 = arith.constant 1 : index
    %c0_110 = arith.constant 0 : index
    %c0_111 = arith.constant 0 : index
    %335 = vector.load %arg17[%c1_109, %c0_110, %c0_111] : memref<2x64x32xbf16, #tpu.memory_space<vmem>>, vector<1x64x32xbf16>
    %336 = vector.shape_cast %335 : vector<1x64x32xbf16> to vector<64x32xbf16>
    %337 = arith.truncf %334 : vector<24x64xf32> to vector<24x64xbf16>
    %cst_112 = arith.constant dense<0.000000e+00> : vector<24x32xf32>
    %338 = tpu.matmul %337, %336, %cst_112 {dimension_numbers = #tpu.dot_dimension_numbers<[1], [0], [0], [1], [0, 0, 1, 1], [], []>} : vector<24x64xbf16>, vector<64x32xbf16>, vector<24x32xf32> -> vector<24x32xf32>
    %339 = arith.addf %306, %338 : vector<24x32xf32>
    %c0_113 = arith.constant 0 : index
    %c0_114 = arith.constant 0 : index
    %340 = vector.load %arg18[%c0_113, %c0_114] : memref<1x32xbf16, #tpu.memory_space<vmem>>, vector<1x32xbf16>
    %341 = arith.mulf %339, %339 : vector<24x32xf32>
    %cst_115 = arith.constant dense<0.000000e+00> : vector<24xf32>
    %342 = vector.multi_reduction <add>, %341, %cst_115 [1] : vector<24x32xf32> to vector<24xf32>
    %343 = vector.shape_cast %342 : vector<24xf32> to vector<24x1xf32>
    %cst_116 = arith.constant 3.200000e+01 : f32
    %344 = vector.broadcast %cst_116 : f32 to vector<24x1xf32>
    %345 = arith.divf %343, %344 : vector<24x1xf32>
    %cst_117 = arith.constant 9.99999997E-7 : f32
    %346 = vector.broadcast %cst_117 : f32 to vector<24x1xf32>
    %347 = arith.addf %345, %346 : vector<24x1xf32>
    %348 = math.rsqrt %347 : vector<24x1xf32>
    %349 = vector.broadcast %348 : vector<24x1xf32> to vector<24x32xf32>
    %350 = arith.mulf %339, %349 : vector<24x32xf32>
    %351 = arith.extf %340 : vector<1x32xbf16> to vector<1x32xf32>
    %352 = vector.broadcast %351 : vector<1x32xf32> to vector<24x32xf32>
    %353 = arith.mulf %350, %352 : vector<24x32xf32>
    %c0_118 = arith.constant 0 : index
    %c0_119 = arith.constant 0 : index
    %354 = vector.load %arg2[%c0_118, %c0_119] : memref<24x24xbf16, #tpu.memory_space<vmem>>, vector<24x24xbf16>
    %355 = arith.truncf %353 : vector<24x32xf32> to vector<24x32xbf16>
    %cst_120 = arith.constant dense<0.000000e+00> : vector<24x32xf32>
    %356 = tpu.matmul %354, %355, %cst_120 {dimension_numbers = #tpu.dot_dimension_numbers<[1], [0], [0], [1], [0, 0, 1, 1], [], []>} : vector<24x24xbf16>, vector<24x32xbf16>, vector<24x32xf32> -> vector<24x32xf32>
    %c0_121 = arith.constant 0 : index
    %c0_122 = arith.constant 0 : index
    %357 = vector.load %arg1[%c0_121, %c0_122] : memref<24x32xbf16, #tpu.memory_space<vmem>>, vector<24x32xbf16>
    %358 = arith.extf %357 : vector<24x32xbf16> to vector<24x32xf32>
    %359 = arith.addf %356, %358 : vector<24x32xf32>
    %c0_123 = arith.constant 0 : index
    %c0_124 = arith.constant 0 : index
    %360 = vector.load %arg6[%c0_123, %c0_124] : memref<24x32xf32, #tpu.memory_space<vmem>>, vector<24x32xf32>
    %c0_125 = arith.constant 0 : index
    %c0_126 = arith.constant 0 : index
    %361 = vector.load %arg7[%c0_125, %c0_126] : memref<24x32xf32, #tpu.memory_space<vmem>>, vector<24x32xf32>
    %c0_127 = arith.constant 0 : index
    %c0_128 = arith.constant 0 : index
    %362 = vector.load %arg8[%c0_127, %c0_128] : memref<24x24xf32, #tpu.memory_space<vmem>>, vector<24x24xf32>
    %c0_129 = arith.constant 0 : index
    %c0_130 = arith.constant 0 : index
    %c0_131 = arith.constant 0 : index
    %363 = vector.load %arg13[%c0_129, %c0_130, %c0_131] : memref<2x32x96xbf16, #tpu.memory_space<vmem>>, vector<1x32x96xbf16>
    %364 = vector.shape_cast %363 : vector<1x32x96xbf16> to vector<32x96xbf16>
    %c0_132 = arith.constant 0 : index
    %c0_133 = arith.constant 0 : index
    %c0_134 = arith.constant 0 : index
    %365 = vector.load %arg10[%c0_132, %c0_133, %c0_134] : memref<2x1x32xbf16, #tpu.memory_space<vmem>>, vector<1x1x32xbf16>
    %366 = vector.shape_cast %365 : vector<1x1x32xbf16> to vector<1x32xbf16>
    %367 = arith.mulf %359, %359 : vector<24x32xf32>
    %cst_135 = arith.constant dense<0.000000e+00> : vector<24xf32>
    %368 = vector.multi_reduction <add>, %367, %cst_135 [1] : vector<24x32xf32> to vector<24xf32>
    %369 = vector.shape_cast %368 : vector<24xf32> to vector<24x1xf32>
    %cst_136 = arith.constant 3.200000e+01 : f32
    %370 = vector.broadcast %cst_136 : f32 to vector<24x1xf32>
    %371 = arith.divf %369, %370 : vector<24x1xf32>
    %cst_137 = arith.constant 9.99999997E-7 : f32
    %372 = vector.broadcast %cst_137 : f32 to vector<24x1xf32>
    %373 = arith.addf %371, %372 : vector<24x1xf32>
    %374 = math.rsqrt %373 : vector<24x1xf32>
    %375 = vector.broadcast %374 : vector<24x1xf32> to vector<24x32xf32>
    %376 = arith.mulf %359, %375 : vector<24x32xf32>
    %377 = arith.extf %366 : vector<1x32xbf16> to vector<1x32xf32>
    %378 = vector.broadcast %377 : vector<1x32xf32> to vector<24x32xf32>
    %379 = arith.mulf %376, %378 : vector<24x32xf32>
    %380 = arith.truncf %379 : vector<24x32xf32> to vector<24x32xbf16>
    %cst_138 = arith.constant dense<0.000000e+00> : vector<24x96xf32>
    %381 = tpu.matmul %380, %364, %cst_138 {dimension_numbers = #tpu.dot_dimension_numbers<[1], [0], [0], [1], [0, 0, 1, 1], [], []>} : vector<24x32xbf16>, vector<32x96xbf16>, vector<24x96xf32> -> vector<24x96xf32>
    %c0_139 = arith.constant 0 : index
    %c0_140 = arith.constant 0 : index
    %c0_141 = arith.constant 0 : index
    %382 = vector.load %arg14[%c0_139, %c0_140, %c0_141] : memref<2x1x96xf32, #tpu.memory_space<vmem>>, vector<1x1x96xf32>
    %383 = vector.shape_cast %382 : vector<1x1x96xf32> to vector<1x96xf32>
    %384 = vector.broadcast %383 : vector<1x96xf32> to vector<24x96xf32>
    %385 = arith.addf %381, %384 : vector<24x96xf32>
    %386 = vector.extract_strided_slice %385 {offsets = [0, 0], sizes = [24, 32], strides = [1, 1]} : vector<24x96xf32> to vector<24x32xf32>
    %387 = vector.extract_strided_slice %385 {offsets = [0, 32], sizes = [24, 32], strides = [1, 1]} : vector<24x96xf32> to vector<24x32xf32>
    %388 = vector.extract_strided_slice %385 {offsets = [0, 64], sizes = [24, 32], strides = [1, 1]} : vector<24x96xf32> to vector<24x32xf32>
    %389 = arith.mulf %386, %360 : vector<24x32xf32>
    %390 = arith.truncf %386 : vector<24x32xf32> to vector<24x32xbf16>
    %cst_142 = arith.constant dense<0.000000e+00> : vector<24x32xf32>
    %391 = tpu.matmul %390, %0, %cst_142 {dimension_numbers = #tpu.dot_dimension_numbers<[1], [0], [0], [1], [0, 0, 1, 1], [], []>} : vector<24x32xbf16>, vector<32x32xbf16>, vector<24x32xf32> -> vector<24x32xf32>
    %392 = arith.mulf %391, %361 : vector<24x32xf32>
    %393 = arith.addf %389, %392 : vector<24x32xf32>
    %394 = arith.mulf %387, %360 : vector<24x32xf32>
    %395 = arith.truncf %387 : vector<24x32xf32> to vector<24x32xbf16>
    %cst_143 = arith.constant dense<0.000000e+00> : vector<24x32xf32>
    %396 = tpu.matmul %395, %0, %cst_143 {dimension_numbers = #tpu.dot_dimension_numbers<[1], [0], [0], [1], [0, 0, 1, 1], [], []>} : vector<24x32xbf16>, vector<32x32xbf16>, vector<24x32xf32> -> vector<24x32xf32>
    %397 = arith.mulf %396, %361 : vector<24x32xf32>
    %398 = arith.addf %394, %397 : vector<24x32xf32>
    %c0_144 = arith.constant 0 : index
    %c0_145 = arith.constant 0 : index
    %c0_146 = arith.constant 0 : index
    %399 = vector.load %arg15[%c0_144, %c0_145, %c0_146] : memref<2x32x32xbf16, #tpu.memory_space<vmem>>, vector<1x32x32xbf16>
    %400 = vector.shape_cast %399 : vector<1x32x32xbf16> to vector<32x32xbf16>
    %401 = vector.extract_strided_slice %393 {offsets = [0, 0], sizes = [24, 8], strides = [1, 1]} : vector<24x32xf32> to vector<24x8xf32>
    %402 = vector.extract_strided_slice %398 {offsets = [0, 0], sizes = [24, 8], strides = [1, 1]} : vector<24x32xf32> to vector<24x8xf32>
    %403 = arith.truncf %401 : vector<24x8xf32> to vector<24x8xbf16>
    %404 = arith.truncf %402 : vector<24x8xf32> to vector<24x8xbf16>
    %cst_147 = arith.constant dense<0.000000e+00> : vector<24x24xf32>
    %405 = tpu.matmul %403, %404, %cst_147 {dimension_numbers = #tpu.dot_dimension_numbers<[1], [1], [0], [0], [0, 0, 1, 0], [], []>} : vector<24x8xbf16>, vector<24x8xbf16>, vector<24x24xf32> -> vector<24x24xf32>
    %406 = arith.addf %405, %362 : vector<24x24xf32>
    %cst_148 = arith.constant dense<0xFF800000> : vector<24xf32>
    %407 = vector.multi_reduction <maximumf>, %406, %cst_148 [1] : vector<24x24xf32> to vector<24xf32>
    %408 = vector.shape_cast %407 : vector<24xf32> to vector<24x1xf32>
    %409 = vector.broadcast %408 : vector<24x1xf32> to vector<24x24xf32>
    %410 = arith.subf %406, %409 : vector<24x24xf32>
    %411 = math.exp %410 : vector<24x24xf32>
    %cst_149 = arith.constant dense<0.000000e+00> : vector<24xf32>
    %412 = vector.multi_reduction <add>, %411, %cst_149 [1] : vector<24x24xf32> to vector<24xf32>
    %413 = vector.shape_cast %412 : vector<24xf32> to vector<24x1xf32>
    %414 = tpu.reciprocal %413 {approx = true} : vector<24x1xf32> -> vector<24x1xf32>
    %415 = vector.broadcast %414 : vector<24x1xf32> to vector<24x24xf32>
    %416 = arith.mulf %411, %415 : vector<24x24xf32>
    %417 = vector.extract_strided_slice %388 {offsets = [0, 0], sizes = [24, 8], strides = [1, 1]} : vector<24x32xf32> to vector<24x8xf32>
    %418 = arith.truncf %416 : vector<24x24xf32> to vector<24x24xbf16>
    %419 = arith.truncf %417 : vector<24x8xf32> to vector<24x8xbf16>
    %cst_150 = arith.constant dense<0.000000e+00> : vector<24x8xf32>
    %420 = tpu.matmul %418, %419, %cst_150 {dimension_numbers = #tpu.dot_dimension_numbers<[1], [0], [0], [1], [0, 0, 1, 1], [], []>} : vector<24x24xbf16>, vector<24x8xbf16>, vector<24x8xf32> -> vector<24x8xf32>
    %421 = vector.extract_strided_slice %400 {offsets = [0, 0], sizes = [8, 32], strides = [1, 1]} : vector<32x32xbf16> to vector<8x32xbf16>
    %422 = arith.truncf %420 : vector<24x8xf32> to vector<24x8xbf16>
    %cst_151 = arith.constant dense<0.000000e+00> : vector<24x32xf32>
    %423 = tpu.matmul %422, %421, %cst_151 {dimension_numbers = #tpu.dot_dimension_numbers<[1], [0], [0], [1], [0, 0, 1, 1], [], []>} : vector<24x8xbf16>, vector<8x32xbf16>, vector<24x32xf32> -> vector<24x32xf32>
    %424 = arith.addf %359, %423 : vector<24x32xf32>
    %425 = vector.extract_strided_slice %393 {offsets = [0, 8], sizes = [24, 8], strides = [1, 1]} : vector<24x32xf32> to vector<24x8xf32>
    %426 = vector.extract_strided_slice %398 {offsets = [0, 8], sizes = [24, 8], strides = [1, 1]} : vector<24x32xf32> to vector<24x8xf32>
    %427 = arith.truncf %425 : vector<24x8xf32> to vector<24x8xbf16>
    %428 = arith.truncf %426 : vector<24x8xf32> to vector<24x8xbf16>
    %cst_152 = arith.constant dense<0.000000e+00> : vector<24x24xf32>
    %429 = tpu.matmul %427, %428, %cst_152 {dimension_numbers = #tpu.dot_dimension_numbers<[1], [1], [0], [0], [0, 0, 1, 0], [], []>} : vector<24x8xbf16>, vector<24x8xbf16>, vector<24x24xf32> -> vector<24x24xf32>
    %430 = arith.addf %429, %362 : vector<24x24xf32>
    %cst_153 = arith.constant dense<0xFF800000> : vector<24xf32>
    %431 = vector.multi_reduction <maximumf>, %430, %cst_153 [1] : vector<24x24xf32> to vector<24xf32>
    %432 = vector.shape_cast %431 : vector<24xf32> to vector<24x1xf32>
    %433 = vector.broadcast %432 : vector<24x1xf32> to vector<24x24xf32>
    %434 = arith.subf %430, %433 : vector<24x24xf32>
    %435 = math.exp %434 : vector<24x24xf32>
    %cst_154 = arith.constant dense<0.000000e+00> : vector<24xf32>
    %436 = vector.multi_reduction <add>, %435, %cst_154 [1] : vector<24x24xf32> to vector<24xf32>
    %437 = vector.shape_cast %436 : vector<24xf32> to vector<24x1xf32>
    %438 = tpu.reciprocal %437 {approx = true} : vector<24x1xf32> -> vector<24x1xf32>
    %439 = vector.broadcast %438 : vector<24x1xf32> to vector<24x24xf32>
    %440 = arith.mulf %435, %439 : vector<24x24xf32>
    %441 = vector.extract_strided_slice %388 {offsets = [0, 8], sizes = [24, 8], strides = [1, 1]} : vector<24x32xf32> to vector<24x8xf32>
    %442 = arith.truncf %440 : vector<24x24xf32> to vector<24x24xbf16>
    %443 = arith.truncf %441 : vector<24x8xf32> to vector<24x8xbf16>
    %cst_155 = arith.constant dense<0.000000e+00> : vector<24x8xf32>
    %444 = tpu.matmul %442, %443, %cst_155 {dimension_numbers = #tpu.dot_dimension_numbers<[1], [0], [0], [1], [0, 0, 1, 1], [], []>} : vector<24x24xbf16>, vector<24x8xbf16>, vector<24x8xf32> -> vector<24x8xf32>
    %445 = vector.extract_strided_slice %400 {offsets = [8, 0], sizes = [8, 32], strides = [1, 1]} : vector<32x32xbf16> to vector<8x32xbf16>
    %446 = arith.truncf %444 : vector<24x8xf32> to vector<24x8xbf16>
    %cst_156 = arith.constant dense<0.000000e+00> : vector<24x32xf32>
    %447 = tpu.matmul %446, %445, %cst_156 {dimension_numbers = #tpu.dot_dimension_numbers<[1], [0], [0], [1], [0, 0, 1, 1], [], []>} : vector<24x8xbf16>, vector<8x32xbf16>, vector<24x32xf32> -> vector<24x32xf32>
    %448 = arith.addf %424, %447 : vector<24x32xf32>
    %449 = vector.extract_strided_slice %393 {offsets = [0, 16], sizes = [24, 8], strides = [1, 1]} : vector<24x32xf32> to vector<24x8xf32>
    %450 = vector.extract_strided_slice %398 {offsets = [0, 16], sizes = [24, 8], strides = [1, 1]} : vector<24x32xf32> to vector<24x8xf32>
    %451 = arith.truncf %449 : vector<24x8xf32> to vector<24x8xbf16>
    %452 = arith.truncf %450 : vector<24x8xf32> to vector<24x8xbf16>
    %cst_157 = arith.constant dense<0.000000e+00> : vector<24x24xf32>
    %453 = tpu.matmul %451, %452, %cst_157 {dimension_numbers = #tpu.dot_dimension_numbers<[1], [1], [0], [0], [0, 0, 1, 0], [], []>} : vector<24x8xbf16>, vector<24x8xbf16>, vector<24x24xf32> -> vector<24x24xf32>
    %454 = arith.addf %453, %362 : vector<24x24xf32>
    %cst_158 = arith.constant dense<0xFF800000> : vector<24xf32>
    %455 = vector.multi_reduction <maximumf>, %454, %cst_158 [1] : vector<24x24xf32> to vector<24xf32>
    %456 = vector.shape_cast %455 : vector<24xf32> to vector<24x1xf32>
    %457 = vector.broadcast %456 : vector<24x1xf32> to vector<24x24xf32>
    %458 = arith.subf %454, %457 : vector<24x24xf32>
    %459 = math.exp %458 : vector<24x24xf32>
    %cst_159 = arith.constant dense<0.000000e+00> : vector<24xf32>
    %460 = vector.multi_reduction <add>, %459, %cst_159 [1] : vector<24x24xf32> to vector<24xf32>
    %461 = vector.shape_cast %460 : vector<24xf32> to vector<24x1xf32>
    %462 = tpu.reciprocal %461 {approx = true} : vector<24x1xf32> -> vector<24x1xf32>
    %463 = vector.broadcast %462 : vector<24x1xf32> to vector<24x24xf32>
    %464 = arith.mulf %459, %463 : vector<24x24xf32>
    %465 = vector.extract_strided_slice %388 {offsets = [0, 16], sizes = [24, 8], strides = [1, 1]} : vector<24x32xf32> to vector<24x8xf32>
    %466 = arith.truncf %464 : vector<24x24xf32> to vector<24x24xbf16>
    %467 = arith.truncf %465 : vector<24x8xf32> to vector<24x8xbf16>
    %cst_160 = arith.constant dense<0.000000e+00> : vector<24x8xf32>
    %468 = tpu.matmul %466, %467, %cst_160 {dimension_numbers = #tpu.dot_dimension_numbers<[1], [0], [0], [1], [0, 0, 1, 1], [], []>} : vector<24x24xbf16>, vector<24x8xbf16>, vector<24x8xf32> -> vector<24x8xf32>
    %469 = vector.extract_strided_slice %400 {offsets = [16, 0], sizes = [8, 32], strides = [1, 1]} : vector<32x32xbf16> to vector<8x32xbf16>
    %470 = arith.truncf %468 : vector<24x8xf32> to vector<24x8xbf16>
    %cst_161 = arith.constant dense<0.000000e+00> : vector<24x32xf32>
    %471 = tpu.matmul %470, %469, %cst_161 {dimension_numbers = #tpu.dot_dimension_numbers<[1], [0], [0], [1], [0, 0, 1, 1], [], []>} : vector<24x8xbf16>, vector<8x32xbf16>, vector<24x32xf32> -> vector<24x32xf32>
    %472 = arith.addf %448, %471 : vector<24x32xf32>
    %473 = vector.extract_strided_slice %393 {offsets = [0, 24], sizes = [24, 8], strides = [1, 1]} : vector<24x32xf32> to vector<24x8xf32>
    %474 = vector.extract_strided_slice %398 {offsets = [0, 24], sizes = [24, 8], strides = [1, 1]} : vector<24x32xf32> to vector<24x8xf32>
    %475 = arith.truncf %473 : vector<24x8xf32> to vector<24x8xbf16>
    %476 = arith.truncf %474 : vector<24x8xf32> to vector<24x8xbf16>
    %cst_162 = arith.constant dense<0.000000e+00> : vector<24x24xf32>
    %477 = tpu.matmul %475, %476, %cst_162 {dimension_numbers = #tpu.dot_dimension_numbers<[1], [1], [0], [0], [0, 0, 1, 0], [], []>} : vector<24x8xbf16>, vector<24x8xbf16>, vector<24x24xf32> -> vector<24x24xf32>
    %478 = arith.addf %477, %362 : vector<24x24xf32>
    %cst_163 = arith.constant dense<0xFF800000> : vector<24xf32>
    %479 = vector.multi_reduction <maximumf>, %478, %cst_163 [1] : vector<24x24xf32> to vector<24xf32>
    %480 = vector.shape_cast %479 : vector<24xf32> to vector<24x1xf32>
    %481 = vector.broadcast %480 : vector<24x1xf32> to vector<24x24xf32>
    %482 = arith.subf %478, %481 : vector<24x24xf32>
    %483 = math.exp %482 : vector<24x24xf32>
    %cst_164 = arith.constant dense<0.000000e+00> : vector<24xf32>
    %484 = vector.multi_reduction <add>, %483, %cst_164 [1] : vector<24x24xf32> to vector<24xf32>
    %485 = vector.shape_cast %484 : vector<24xf32> to vector<24x1xf32>
    %486 = tpu.reciprocal %485 {approx = true} : vector<24x1xf32> -> vector<24x1xf32>
    %487 = vector.broadcast %486 : vector<24x1xf32> to vector<24x24xf32>
    %488 = arith.mulf %483, %487 : vector<24x24xf32>
    %489 = vector.extract_strided_slice %388 {offsets = [0, 24], sizes = [24, 8], strides = [1, 1]} : vector<24x32xf32> to vector<24x8xf32>
    %490 = arith.truncf %488 : vector<24x24xf32> to vector<24x24xbf16>
    %491 = arith.truncf %489 : vector<24x8xf32> to vector<24x8xbf16>
    %cst_165 = arith.constant dense<0.000000e+00> : vector<24x8xf32>
    %492 = tpu.matmul %490, %491, %cst_165 {dimension_numbers = #tpu.dot_dimension_numbers<[1], [0], [0], [1], [0, 0, 1, 1], [], []>} : vector<24x24xbf16>, vector<24x8xbf16>, vector<24x8xf32> -> vector<24x8xf32>
    %493 = vector.extract_strided_slice %400 {offsets = [24, 0], sizes = [8, 32], strides = [1, 1]} : vector<32x32xbf16> to vector<8x32xbf16>
    %494 = arith.truncf %492 : vector<24x8xf32> to vector<24x8xbf16>
    %cst_166 = arith.constant dense<0.000000e+00> : vector<24x32xf32>
    %495 = tpu.matmul %494, %493, %cst_166 {dimension_numbers = #tpu.dot_dimension_numbers<[1], [0], [0], [1], [0, 0, 1, 1], [], []>} : vector<24x8xbf16>, vector<8x32xbf16>, vector<24x32xf32> -> vector<24x32xf32>
    %496 = arith.addf %472, %495 : vector<24x32xf32>
    %c0_167 = arith.constant 0 : index
    %c0_168 = arith.constant 0 : index
    %c0_169 = arith.constant 0 : index
    %497 = vector.load %arg11[%c0_167, %c0_168, %c0_169] : memref<2x1x32xbf16, #tpu.memory_space<vmem>>, vector<1x1x32xbf16>
    %498 = vector.shape_cast %497 : vector<1x1x32xbf16> to vector<1x32xbf16>
    %499 = arith.mulf %496, %496 : vector<24x32xf32>
    %cst_170 = arith.constant dense<0.000000e+00> : vector<24xf32>
    %500 = vector.multi_reduction <add>, %499, %cst_170 [1] : vector<24x32xf32> to vector<24xf32>
    %501 = vector.shape_cast %500 : vector<24xf32> to vector<24x1xf32>
    %cst_171 = arith.constant 3.200000e+01 : f32
    %502 = vector.broadcast %cst_171 : f32 to vector<24x1xf32>
    %503 = arith.divf %501, %502 : vector<24x1xf32>
    %cst_172 = arith.constant 9.99999997E-7 : f32
    %504 = vector.broadcast %cst_172 : f32 to vector<24x1xf32>
    %505 = arith.addf %503, %504 : vector<24x1xf32>
    %506 = math.rsqrt %505 : vector<24x1xf32>
    %507 = vector.broadcast %506 : vector<24x1xf32> to vector<24x32xf32>
    %508 = arith.mulf %496, %507 : vector<24x32xf32>
    %509 = arith.extf %498 : vector<1x32xbf16> to vector<1x32xf32>
    %510 = vector.broadcast %509 : vector<1x32xf32> to vector<24x32xf32>
    %511 = arith.mulf %508, %510 : vector<24x32xf32>
    %512 = arith.truncf %511 : vector<24x32xf32> to vector<24x32xbf16>
    %c0_173 = arith.constant 0 : index
    %c0_174 = arith.constant 0 : index
    %c0_175 = arith.constant 0 : index
    %513 = vector.load %arg16[%c0_173, %c0_174, %c0_175] : memref<2x32x128xbf16, #tpu.memory_space<vmem>>, vector<1x32x128xbf16>
    %514 = vector.shape_cast %513 : vector<1x32x128xbf16> to vector<32x128xbf16>
    %cst_176 = arith.constant dense<0.000000e+00> : vector<24x128xf32>
    %515 = tpu.matmul %512, %514, %cst_176 {dimension_numbers = #tpu.dot_dimension_numbers<[1], [0], [0], [1], [0, 0, 1, 1], [], []>} : vector<24x32xbf16>, vector<32x128xbf16>, vector<24x128xf32> -> vector<24x128xf32>
    %516 = vector.extract_strided_slice %515 {offsets = [0, 0], sizes = [24, 64], strides = [1, 1]} : vector<24x128xf32> to vector<24x64xf32>
    %517 = vector.extract_strided_slice %515 {offsets = [0, 64], sizes = [24, 64], strides = [1, 1]} : vector<24x128xf32> to vector<24x64xf32>
    %518 = arith.negf %516 : vector<24x64xf32>
    %519 = math.exp %518 : vector<24x64xf32>
    %cst_177 = arith.constant 1.000000e+00 : f32
    %520 = vector.broadcast %cst_177 : f32 to vector<24x64xf32>
    %521 = arith.addf %520, %519 : vector<24x64xf32>
    %522 = arith.divf %520, %521 : vector<24x64xf32>
    %523 = arith.mulf %516, %522 : vector<24x64xf32>
    %524 = arith.mulf %523, %517 : vector<24x64xf32>
    %c0_178 = arith.constant 0 : index
    %c0_179 = arith.constant 0 : index
    %c0_180 = arith.constant 0 : index
    %525 = vector.load %arg17[%c0_178, %c0_179, %c0_180] : memref<2x64x32xbf16, #tpu.memory_space<vmem>>, vector<1x64x32xbf16>
    %526 = vector.shape_cast %525 : vector<1x64x32xbf16> to vector<64x32xbf16>
    %527 = arith.truncf %524 : vector<24x64xf32> to vector<24x64xbf16>
    %cst_181 = arith.constant dense<0.000000e+00> : vector<24x32xf32>
    %528 = tpu.matmul %527, %526, %cst_181 {dimension_numbers = #tpu.dot_dimension_numbers<[1], [0], [0], [1], [0, 0, 1, 1], [], []>} : vector<24x64xbf16>, vector<64x32xbf16>, vector<24x32xf32> -> vector<24x32xf32>
    %529 = arith.addf %496, %528 : vector<24x32xf32>
    %c1_182 = arith.constant 1 : index
    %c0_183 = arith.constant 0 : index
    %c0_184 = arith.constant 0 : index
    %530 = vector.load %arg13[%c1_182, %c0_183, %c0_184] : memref<2x32x96xbf16, #tpu.memory_space<vmem>>, vector<1x32x96xbf16>
    %531 = vector.shape_cast %530 : vector<1x32x96xbf16> to vector<32x96xbf16>
    %c1_185 = arith.constant 1 : index
    %c0_186 = arith.constant 0 : index
    %c0_187 = arith.constant 0 : index
    %532 = vector.load %arg10[%c1_185, %c0_186, %c0_187] : memref<2x1x32xbf16, #tpu.memory_space<vmem>>, vector<1x1x32xbf16>
    %533 = vector.shape_cast %532 : vector<1x1x32xbf16> to vector<1x32xbf16>
    %534 = arith.mulf %529, %529 : vector<24x32xf32>
    %cst_188 = arith.constant dense<0.000000e+00> : vector<24xf32>
    %535 = vector.multi_reduction <add>, %534, %cst_188 [1] : vector<24x32xf32> to vector<24xf32>
    %536 = vector.shape_cast %535 : vector<24xf32> to vector<24x1xf32>
    %cst_189 = arith.constant 3.200000e+01 : f32
    %537 = vector.broadcast %cst_189 : f32 to vector<24x1xf32>
    %538 = arith.divf %536, %537 : vector<24x1xf32>
    %cst_190 = arith.constant 9.99999997E-7 : f32
    %539 = vector.broadcast %cst_190 : f32 to vector<24x1xf32>
    %540 = arith.addf %538, %539 : vector<24x1xf32>
    %541 = math.rsqrt %540 : vector<24x1xf32>
    %542 = vector.broadcast %541 : vector<24x1xf32> to vector<24x32xf32>
    %543 = arith.mulf %529, %542 : vector<24x32xf32>
    %544 = arith.extf %533 : vector<1x32xbf16> to vector<1x32xf32>
    %545 = vector.broadcast %544 : vector<1x32xf32> to vector<24x32xf32>
    %546 = arith.mulf %543, %545 : vector<24x32xf32>
    %547 = arith.truncf %546 : vector<24x32xf32> to vector<24x32xbf16>
    %cst_191 = arith.constant dense<0.000000e+00> : vector<24x96xf32>
    %548 = tpu.matmul %547, %531, %cst_191 {dimension_numbers = #tpu.dot_dimension_numbers<[1], [0], [0], [1], [0, 0, 1, 1], [], []>} : vector<24x32xbf16>, vector<32x96xbf16>, vector<24x96xf32> -> vector<24x96xf32>
    %c1_192 = arith.constant 1 : index
    %c0_193 = arith.constant 0 : index
    %c0_194 = arith.constant 0 : index
    %549 = vector.load %arg14[%c1_192, %c0_193, %c0_194] : memref<2x1x96xf32, #tpu.memory_space<vmem>>, vector<1x1x96xf32>
    %550 = vector.shape_cast %549 : vector<1x1x96xf32> to vector<1x96xf32>
    %551 = vector.broadcast %550 : vector<1x96xf32> to vector<24x96xf32>
    %552 = arith.addf %548, %551 : vector<24x96xf32>
    %553 = vector.extract_strided_slice %552 {offsets = [0, 0], sizes = [24, 32], strides = [1, 1]} : vector<24x96xf32> to vector<24x32xf32>
    %554 = vector.extract_strided_slice %552 {offsets = [0, 32], sizes = [24, 32], strides = [1, 1]} : vector<24x96xf32> to vector<24x32xf32>
    %555 = vector.extract_strided_slice %552 {offsets = [0, 64], sizes = [24, 32], strides = [1, 1]} : vector<24x96xf32> to vector<24x32xf32>
    %556 = arith.mulf %553, %360 : vector<24x32xf32>
    %557 = arith.truncf %553 : vector<24x32xf32> to vector<24x32xbf16>
    %cst_195 = arith.constant dense<0.000000e+00> : vector<24x32xf32>
    %558 = tpu.matmul %557, %0, %cst_195 {dimension_numbers = #tpu.dot_dimension_numbers<[1], [0], [0], [1], [0, 0, 1, 1], [], []>} : vector<24x32xbf16>, vector<32x32xbf16>, vector<24x32xf32> -> vector<24x32xf32>
    %559 = arith.mulf %558, %361 : vector<24x32xf32>
    %560 = arith.addf %556, %559 : vector<24x32xf32>
    %561 = arith.mulf %554, %360 : vector<24x32xf32>
    %562 = arith.truncf %554 : vector<24x32xf32> to vector<24x32xbf16>
    %cst_196 = arith.constant dense<0.000000e+00> : vector<24x32xf32>
    %563 = tpu.matmul %562, %0, %cst_196 {dimension_numbers = #tpu.dot_dimension_numbers<[1], [0], [0], [1], [0, 0, 1, 1], [], []>} : vector<24x32xbf16>, vector<32x32xbf16>, vector<24x32xf32> -> vector<24x32xf32>
    %564 = arith.mulf %563, %361 : vector<24x32xf32>
    %565 = arith.addf %561, %564 : vector<24x32xf32>
    %c1_197 = arith.constant 1 : index
    %c0_198 = arith.constant 0 : index
    %c0_199 = arith.constant 0 : index
    %566 = vector.load %arg15[%c1_197, %c0_198, %c0_199] : memref<2x32x32xbf16, #tpu.memory_space<vmem>>, vector<1x32x32xbf16>
    %567 = vector.shape_cast %566 : vector<1x32x32xbf16> to vector<32x32xbf16>
    %568 = vector.extract_strided_slice %560 {offsets = [0, 0], sizes = [24, 8], strides = [1, 1]} : vector<24x32xf32> to vector<24x8xf32>
    %569 = vector.extract_strided_slice %565 {offsets = [0, 0], sizes = [24, 8], strides = [1, 1]} : vector<24x32xf32> to vector<24x8xf32>
    %570 = arith.truncf %568 : vector<24x8xf32> to vector<24x8xbf16>
    %571 = arith.truncf %569 : vector<24x8xf32> to vector<24x8xbf16>
    %cst_200 = arith.constant dense<0.000000e+00> : vector<24x24xf32>
    %572 = tpu.matmul %570, %571, %cst_200 {dimension_numbers = #tpu.dot_dimension_numbers<[1], [1], [0], [0], [0, 0, 1, 0], [], []>} : vector<24x8xbf16>, vector<24x8xbf16>, vector<24x24xf32> -> vector<24x24xf32>
    %573 = arith.addf %572, %362 : vector<24x24xf32>
    %cst_201 = arith.constant dense<0xFF800000> : vector<24xf32>
    %574 = vector.multi_reduction <maximumf>, %573, %cst_201 [1] : vector<24x24xf32> to vector<24xf32>
    %575 = vector.shape_cast %574 : vector<24xf32> to vector<24x1xf32>
    %576 = vector.broadcast %575 : vector<24x1xf32> to vector<24x24xf32>
    %577 = arith.subf %573, %576 : vector<24x24xf32>
    %578 = math.exp %577 : vector<24x24xf32>
    %cst_202 = arith.constant dense<0.000000e+00> : vector<24xf32>
    %579 = vector.multi_reduction <add>, %578, %cst_202 [1] : vector<24x24xf32> to vector<24xf32>
    %580 = vector.shape_cast %579 : vector<24xf32> to vector<24x1xf32>
    %581 = tpu.reciprocal %580 {approx = true} : vector<24x1xf32> -> vector<24x1xf32>
    %582 = vector.broadcast %581 : vector<24x1xf32> to vector<24x24xf32>
    %583 = arith.mulf %578, %582 : vector<24x24xf32>
    %584 = vector.extract_strided_slice %555 {offsets = [0, 0], sizes = [24, 8], strides = [1, 1]} : vector<24x32xf32> to vector<24x8xf32>
    %585 = arith.truncf %583 : vector<24x24xf32> to vector<24x24xbf16>
    %586 = arith.truncf %584 : vector<24x8xf32> to vector<24x8xbf16>
    %cst_203 = arith.constant dense<0.000000e+00> : vector<24x8xf32>
    %587 = tpu.matmul %585, %586, %cst_203 {dimension_numbers = #tpu.dot_dimension_numbers<[1], [0], [0], [1], [0, 0, 1, 1], [], []>} : vector<24x24xbf16>, vector<24x8xbf16>, vector<24x8xf32> -> vector<24x8xf32>
    %588 = vector.extract_strided_slice %567 {offsets = [0, 0], sizes = [8, 32], strides = [1, 1]} : vector<32x32xbf16> to vector<8x32xbf16>
    %589 = arith.truncf %587 : vector<24x8xf32> to vector<24x8xbf16>
    %cst_204 = arith.constant dense<0.000000e+00> : vector<24x32xf32>
    %590 = tpu.matmul %589, %588, %cst_204 {dimension_numbers = #tpu.dot_dimension_numbers<[1], [0], [0], [1], [0, 0, 1, 1], [], []>} : vector<24x8xbf16>, vector<8x32xbf16>, vector<24x32xf32> -> vector<24x32xf32>
    %591 = arith.addf %529, %590 : vector<24x32xf32>
    %592 = vector.extract_strided_slice %560 {offsets = [0, 8], sizes = [24, 8], strides = [1, 1]} : vector<24x32xf32> to vector<24x8xf32>
    %593 = vector.extract_strided_slice %565 {offsets = [0, 8], sizes = [24, 8], strides = [1, 1]} : vector<24x32xf32> to vector<24x8xf32>
    %594 = arith.truncf %592 : vector<24x8xf32> to vector<24x8xbf16>
    %595 = arith.truncf %593 : vector<24x8xf32> to vector<24x8xbf16>
    %cst_205 = arith.constant dense<0.000000e+00> : vector<24x24xf32>
    %596 = tpu.matmul %594, %595, %cst_205 {dimension_numbers = #tpu.dot_dimension_numbers<[1], [1], [0], [0], [0, 0, 1, 0], [], []>} : vector<24x8xbf16>, vector<24x8xbf16>, vector<24x24xf32> -> vector<24x24xf32>
    %597 = arith.addf %596, %362 : vector<24x24xf32>
    %cst_206 = arith.constant dense<0xFF800000> : vector<24xf32>
    %598 = vector.multi_reduction <maximumf>, %597, %cst_206 [1] : vector<24x24xf32> to vector<24xf32>
    %599 = vector.shape_cast %598 : vector<24xf32> to vector<24x1xf32>
    %600 = vector.broadcast %599 : vector<24x1xf32> to vector<24x24xf32>
    %601 = arith.subf %597, %600 : vector<24x24xf32>
    %602 = math.exp %601 : vector<24x24xf32>
    %cst_207 = arith.constant dense<0.000000e+00> : vector<24xf32>
    %603 = vector.multi_reduction <add>, %602, %cst_207 [1] : vector<24x24xf32> to vector<24xf32>
    %604 = vector.shape_cast %603 : vector<24xf32> to vector<24x1xf32>
    %605 = tpu.reciprocal %604 {approx = true} : vector<24x1xf32> -> vector<24x1xf32>
    %606 = vector.broadcast %605 : vector<24x1xf32> to vector<24x24xf32>
    %607 = arith.mulf %602, %606 : vector<24x24xf32>
    %608 = vector.extract_strided_slice %555 {offsets = [0, 8], sizes = [24, 8], strides = [1, 1]} : vector<24x32xf32> to vector<24x8xf32>
    %609 = arith.truncf %607 : vector<24x24xf32> to vector<24x24xbf16>
    %610 = arith.truncf %608 : vector<24x8xf32> to vector<24x8xbf16>
    %cst_208 = arith.constant dense<0.000000e+00> : vector<24x8xf32>
    %611 = tpu.matmul %609, %610, %cst_208 {dimension_numbers = #tpu.dot_dimension_numbers<[1], [0], [0], [1], [0, 0, 1, 1], [], []>} : vector<24x24xbf16>, vector<24x8xbf16>, vector<24x8xf32> -> vector<24x8xf32>
    %612 = vector.extract_strided_slice %567 {offsets = [8, 0], sizes = [8, 32], strides = [1, 1]} : vector<32x32xbf16> to vector<8x32xbf16>
    %613 = arith.truncf %611 : vector<24x8xf32> to vector<24x8xbf16>
    %cst_209 = arith.constant dense<0.000000e+00> : vector<24x32xf32>
    %614 = tpu.matmul %613, %612, %cst_209 {dimension_numbers = #tpu.dot_dimension_numbers<[1], [0], [0], [1], [0, 0, 1, 1], [], []>} : vector<24x8xbf16>, vector<8x32xbf16>, vector<24x32xf32> -> vector<24x32xf32>
    %615 = arith.addf %591, %614 : vector<24x32xf32>
    %616 = vector.extract_strided_slice %560 {offsets = [0, 16], sizes = [24, 8], strides = [1, 1]} : vector<24x32xf32> to vector<24x8xf32>
    %617 = vector.extract_strided_slice %565 {offsets = [0, 16], sizes = [24, 8], strides = [1, 1]} : vector<24x32xf32> to vector<24x8xf32>
    %618 = arith.truncf %616 : vector<24x8xf32> to vector<24x8xbf16>
    %619 = arith.truncf %617 : vector<24x8xf32> to vector<24x8xbf16>
    %cst_210 = arith.constant dense<0.000000e+00> : vector<24x24xf32>
    %620 = tpu.matmul %618, %619, %cst_210 {dimension_numbers = #tpu.dot_dimension_numbers<[1], [1], [0], [0], [0, 0, 1, 0], [], []>} : vector<24x8xbf16>, vector<24x8xbf16>, vector<24x24xf32> -> vector<24x24xf32>
    %621 = arith.addf %620, %362 : vector<24x24xf32>
    %cst_211 = arith.constant dense<0xFF800000> : vector<24xf32>
    %622 = vector.multi_reduction <maximumf>, %621, %cst_211 [1] : vector<24x24xf32> to vector<24xf32>
    %623 = vector.shape_cast %622 : vector<24xf32> to vector<24x1xf32>
    %624 = vector.broadcast %623 : vector<24x1xf32> to vector<24x24xf32>
    %625 = arith.subf %621, %624 : vector<24x24xf32>
    %626 = math.exp %625 : vector<24x24xf32>
    %cst_212 = arith.constant dense<0.000000e+00> : vector<24xf32>
    %627 = vector.multi_reduction <add>, %626, %cst_212 [1] : vector<24x24xf32> to vector<24xf32>
    %628 = vector.shape_cast %627 : vector<24xf32> to vector<24x1xf32>
    %629 = tpu.reciprocal %628 {approx = true} : vector<24x1xf32> -> vector<24x1xf32>
    %630 = vector.broadcast %629 : vector<24x1xf32> to vector<24x24xf32>
    %631 = arith.mulf %626, %630 : vector<24x24xf32>
    %632 = vector.extract_strided_slice %555 {offsets = [0, 16], sizes = [24, 8], strides = [1, 1]} : vector<24x32xf32> to vector<24x8xf32>
    %633 = arith.truncf %631 : vector<24x24xf32> to vector<24x24xbf16>
    %634 = arith.truncf %632 : vector<24x8xf32> to vector<24x8xbf16>
    %cst_213 = arith.constant dense<0.000000e+00> : vector<24x8xf32>
    %635 = tpu.matmul %633, %634, %cst_213 {dimension_numbers = #tpu.dot_dimension_numbers<[1], [0], [0], [1], [0, 0, 1, 1], [], []>} : vector<24x24xbf16>, vector<24x8xbf16>, vector<24x8xf32> -> vector<24x8xf32>
    %636 = vector.extract_strided_slice %567 {offsets = [16, 0], sizes = [8, 32], strides = [1, 1]} : vector<32x32xbf16> to vector<8x32xbf16>
    %637 = arith.truncf %635 : vector<24x8xf32> to vector<24x8xbf16>
    %cst_214 = arith.constant dense<0.000000e+00> : vector<24x32xf32>
    %638 = tpu.matmul %637, %636, %cst_214 {dimension_numbers = #tpu.dot_dimension_numbers<[1], [0], [0], [1], [0, 0, 1, 1], [], []>} : vector<24x8xbf16>, vector<8x32xbf16>, vector<24x32xf32> -> vector<24x32xf32>
    %639 = arith.addf %615, %638 : vector<24x32xf32>
    %640 = vector.extract_strided_slice %560 {offsets = [0, 24], sizes = [24, 8], strides = [1, 1]} : vector<24x32xf32> to vector<24x8xf32>
    %641 = vector.extract_strided_slice %565 {offsets = [0, 24], sizes = [24, 8], strides = [1, 1]} : vector<24x32xf32> to vector<24x8xf32>
    %642 = arith.truncf %640 : vector<24x8xf32> to vector<24x8xbf16>
    %643 = arith.truncf %641 : vector<24x8xf32> to vector<24x8xbf16>
    %cst_215 = arith.constant dense<0.000000e+00> : vector<24x24xf32>
    %644 = tpu.matmul %642, %643, %cst_215 {dimension_numbers = #tpu.dot_dimension_numbers<[1], [1], [0], [0], [0, 0, 1, 0], [], []>} : vector<24x8xbf16>, vector<24x8xbf16>, vector<24x24xf32> -> vector<24x24xf32>
    %645 = arith.addf %644, %362 : vector<24x24xf32>
    %cst_216 = arith.constant dense<0xFF800000> : vector<24xf32>
    %646 = vector.multi_reduction <maximumf>, %645, %cst_216 [1] : vector<24x24xf32> to vector<24xf32>
    %647 = vector.shape_cast %646 : vector<24xf32> to vector<24x1xf32>
    %648 = vector.broadcast %647 : vector<24x1xf32> to vector<24x24xf32>
    %649 = arith.subf %645, %648 : vector<24x24xf32>
    %650 = math.exp %649 : vector<24x24xf32>
    %cst_217 = arith.constant dense<0.000000e+00> : vector<24xf32>
    %651 = vector.multi_reduction <add>, %650, %cst_217 [1] : vector<24x24xf32> to vector<24xf32>
    %652 = vector.shape_cast %651 : vector<24xf32> to vector<24x1xf32>
    %653 = tpu.reciprocal %652 {approx = true} : vector<24x1xf32> -> vector<24x1xf32>
    %654 = vector.broadcast %653 : vector<24x1xf32> to vector<24x24xf32>
    %655 = arith.mulf %650, %654 : vector<24x24xf32>
    %656 = vector.extract_strided_slice %555 {offsets = [0, 24], sizes = [24, 8], strides = [1, 1]} : vector<24x32xf32> to vector<24x8xf32>
    %657 = arith.truncf %655 : vector<24x24xf32> to vector<24x24xbf16>
    %658 = arith.truncf %656 : vector<24x8xf32> to vector<24x8xbf16>
    %cst_218 = arith.constant dense<0.000000e+00> : vector<24x8xf32>
    %659 = tpu.matmul %657, %658, %cst_218 {dimension_numbers = #tpu.dot_dimension_numbers<[1], [0], [0], [1], [0, 0, 1, 1], [], []>} : vector<24x24xbf16>, vector<24x8xbf16>, vector<24x8xf32> -> vector<24x8xf32>
    %660 = vector.extract_strided_slice %567 {offsets = [24, 0], sizes = [8, 32], strides = [1, 1]} : vector<32x32xbf16> to vector<8x32xbf16>
    %661 = arith.truncf %659 : vector<24x8xf32> to vector<24x8xbf16>
    %cst_219 = arith.constant dense<0.000000e+00> : vector<24x32xf32>
    %662 = tpu.matmul %661, %660, %cst_219 {dimension_numbers = #tpu.dot_dimension_numbers<[1], [0], [0], [1], [0, 0, 1, 1], [], []>} : vector<24x8xbf16>, vector<8x32xbf16>, vector<24x32xf32> -> vector<24x32xf32>
    %663 = arith.addf %639, %662 : vector<24x32xf32>
    %c1_220 = arith.constant 1 : index
    %c0_221 = arith.constant 0 : index
    %c0_222 = arith.constant 0 : index
    %664 = vector.load %arg11[%c1_220, %c0_221, %c0_222] : memref<2x1x32xbf16, #tpu.memory_space<vmem>>, vector<1x1x32xbf16>
    %665 = vector.shape_cast %664 : vector<1x1x32xbf16> to vector<1x32xbf16>
    %666 = arith.mulf %663, %663 : vector<24x32xf32>
    %cst_223 = arith.constant dense<0.000000e+00> : vector<24xf32>
    %667 = vector.multi_reduction <add>, %666, %cst_223 [1] : vector<24x32xf32> to vector<24xf32>
    %668 = vector.shape_cast %667 : vector<24xf32> to vector<24x1xf32>
    %cst_224 = arith.constant 3.200000e+01 : f32
    %669 = vector.broadcast %cst_224 : f32 to vector<24x1xf32>
    %670 = arith.divf %668, %669 : vector<24x1xf32>
    %cst_225 = arith.constant 9.99999997E-7 : f32
    %671 = vector.broadcast %cst_225 : f32 to vector<24x1xf32>
    %672 = arith.addf %670, %671 : vector<24x1xf32>
    %673 = math.rsqrt %672 : vector<24x1xf32>
    %674 = vector.broadcast %673 : vector<24x1xf32> to vector<24x32xf32>
    %675 = arith.mulf %663, %674 : vector<24x32xf32>
    %676 = arith.extf %665 : vector<1x32xbf16> to vector<1x32xf32>
    %677 = vector.broadcast %676 : vector<1x32xf32> to vector<24x32xf32>
    %678 = arith.mulf %675, %677 : vector<24x32xf32>
    %679 = arith.truncf %678 : vector<24x32xf32> to vector<24x32xbf16>
    %c1_226 = arith.constant 1 : index
    %c0_227 = arith.constant 0 : index
    %c0_228 = arith.constant 0 : index
    %680 = vector.load %arg16[%c1_226, %c0_227, %c0_228] : memref<2x32x128xbf16, #tpu.memory_space<vmem>>, vector<1x32x128xbf16>
    %681 = vector.shape_cast %680 : vector<1x32x128xbf16> to vector<32x128xbf16>
    %cst_229 = arith.constant dense<0.000000e+00> : vector<24x128xf32>
    %682 = tpu.matmul %679, %681, %cst_229 {dimension_numbers = #tpu.dot_dimension_numbers<[1], [0], [0], [1], [0, 0, 1, 1], [], []>} : vector<24x32xbf16>, vector<32x128xbf16>, vector<24x128xf32> -> vector<24x128xf32>
    %683 = vector.extract_strided_slice %682 {offsets = [0, 0], sizes = [24, 64], strides = [1, 1]} : vector<24x128xf32> to vector<24x64xf32>
    %684 = vector.extract_strided_slice %682 {offsets = [0, 64], sizes = [24, 64], strides = [1, 1]} : vector<24x128xf32> to vector<24x64xf32>
    %685 = arith.negf %683 : vector<24x64xf32>
    %686 = math.exp %685 : vector<24x64xf32>
    %cst_230 = arith.constant 1.000000e+00 : f32
    %687 = vector.broadcast %cst_230 : f32 to vector<24x64xf32>
    %688 = arith.addf %687, %686 : vector<24x64xf32>
    %689 = arith.divf %687, %688 : vector<24x64xf32>
    %690 = arith.mulf %683, %689 : vector<24x64xf32>
    %691 = arith.mulf %690, %684 : vector<24x64xf32>
    %c1_231 = arith.constant 1 : index
    %c0_232 = arith.constant 0 : index
    %c0_233 = arith.constant 0 : index
    %692 = vector.load %arg17[%c1_231, %c0_232, %c0_233] : memref<2x64x32xbf16, #tpu.memory_space<vmem>>, vector<1x64x32xbf16>
    %693 = vector.shape_cast %692 : vector<1x64x32xbf16> to vector<64x32xbf16>
    %694 = arith.truncf %691 : vector<24x64xf32> to vector<24x64xbf16>
    %cst_234 = arith.constant dense<0.000000e+00> : vector<24x32xf32>
    %695 = tpu.matmul %694, %693, %cst_234 {dimension_numbers = #tpu.dot_dimension_numbers<[1], [0], [0], [1], [0, 0, 1, 1], [], []>} : vector<24x64xbf16>, vector<64x32xbf16>, vector<24x32xf32> -> vector<24x32xf32>
    %696 = arith.addf %663, %695 : vector<24x32xf32>
    %c0_235 = arith.constant 0 : index
    %c0_236 = arith.constant 0 : index
    %697 = vector.load %arg18[%c0_235, %c0_236] : memref<1x32xbf16, #tpu.memory_space<vmem>>, vector<1x32xbf16>
    %698 = arith.mulf %696, %696 : vector<24x32xf32>
    %cst_237 = arith.constant dense<0.000000e+00> : vector<24xf32>
    %699 = vector.multi_reduction <add>, %698, %cst_237 [1] : vector<24x32xf32> to vector<24xf32>
    %700 = vector.shape_cast %699 : vector<24xf32> to vector<24x1xf32>
    %cst_238 = arith.constant 3.200000e+01 : f32
    %701 = vector.broadcast %cst_238 : f32 to vector<24x1xf32>
    %702 = arith.divf %700, %701 : vector<24x1xf32>
    %cst_239 = arith.constant 9.99999997E-7 : f32
    %703 = vector.broadcast %cst_239 : f32 to vector<24x1xf32>
    %704 = arith.addf %702, %703 : vector<24x1xf32>
    %705 = math.rsqrt %704 : vector<24x1xf32>
    %706 = vector.broadcast %705 : vector<24x1xf32> to vector<24x32xf32>
    %707 = arith.mulf %696, %706 : vector<24x32xf32>
    %708 = arith.extf %697 : vector<1x32xbf16> to vector<1x32xf32>
    %709 = vector.broadcast %708 : vector<1x32xf32> to vector<24x32xf32>
    %710 = arith.mulf %707, %709 : vector<24x32xf32>
    %c0_240 = arith.constant 0 : index
    %c0_241 = arith.constant 0 : index
    %711 = vector.load %arg19[%c0_240, %c0_241] : memref<32x128xbf16, #tpu.memory_space<vmem>>, vector<32x128xbf16>
    %712 = arith.truncf %710 : vector<24x32xf32> to vector<24x32xbf16>
    %cst_242 = arith.constant dense<0.000000e+00> : vector<24x128xf32>
    %713 = tpu.matmul %712, %711, %cst_242 {dimension_numbers = #tpu.dot_dimension_numbers<[1], [0], [0], [1], [0, 0, 1, 1], [], []>} : vector<24x32xbf16>, vector<32x128xbf16>, vector<24x128xf32> -> vector<24x128xf32>
    %714 = tpu.iota {dimensions = array<i32: 1>} : vector<24x128xi32>
    %c64_i32 = arith.constant 64 : i32
    %715 = vector.broadcast %c64_i32 : i32 to vector<24x128xi32>
    %716 = arith.cmpi sge, %714, %715 : vector<24x128xi32>
    %cst_243 = arith.constant -1.000000e+30 : f32
    %717 = vector.broadcast %cst_243 : f32 to vector<24x128xf32>
    %718 = arith.select %716, %717, %713 : vector<24x128xi1>, vector<24x128xf32>
    %cst_244 = arith.constant dense<0xFF800000> : vector<24xf32>
    %719 = vector.multi_reduction <maximumf>, %718, %cst_244 [1] : vector<24x128xf32> to vector<24xf32>
    %720 = vector.shape_cast %719 : vector<24xf32> to vector<24x1xf32>
    %721 = vector.broadcast %720 : vector<24x1xf32> to vector<24x128xf32>
    %722 = arith.subf %718, %721 : vector<24x128xf32>
    %723 = math.exp %722 : vector<24x128xf32>
    %cst_245 = arith.constant dense<0.000000e+00> : vector<24xf32>
    %724 = vector.multi_reduction <add>, %723, %cst_245 [1] : vector<24x128xf32> to vector<24xf32>
    %725 = vector.shape_cast %724 : vector<24xf32> to vector<24x1xf32>
    %726 = math.log %725 : vector<24x1xf32>
    %727 = arith.addf %720, %726 : vector<24x1xf32>
    %c0_246 = arith.constant 0 : index
    %c0_247 = arith.constant 0 : index
    %728 = vector.load %arg20[%c0_246, %c0_247] : memref<24x128xf32, #tpu.memory_space<vmem>>, vector<24x128xf32>
    %729 = arith.mulf %718, %728 : vector<24x128xf32>
    %cst_248 = arith.constant dense<0.000000e+00> : vector<24xf32>
    %730 = vector.multi_reduction <add>, %729, %cst_248 [1] : vector<24x128xf32> to vector<24xf32>
    %731 = vector.shape_cast %730 : vector<24xf32> to vector<24x1xf32>
    %cst_249 = arith.constant dense<0.000000e+00> : vector<24xf32>
    %732 = vector.multi_reduction <add>, %728, %cst_249 [1] : vector<24x128xf32> to vector<24xf32>
    %733 = vector.shape_cast %732 : vector<24xf32> to vector<24x1xf32>
    %734 = arith.subf %727, %731 : vector<24x1xf32>
    %735 = arith.mulf %734, %733 : vector<24x1xf32>
    %736 = vector.shape_cast %735 : vector<24x1xf32> to vector<1x24x1xf32>
    %cst_250 = arith.constant dense<0.000000e+00> : vector<1xf32>
    %737 = vector.multi_reduction <add>, %736, %cst_250 [1, 2] : vector<1x24x1xf32> to vector<1xf32>
    %738 = vector.shape_cast %737 : vector<1xf32> to vector<1x1x1xf32>
    %739 = vector.extract %738[0, 0, 0] : f32 from vector<1x1x1xf32>
    %740 = tpu.iota {dimensions = array<i32: 0>} : vector<24x128xi32>
    %c0_i32 = arith.constant 0 : i32
    %741 = vector.broadcast %c0_i32 : i32 to vector<24x128xi32>
    %742 = arith.cmpi eq, %740, %741 : vector<24x128xi32>
    %c64_i32_251 = arith.constant 64 : i32
    %743 = vector.broadcast %c64_i32_251 : i32 to vector<24x128xi32>
    %744 = arith.cmpi eq, %714, %743 : vector<24x128xi32>
    %745 = arith.andi %742, %744 : vector<24x128xi1>
    %746 = vector.broadcast %739 : f32 to vector<24x128xf32>
    %747 = arith.select %745, %746, %718 : vector<24x128xi1>, vector<24x128xf32>
    %c0_252 = arith.constant 0 : index
    %c0_253 = arith.constant 0 : index
    %748 = vector.load %arg21[%c0_252, %c0_253] : memref<24x128xf32, #tpu.memory_space<vmem>>, vector<24x128xf32>
    tpu.vector_store %arg21[%c0_252, %c0_253], %747 {strides = array<i32>} : memref<24x128xf32, #tpu.memory_space<vmem>>, vector<24x128xf32>,
    return
  }
}

</mosaic_0001>

<bundles_post_ra>
// kernel: eq.1
= control target key start
LH: loop header
LB: loop body
LE: loop exit
PB: predicated region body
PF: predicated region fallthrough
CT: control target
= control target key end

     0   :  { %vm8_vm0 = vcmask 97280   ;;  %vm14_vm1 = vcmask 195680   ;;  %s42_s0 = inlined_call_operand.vmem [shape: s32[2,12], index: 0, kind: input, shape index: {}]   ;;  %s43_s1 = inlined_call_operand.vmem [shape: s32[24], index: 1, kind: output, shape index: {}]  }
   0x1   :  { %v5_v0 = vld [vmem:[%s42_s0] sm:$0x3]  ;;  %s25_s0 = smov 12  }
   0x2   :  { %6 = vst [vmem:[#allocation1] sm:$0x3] %v5_v0 }
   0x9   :  { %v11_v1 = vld [vmem:[#allocation1 + $0x1] sm:$0x1]   ;;  %v7_v2 = vld [vmem:[#allocation1] sm:$0x1]  }
   0xa   :  { %12 = vrot.lane.b32.xlu0 %v11_v1, %s25_s0  ;;  %9 = vst.msk [vmem:[#allocation0] sm:$0x1] %vm8_vm0, %v7_v2  }
  0x7c   :  { %v13_v3 = vpop.permute.xlu0 %12  }
  0x7d   :  { %15 = vst.msk [vmem:[#allocation0] sm:$0x1] %vm14_vm1, %v13_v3  }
  0x84   :  { %v20_v4 = vld [vmem:[#allocation0] sm:$0x1] }
  0x85   :  { %23 = vst [vmem:[%s43_s1] sm:$0x1] %v20_v4 }

// kernel: icae_qwen_qa_forward.1
= control target key start
LH: loop header
LB: loop body
LE: loop exit
PB: predicated region body
PF: predicated region fallthrough
CT: control target
= control target key end

     0   :  { %vm96_vm0 = vcmask 261120   ;;  %v120_v22 = vlaneseq  ;;  %s9052_s29 = smov 96   ;;  %s9050_s22 = smov 32   ;;  %vm386_vm1 = vcmask 64512   ;;  %vm447_vm2 = vcmask 195584   ;;  %s9004_s0 = inlined_call_operand.vmem [shape: bf16[24,32], index: 0, kind: input, shape index: {}]   ;;  %s9005_s12 = inlined_call_operand.vmem [shape: bf16[2,32,96], index: 12, kind: input, shape index: {}]   ;;  %s9006_s10 = inlined_call_operand.vmem [shape: bf16[2,1,32], index: 10, kind: input, shape index: {}, may-alias: {10,11}]   ;;  %s9007_s9 = inlined_call_operand.vmem [shape: bf16[32,32], index: 9, kind: input, shape index: {}]   ;;  %s9008_s14 = inlined_call_operand.vmem [shape: f32[2,1,96], index: 14, kind: input, shape index: {}]   ;;  %s9009_s3 = inlined_call_operand.vmem [shape: f32[24,32], index: 3, kind: input, shape index: {}, may-alias: {3,6}]   ;;  %s9010_s4 = inlined_call_operand.vmem [shape: f32[24,32], index: 4, kind: input, shape index: {}, may-alias: {4,7}]   ;;  %s9011_s5 = inlined_call_operand.vmem [shape: f32[24,24], index: 5, kind: input, shape index: {}, may-alias: {5,8}]   ;;  %s9012_s15 = inlined_call_operand.vmem [shape: bf16[2,32,32], index: 15, kind: input, shape index: {}]   ;;  %s9013_s16 = inlined_call_operand.vmem [shape: bf16[2,32,128], index: 16, kind: input, shape index: {}]   ;;  %s9014_s11 = inlined_call_operand.vmem [shape: bf16[2,1,32], index: 11, kind: input, shape index: {}, may-alias: {10,11}]   ;;  %s9015_s17 = inlined_call_operand.vmem [shape: bf16[2,64,32], index: 17, kind: input, shape index: {}]   ;;  %s9016_s2 = inlined_call_operand.vmem [shape: bf16[24,24], index: 2, kind: input, shape index: {}]   ;;  %s9017_s18 = inlined_call_operand.vmem [shape: bf16[1,32], index: 18, kind: input, shape index: {}]   ;;  %s9018_s1 = inlined_call_operand.vmem [shape: bf16[24,32], index: 1, kind: input, shape index: {}]   ;;  %s9019_s13 = inlined_call_operand.vmem [shape: bf16[2,32,96], index: 13, kind: input, shape index: {}]   ;;  %s9020_s6 = inlined_call_operand.vmem [shape: f32[24,32], index: 6, kind: input, shape index: {}, may-alias: {3,6}]   ;;  %s9021_s7 = inlined_call_operand.vmem [shape: f32[24,32], index: 7, kind: input, shape index: {}, may-alias: {4,7}]   ;;  %s9022_s8 = inlined_call_operand.vmem [shape: f32[24,24], index: 8, kind: input, shape index: {}, may-alias: {5,8}]   ;;  %s9023_s19 = inlined_call_operand.vmem [shape: bf16[32,128], index: 19, kind: input, shape index: {}]   ;;  %s9024_s21 = inlined_call_operand.vmem [shape: f32[24,128], index: 21, kind: output, shape index: {}]   ;;  %s9025_s20 = inlined_call_operand.vmem [shape: f32[24,128], index: 20, kind: input, shape index: {}]  }
   0x1   :  { %9058 = sst [smem:[#allocation2_spill]] %s9004_s0  ;;  %v82_v56 = vld [vmem:[%s9010_s4] sm:$0xff]  ;;  %v83_v60 = vld [vmem:[%s9010_s4 + $0x8] sm:$0xff]  ;;  %s9048_s25 = smov 88   ;;  %vm494_vm3 = vcmask 1043456   ;;  %vm1466_vm4 = vcmask 523264  }
   0x2   :  { %9059 = sst [smem:[#allocation3_spill]] %s9005_s12  ;;  %v7554_v23 = vshrl.u32 %v120_v22, 7  ;;  %s9054_s27 = smov 64   ;;  %vm5873_vm6 = vcmask 7168  }
   0x3   :  { %9060 = sst [smem:[#allocation4_spill]] %s9006_s10  ;;  %s9042_s24 = smov 56  }
   0x4   :  { %9061 = sst [smem:[#allocation5_spill]] %s9007_s9  ;;  %v7560_v26 = vsub.s32 0, %v7554_v23  ;;  %s9044_s9 = smov 80   ;;  %vm5892_vm7 = vcmp.eq.s32.totalorder %v7554_v23, 0 }
   0x5   :  { %9062 = sst [smem:[#allocation6_spill]] %s9008_s14  ;;  %s9032_s14 = smov 112  }
   0x6   :  { %9063 = sst [smem:[#allocation7_spill]] %s9009_s3  ;;  %s9034_s30 = smov 104  }
   0x7   :  { %9064 = sst [smem:[#allocation8_spill]] %s9024_s21  ;;  %s9079_s12 = smov 104  }
   0x8   :  { %9065 = sst [smem:[#allocation9_spill]] %s9025_s20  ;;  %s9083_s20 = smov 96  }
   0x9   :  { %s9066_s26 = sld [smem:[#allocation2_spill]] }
   0xa   :  { %s9067_s0 = sld [smem:[#allocation3_spill]] }
   0xb   :  { %s9068_s23 = sld [smem:[#allocation4_spill]] }
   0xc   :  { %s9069_s10 = sld [smem:[#allocation5_spill]] }
   0xd   :  { %s9070_s28 = sld [smem:[#allocation6_spill]] }
   0xe   :  { %s9071_s3 = sld [smem:[#allocation7_spill]] }
   0xf   :  { %v6118_v0 = vld [vmem:[%s9066_s26] sm:$0xff]   ;;  %v75_v1 = vld [vmem:[%s9066_s26 + $0x8] sm:$0xf]  ;;  %s9046_s26 = smov 120  }
  0x10   :  { %v7532_v2 = vunpack.c.l.bf16 %v6118_v0  ;;  %v7534_v3 = vunpack.c.h.bf16 %v6118_v0  ;;  %v7536_v4 = vunpack.c.l.bf16 %v75_v1  ;;  %v7020_v11 = vld [vmem:[%s9067_s0 + $0x8] sm:$0xff]   ;;  %v7021_v12 = vld [vmem:[%s9067_s0] sm:$0xff]  }
  0x11   :  { %6397 = vmatprep.subr.bf16.mxu0 %v7020_v11  ;;  %v92_v24 = vld [vmem:[%s9068_s23] sm:$0x1] }
  0x12   :  { %v93_v5 = vmul.f32 %v7532_v2, %v7532_v2  ;;  %v94_v6 = vmul.f32 %v7534_v3, %v7534_v3  ;;  %v95_v7 = vmul.f32 %v7536_v4, %v7536_v4  ;;  %6398 = vmatpush3.bf16.msra.mxu0 %v7020_v11  ;;  %v119_v25 = vunpack.c.l.bf16 %v92_v24  ;;  %v7022_v39 = vld [vmem:[%s9069_s10 + $0x8] sm:$0xff]   ;;  %v7023_v40 = vld [vmem:[%s9069_s10] sm:$0xff]  }
  0x13   :  { %6399 = vmatprep.subr.bf16.mxu0 %v7021_v12  ;;  %6405 = vmatprep.subr.bf16.mxu1 %v7022_v39  ;;  %v5910_v41 = vld [vmem:[%s9070_s28] ss:$0 sm:$0xff] }
  0x14   :  { %v97_v8 = vsel %vm96_vm0, %v93_v5, 0.0  ;;  %v103_v9 = vsel %vm96_vm0, %v95_v7, 0.0  ;;  %v100_v10 = vsel %vm96_vm0, %v94_v6, 0.0  ;;  %v7563_v29 = vrot.slane %v119_v25, %v7560_v26  ;;  %6406 = vmatpush3.bf16.msra.mxu1 %v7022_v39  ;;  %v80_v48 = vld [vmem:[%s9071_s3 + $0x8] sm:$0xff]  ;;  %v81_v52 = vld [vmem:[%s9071_s3 + $0x10] sm:$0xff]  ;;  %v79_v58 = vld [vmem:[%s9071_s3] sm:$0xff] }
  0x15   :  { %98 = vadd.xlane.f32.xlu0 %v97_v8  ;;  %104 = vadd.xlane.f32.xlu1 %v103_v9  ;;  %v84_v8 = vld [vmem:[%s9010_s4 + $0x10] sm:$0xff] }
  0x16   :  { %6400 = vmatpush3.bf16.msra.mxu0 %v7021_v12  ;;  %6407 = vmatprep.subr.bf16.mxu1 %v7023_v40 }
  0x17   :  { %6413 = vmatprep.subr.bf16.mxu0 %v7022_v39 }
  0x18   :  { %6408 = vmatpush3.bf16.msra.mxu1 %v7023_v40 }
  0x19   :  { %101 = vadd.xlane.f32.xlu0 %v100_v10 }
  0x9e   :  { %v99_v13 = vpop.xlane.xlu0 %98  ;;  %v105_v14 = vpop.xlane.xlu1 %104 }
  0x9f   :  { %v107_v15 = vmul.f32 0.03125, %v99_v13  ;;  %v109_v16 = vmul.f32 0.03125, %v105_v14 }
  0xa1   :  { %v110_v17 = vadd.f32 1e-06, %v107_v15  ;;  %v112_v18 = vadd.f32 1e-06, %v109_v16 }
  0xa2   :  { %v102_v19 = vpop.xlane.xlu0 %101 }
  0xa3   :  { %7046 = vrsqrt.f32 %v110_v17  ;;  %v108_v20 = vmul.f32 0.03125, %v102_v19 }
  0xa4   :  { %7048 = vrsqrt.f32 %v112_v18 }
  0xa5   :  { %v111_v21 = vadd.f32 1e-06, %v108_v20 }
  0xa7   :  { %7050 = vrsqrt.f32 %v111_v21 }
  0xb0   :  { %v7047_v27 = vpop.eup %7046 }
  0xb1   :  { %v7049_v28 = vpop.eup %7048  ;;  %v116_v31 = vmul.f32 %v7047_v27, %v7532_v2 }
  0xb2   :  { %v118_v30 = vmul.f32 %v7049_v28, %v7536_v4 }
  0xb3   :  { %v124_v35 = vmul.f32 %v7563_v29, %v116_v31 }
  0xb4   :  { %v7051_v32 = vpop.eup %7050  ;;  %v126_v33 = vmul.f32 %v7563_v29, %v118_v30 }
  0xb5   :  { %v117_v34 = vmul.f32 %v7051_v32, %v7534_v3 }
  0xb6   :  { %v128_v37 = vpack.c.bf16 %v126_v33, %v126_v33 }
  0xb7   :  { %v125_v36 = vmul.f32 %v7563_v29, %v117_v34 }
  0xb9   :  { %v127_v38 = vpack.c.bf16 %v125_v36, %v124_v35 }
  0xbb   :  { %6401 = vmatprep.mubr.msk.bf16.mxu0 %vm96_vm0, %v127_v38 }
  0xbc   :  { %6402 = vmatmul.mubr.msk.bf16.vlgmr.msra.gmra.mxu0 %vm96_vm0, %v128_v37 }
  0xbd   :  { %6414 = vmatpush3.bf16.msra.mxu0 %v7022_v39 }
  0xbe   :  { %6415 = vmatprep.subr.bf16.mxu0 %v7023_v40 }
  0xc1   :  { %6416 = vmatpush3.bf16.msra.mxu0 %v7023_v40 }
 0x17c   :  { %v6403_v42 = vpop.f32.mrf.mxu0 }
 0x17d   :  { %v7582_v43 = vadd.f32 %v6403_v42, %v5910_v41 }
 0x17e   :  { %v188_v44 = vpop.f32.mrf.mxu0 }
 0x17f   :  { %v7586_v45 = vpack.c.bf16 %v7582_v43, %v7582_v43  ;;  %v189_v49 = vadd.f32 %v5910_v41, %v188_v44  ;;  %v204_v35 = vmul.f32 %v7582_v43, %v81_v52 }
 0x180   :  { %v6404_v46 = vpop.f32.mrf.mxu0 }
 0x181   :  { %298 = vrot.lane.b32.xlu0 %v7586_v45, %s9052_s29  ;;  %v202_v0 = vmul.f32 %v189_v49, %v79_v58 }
 0x182   :  { %v191_v47 = vpop.f32.mrf.mxu0 }
 0x183   :  { %v192_v50 = vadd.f32 %v5910_v41, %v191_v47 }
 0x185   :  { %v7593_v51 = vpack.c.bf16 %v192_v50, %v189_v49  ;;  %284 = vrot.lane.b32.xlu0 %v80_v48, %s9050_s22  ;;  %v203_v63 = vmul.f32 %v192_v50, %v80_v48 }
 0x187   :  { %296 = vrot.lane.b32.xlu1 %v7593_v51, %s9052_s29  ;;  %6409 = vmatprep.mubr.msk.bf16.mxu1 %vm96_vm0, %v7593_v51 }
 0x188   :  { %6410 = vmatmul.mubr.msk.bf16.vlgmr.msra.gmra.mxu1 %vm96_vm0, %v7586_v45 }
 0x18b   :  { %286 = vrot.lane.b32.xlu1 %v81_v52, %s9050_s22 }
 0x1f3   :  { %v299_v54 = vpop.permute.xlu0 %298 }
 0x1f7   :  { %v7632_v20 = vpop.permute.xlu0 %284 }
 0x1f8   :  { %v292_v27 = vmul.f32 %v7632_v20, %v192_v50  ;;  %v7672_v50 = vld [vmem:[%s9011_s5] sm:$0xff] }
 0x1f9   :  { %v297_v53 = vpop.permute.xlu1 %296 }
 0x1fa   :  { %6417 = vmatprep.mubr.msk.bf16.mxu0 %vm96_vm0, %v297_v53 }
 0x1fb   :  { %6418 = vmatmul.mubr.msk.bf16.vlgmr.msra.gmra.mxu0 %vm96_vm0, %v299_v54 }
 0x1fd   :  { %v7628_v16 = vpop.permute.xlu1 %286 }
 0x1fe   :  { %v293_v17 = vmul.f32 %v7628_v16, %v7582_v43 }
 0x248   :  { %v6411_v55 = vpop.f32.mrf.mxu1 }
 0x249   :  { %v275_v33 = vmul.f32 %v6411_v55, %v84_v8  ;;  %v7678_v55 = vld [vmem:[%s9011_s5 + $0x8] sm:$0xff] }
 0x24a   :  { %v259_v57 = vpop.f32.mrf.mxu1 }
 0x24b   :  { %v273_v61 = vmul.f32 %v259_v57, %v82_v56  ;;  %v278_v36 = vadd.f32 %v275_v33, %v204_v35  ;;  %v7684_v57 = vld [vmem:[%s9011_s5 + $0x10] sm:$0xff] }
 0x24c   :  { %v6412_v59 = vpop.f32.mrf.mxu1 }
 0x24d   :  { %v276_v5 = vadd.f32 %v273_v61, %v202_v0  ;;  %v7653_v37 = vpack.c.bf16 %v278_v36, %v278_v36 }
 0x24e   :  { %v262_v62 = vpop.f32.mrf.mxu1 }
 0x24f   :  { %v274_v1 = vmul.f32 %v262_v62, %v83_v60 }
 0x251   :  { %v277_v6 = vadd.f32 %v274_v1, %v203_v63 }
 0x253   :  { %v7617_v7 = vpack.c.bf16 %v277_v6, %v276_v5 }
 0x255   :  { %6425 = vmatprep.mubr.msk.bf16.mxu1 %vm386_vm1, %v7617_v7 }
 0x2bb   :  { %v6419_v9 = vpop.f32.mrf.mxu0 }
 0x2bc   :  { %v356_v10 = vmul.f32 %v6419_v9, %v84_v8 }
 0x2bd   :  { %v340_v11 = vpop.f32.mrf.mxu0 }
 0x2be   :  { %364 = vrot.lane.b32.xlu1 %v356_v10, %s9050_s22  ;;  %v354_v15 = vmul.f32 %v340_v11, %v82_v56 }
 0x2bf   :  { %v6420_v12 = vpop.f32.mrf.mxu0 }
 0x2c1   :  { %v343_v13 = vpop.f32.mrf.mxu0 }
 0x2c2   :  { %v355_v14 = vmul.f32 %v343_v13, %v83_v60  ;;  %282 = vrot.lane.b32.xlu1 %v79_v58, %s9050_s22 }
 0x2c4   :  { %362 = vrot.lane.b32.xlu0 %v355_v14, %s9050_s22 }
 0x2c6   :  { %360 = vrot.lane.b32.xlu1 %v354_v15, %s9050_s22  ;;  %s9082_s22 = smov 64  }
 0x330   :  { %v365_v18 = vpop.permute.xlu1 %364 }
 0x331   :  { %v371_v19 = vadd.f32 %v365_v18, %v293_v17 }
 0x333   :  { %v7634_v21 = vpack.c.bf16 %v371_v19, %v371_v19 }
 0x334   :  { %v7636_v24 = vpop.permute.xlu1 %282 }
 0x335   :  { %384 = vrot.lane.b32.xlu1 %v7634_v21, %s9052_s29  ;;  %v291_v28 = vmul.f32 %v7636_v24, %v189_v49 }
 0x336   :  { %v363_v25 = vpop.permute.xlu0 %362 }
 0x337   :  { %v370_v31 = vadd.f32 %v363_v25, %v292_v27 }
 0x338   :  { %v361_v30 = vpop.permute.xlu1 %360 }
 0x339   :  { %v369_v32 = vadd.f32 %v361_v30, %v291_v28  ;;  %616 = vrot.lane.b32.xlu1 %v7634_v21, %s9048_s25 }
 0x33b   :  { %v7644_v34 = vpack.c.bf16 %v370_v31, %v369_v32 }
 0x33d   :  { %382 = vrot.lane.b32.xlu0 %v7644_v34, %s9052_s29  ;;  %610 = vrot.lane.b32.xlu1 %v7617_v7, %s9046_s26 }
 0x341   :  { %614 = vrot.lane.b32.xlu0 %v7644_v34, %s9048_s25 }
 0x345   :  { %612 = vrot.lane.b32.xlu0 %v7653_v37, %s9046_s26  ;;  %s9072_s26 = smov 32  }
 0x3a7   :  { %v385_v38 = vpop.permute.xlu1 %384 }
 0x3a8   :  { %6941 = vmatprep.subr.msk.bf16.mxu1 %vm386_vm1, %v385_v38  ;;  %v397_v39 = vsel %vm386_vm1, %v385_v38, 0 }
 0x3a9   :  { %6422 = vmatpush3.bf16.xpose.msra.mxu1 %v397_v39 }
 0x3ab   :  { %v617_v42 = vpop.permute.xlu1 %616 }
 0x3ac   :  { %v628_v44 = vsel %vm386_vm1, %v617_v42, 0 }
 0x3af   :  { %v383_v40 = vpop.permute.xlu0 %382  ;;  %v611_v43 = vpop.permute.xlu1 %610 }
 0x3b0   :  { %6942 = vmatprep.subr.msk.bf16.mxu1 %vm386_vm1, %v383_v40  ;;  %v394_v41 = vsel %vm386_vm1, %v383_v40, 0 }
 0x3b1   :  { %6424 = vmatpush3.bf16.xpose.msra.mxu1 %v394_v41 }
 0x3b2   :  { %6945 = vmatprep.subr.msk.bf16.mxu1 %vm386_vm1, %v617_v42 }
 0x3b3   :  { %v615_v46 = vpop.permute.xlu0 %614 }
 0x3b4   :  { %v625_v47 = vsel %vm386_vm1, %v615_v46, 0 }
 0x3b7   :  { %v613_v48 = vpop.permute.xlu0 %612 }
 0x3b8   :  { %6426 = vmatmul.mubr.msk.bf16.vlgmr.msra.gmra.mxu1 %vm386_vm1, %v7653_v37 }
 0x3b9   :  { %6444 = vmatpush3.bf16.xpose.msra.mxu1 %v628_v44  ;;  %6447 = vmatprep.mubr.msk.bf16.mxu1 %vm386_vm1, %v611_v43 }
 0x3ba   :  { %6946 = vmatprep.subr.msk.bf16.mxu1 %vm386_vm1, %v615_v46 }
 0x3c1   :  { %6446 = vmatpush3.bf16.xpose.msra.mxu1 %v625_v47 }
 0x3c8   :  { %6448 = vmatmul.mubr.msk.bf16.vlgmr.msra.gmra.mxu1 %vm386_vm1, %v613_v48 }
 0x478   :  { %v6427_v49 = vpop.f32.mrf.mxu1 }
 0x479   :  { %v442_v60 = vadd.f32 %v6427_v49, %v7684_v57 }
 0x47a   :  { %v433_v52 = vpop.f32.mrf.mxu1 }
 0x47b   :  { %v434_v53 = vadd.f32 %v433_v52, %v7672_v50  ;;  %v454_v62 = vsel %vm447_vm2, %v442_v60, -inf }
 0x47c   :  { %v6428_v54 = vpop.f32.mrf.mxu1 }
 0x47d   :  { %v448_v56 = vsel %vm447_vm2, %v434_v53, -inf }
 0x47e   :  { %v436_v58 = vpop.f32.mrf.mxu1  ;;  %449 = vmax.xlane.f32.xlu1 %v448_v56 }
 0x47f   :  { %v437_v59 = vadd.f32 %v436_v58, %v7678_v55 }
 0x481   :  { %v451_v61 = vsel %vm447_vm2, %v437_v59, -inf }
 0x482   :  { %452 = vmax.xlane.f32.xlu0 %v451_v61 }
 0x486   :  { %455 = vmax.xlane.f32.xlu0 %v454_v62 }
 0x488   :  { %v6449_v63 = vpop.f32.mrf.mxu1 }
 0x489   :  { %v673_v32 = vadd.f32 %v6449_v63, %v7684_v57 }
 0x48a   :  { %v664_v0 = vpop.f32.mrf.mxu1 }
 0x48b   :  { %v665_v30 = vadd.f32 %v664_v0, %v7672_v50  ;;  %v684_v36 = vsel %vm447_vm2, %v673_v32, -inf }
 0x48c   :  { %v6450_v1 = vpop.f32.mrf.mxu1 }
 0x48d   :  { %v678_v33 = vsel %vm447_vm2, %v665_v30, -inf }
 0x48e   :  { %v667_v28 = vpop.f32.mrf.mxu1 }
 0x48f   :  { %v668_v31 = vadd.f32 %v667_v28, %v7678_v55 }
 0x491   :  { %v681_v35 = vsel %vm447_vm2, %v668_v31, -inf }
 0x507   :  { %v450_v5 = vpop.xlane.xlu1 %449 }
 0x508   :  { %v457_v9 = vsub.f32 %v434_v53, %v450_v5 }
 0x50a   :  { %v460_v13 = vmul.f32 1.442695, %v457_v9 }
 0x50b   :  { %v453_v6 = vpop.xlane.xlu0 %452 }
 0x50c   :  { %v458_v8 = vsub.f32 %v437_v59, %v453_v6 }
 0x50e   :  { %v462_v10 = vmul.f32 1.442695, %v458_v8 }
 0x50f   :  { %v456_v11 = vpop.xlane.xlu0 %455 }
 0x510   :  { %7052 = vpow2.f32 %v462_v10  ;;  %v459_v12 = vsub.f32 %v442_v60, %v456_v11 }
 0x512   :  { %v464_v14 = vmul.f32 1.442695, %v459_v12 }
 0x514   :  { %7054 = vpow2.f32 %v464_v14 }
 0x515   :  { %7056 = vpow2.f32 %v460_v13 }
 0x51d   :  { %v7053_v15 = vpop.eup %7052 }
 0x51e   :  { %v469_v17 = vsel %vm447_vm2, %v7053_v15, 0.0 }
 0x51f   :  { %470 = vadd.xlane.f32.xlu1 %v469_v17 }
 0x521   :  { %v7055_v18 = vpop.eup %7054 }
 0x522   :  { %v472_v19 = vsel %vm447_vm2, %v7055_v18, 0.0  ;;  %v7057_v25 = vpop.eup %7056 }
 0x523   :  { %473 = vadd.xlane.f32.xlu0 %v472_v19  ;;  %v466_v27 = vsel %vm447_vm2, %v7057_v25, 0.0  ;;  %v372_v19 = vld [vmem:[%s9012_s15] sm:$0xf] }
 0x527   :  { %467 = vadd.xlane.f32.xlu0 %v466_v27 }
 0x530   :  { %485 = vrot.lane.b32.xlu1 %v7586_v45, %s9054_s27 }
 0x534   :  { %843 = vrot.lane.b32.xlu1 %v7634_v21, %s9044_s9 }
 0x538   :  { %841 = vrot.lane.b32.xlu1 %v7644_v34, %s9044_s9  ;;  %s9077_s9 = smov 56  }
 0x53c   :  { %837 = vrot.lane.b32.xlu1 %v7617_v7, %s9032_s14 }
 0x53d   :  { %483 = vrot.lane.b32.xlu0 %v7593_v51, %s9054_s27 }
 0x541   :  { %839 = vrot.lane.b32.xlu0 %v7653_v37, %s9032_s14  ;;  %s9038_s14 = smov 72  }
 0x560   :  { %679 = vmax.xlane.f32.xlu1 %v678_v33  ;;  %682 = vmax.xlane.f32.xlu0 %v681_v35 }
 0x564   :  { %685 = vmax.xlane.f32.xlu0 %v684_v36 }
 0x5a8   :  { %v471_v38 = vpop.xlane.xlu1 %470 }
 0x5ac   :  { %v474_v39 = vpop.xlane.xlu0 %473  ;;  %v486_v40 = vpop.permute.xlu1 %485 }
 0x5ad   :  { %6943 = vmatprep.subr.msk.bf16.mxu0 %vm494_vm3, %v486_v40  ;;  %v496_v41 = vsel %vm494_vm3, %v486_v40, 0  ;;  %7058 = vrcp.f32 %v474_v39 }
 0x5ae   :  { %6430 = vmatpush3.bf16.msra.mxu0 %v496_v41  ;;  %7060 = vrcp.f32 %v471_v38 }
 0x5b0   :  { %v468_v42 = vpop.xlane.xlu0 %467  ;;  %v844_v43 = vpop.permute.xlu1 %843 }
 0x5b1   :  { %7062 = vrcp.f32 %v468_v42  ;;  %6949 = vmatprep.subr.msk.bf16.mxu1 %vm386_vm1, %v844_v43  ;;  %v855_v44 = vsel %vm386_vm1, %v844_v43, 0 }
 0x5b2   :  { %6466 = vmatpush3.bf16.xpose.msra.mxu1 %v855_v44 }
 0x5b4   :  { %v484_v46 = vpop.permute.xlu0 %483  ;;  %v842_v47 = vpop.permute.xlu1 %841 }
 0x5b5   :  { %6431 = vmatprep.subr.bf16.mxu0 %v484_v46  ;;  %6950 = vmatprep.subr.msk.bf16.mxu1 %vm386_vm1, %v842_v47  ;;  %v852_v49 = vsel %vm386_vm1, %v842_v47, 0 }
 0x5b6   :  { %6432 = vmatpush3.bf16.msra.mxu0 %v484_v46 }
 0x5b7   :  { %6944 = vmatprep.subr.msk.bf16.mxu0 %vm494_vm3, %v372_v19 }
 0x5b8   :  { %v838_v48 = vpop.permute.xlu1 %837  ;;  %v840_v60 = vpop.permute.xlu0 %839 }
 0x5b9   :  { %6469 = vmatprep.mubr.msk.bf16.mxu1 %vm386_vm1, %v838_v48 }
 0x5ba   :  { %6468 = vmatpush3.bf16.xpose.msra.mxu1 %v852_v49  ;;  %v7059_v52 = vpop.eup %7058 }
 0x5bb   :  { %v7061_v53 = vpop.eup %7060  ;;  %v480_v56 = vmul.f32 %v7059_v52, %v7055_v18 }
 0x5bc   :  { %v479_v59 = vmul.f32 %v7061_v53, %v7053_v15 }
 0x5bd   :  { %v482_v62 = vpack.c.bf16 %v480_v56, %v480_v56 }
 0x5be   :  { %v7063_v54 = vpop.eup %7062 }
 0x5bf   :  { %v478_v58 = vmul.f32 %v7063_v54, %v7057_v25  ;;  %v7738_v25 = vsel %vm494_vm3, %v372_v19, 0 }
 0x5c1   :  { %6470 = vmatmul.mubr.msk.bf16.vlgmr.msra.gmra.mxu1 %vm386_vm1, %v840_v60  ;;  %v481_v61 = vpack.c.bf16 %v479_v59, %v478_v58 }
 0x5c3   :  { %6433 = vmatprep.mubr.msk.bf16.mxu0 %vm447_vm2, %v481_v61 }
 0x5c4   :  { %6434 = vmatmul.mubr.msk.bf16.vlgmr.msra.gmra.mxu0 %vm447_vm2, %v482_v62 }
 0x5c5   :  { %6438 = vmatpush3.bf16.msra.mxu0 %v7738_v25 }
 0x5e9   :  { %v683_v63 = vpop.xlane.xlu0 %682  ;;  %v680_v0 = vpop.xlane.xlu1 %679 }
 0x5ea   :  { %v688_v1 = vsub.f32 %v668_v31, %v683_v63  ;;  %v687_v6 = vsub.f32 %v665_v30, %v680_v0 }
 0x5ec   :  { %v692_v5 = vmul.f32 1.442695, %v688_v1  ;;  %v690_v10 = vmul.f32 1.442695, %v687_v6  ;;  %v373_v6 = vld [vmem:[%s9012_s15 + $0x4] sm:$0xf] }
 0x5ed   :  { %v686_v8 = vpop.xlane.xlu0 %685 }
 0x5ee   :  { %7064 = vpow2.f32 %v692_v5  ;;  %v689_v9 = vsub.f32 %v673_v32, %v686_v8  ;;  %v7782_v8 = vsel %vm494_vm3, %v373_v6, 0 }
 0x5f0   :  { %v694_v11 = vmul.f32 1.442695, %v689_v9 }
 0x5f2   :  { %7066 = vpow2.f32 %v694_v11 }
 0x5f3   :  { %7068 = vpow2.f32 %v690_v10 }
 0x5fb   :  { %v7721_v12 = vpop.eup %7064 }
 0x5fc   :  { %v699_v13 = vsel %vm447_vm2, %v7721_v12, 0.0 }
 0x5fd   :  { %700 = vadd.xlane.f32.xlu1 %v699_v13 }
 0x5ff   :  { %v7725_v14 = vpop.eup %7066 }
 0x600   :  { %v702_v15 = vsel %vm447_vm2, %v7725_v14, 0.0  ;;  %v7729_v17 = vpop.eup %7068 }
 0x601   :  { %703 = vadd.xlane.f32.xlu0 %v702_v15  ;;  %v696_v18 = vsel %vm447_vm2, %v7729_v17, 0.0 }
 0x605   :  { %697 = vadd.xlane.f32.xlu0 %v696_v18 }
 0x60e   :  { %715 = vrot.lane.b32.xlu1 %v7586_v45, %s9042_s24 }
 0x612   :  { %1070 = vrot.lane.b32.xlu1 %v7634_v21, %s9038_s14 }
 0x616   :  { %1068 = vrot.lane.b32.xlu1 %v7644_v34, %s9038_s14  ;;  %s9040_s14 = smov 40  }
 0x61a   :  { %1064 = vrot.lane.b32.xlu1 %v7617_v7, %s9034_s30 }
 0x61b   :  { %713 = vrot.lane.b32.xlu0 %v7593_v51, %s9042_s24  ;;  %s9076_s24 = smov 112  }
 0x61f   :  { %1066 = vrot.lane.b32.xlu0 %v7653_v37, %s9034_s30  ;;  %s9036_s30 = smov 48  }
 0x681   :  { %v6471_v27 = vpop.f32.mrf.mxu1 }
 0x682   :  { %v900_v38 = vadd.f32 %v6471_v27, %v7684_v57 }
 0x683   :  { %v891_v28 = vpop.f32.mrf.mxu1 }
 0x684   :  { %v7754_v30 = vadd.f32 %v891_v28, %v7672_v50  ;;  %v6435_v31 = vpop.f32.mrf.mxu0  ;;  %v911_v47 = vsel %vm447_vm2, %v900_v38, -inf }
 0x685   :  { %v6472_v21 = vpop.f32.mrf.mxu1  ;;  %v547_v43 = vpack.c.bf16 %v6435_v31, %v6435_v31 }
 0x686   :  { %v532_v32 = vpop.f32.mrf.mxu0  ;;  %v701_v33 = vpop.xlane.xlu1 %700  ;;  %v905_v34 = vsel %vm447_vm2, %v7754_v30, -inf }
 0x687   :  { %v894_v35 = vpop.f32.mrf.mxu1  ;;  %906 = vmax.xlane.f32.xlu1 %v905_v34 }
 0x688   :  { %v895_v7 = vadd.f32 %v894_v35, %v7678_v55  ;;  %v6436_v36 = vpop.f32.mrf.mxu0 }
 0x68a   :  { %v704_v37 = vpop.xlane.xlu0 %703  ;;  %v535_v39 = vpop.f32.mrf.mxu0  ;;  %v908_v40 = vsel %vm447_vm2, %v895_v7, -inf }
 0x68b   :  { %v546_v41 = vpack.c.bf16 %v535_v39, %v532_v32  ;;  %v716_v42 = vpop.permute.xlu1 %715  ;;  %909 = vmax.xlane.f32.xlu0 %v908_v40  ;;  %7070 = vrcp.f32 %v704_v37 }
 0x68c   :  { %6947 = vmatprep.subr.msk.bf16.mxu0 %vm494_vm3, %v716_v42  ;;  %7072 = vrcp.f32 %v701_v33  ;;  %v725_v46 = vsel %vm494_vm3, %v716_v42, 0 }
 0x68d   :  { %6439 = vmatprep.mubr.msk.bf16.mxu0 %vm386_vm1, %v546_v41 }
 0x68e   :  { %6440 = vmatmul.mubr.msk.bf16.vlgmr.msra.gmra.mxu0 %vm386_vm1, %v547_v43  ;;  %v698_v44 = vpop.xlane.xlu0 %697 }
 0x68f   :  { %7074 = vrcp.f32 %v698_v44  ;;  %6452 = vmatpush3.bf16.msra.mxu0 %v725_v46  ;;  %v1071_v48 = vpop.permute.xlu1 %1070  ;;  %912 = vmax.xlane.f32.xlu0 %v911_v47 }
 0x690   :  { %6953 = vmatprep.subr.msk.bf16.mxu1 %vm386_vm1, %v1071_v48  ;;  %v1082_v49 = vsel %vm386_vm1, %v1071_v48, 0 }
 0x691   :  { %6488 = vmatpush3.bf16.xpose.msra.mxu1 %v1082_v49 }
 0x692   :  { %v714_v52 = vpop.permute.xlu0 %713 }
 0x693   :  { %v1069_v53 = vpop.permute.xlu1 %1068  ;;  %6453 = vmatprep.subr.bf16.mxu0 %v714_v52 }
 0x694   :  { %6954 = vmatprep.subr.msk.bf16.mxu1 %vm386_vm1, %v1069_v53  ;;  %6454 = vmatpush3.bf16.msra.mxu0 %v714_v52  ;;  %v1079_v56 = vsel %vm386_vm1, %v1069_v53, 0 }
 0x695   :  { %6948 = vmatprep.subr.msk.bf16.mxu0 %vm494_vm3, %v373_v6 }
 0x696   :  { %v1067_v0 = vpop.permute.xlu0 %1066 }
 0x697   :  { %v1065_v54 = vpop.permute.xlu1 %1064 }
 0x698   :  { %6491 = vmatprep.mubr.msk.bf16.mxu1 %vm386_vm1, %v1065_v54  ;;  %v7071_v58 = vpop.eup %7070 }
 0x699   :  { %6490 = vmatpush3.bf16.xpose.msra.mxu1 %v1079_v56  ;;  %v7073_v59 = vpop.eup %7072  ;;  %v710_v61 = vmul.f32 %v7071_v58, %v7725_v14 }
 0x69a   :  { %v709_v63 = vmul.f32 %v7073_v59, %v7721_v12 }
 0x69b   :  { %v712_v5 = vpack.c.bf16 %v710_v61, %v710_v61 }
 0x69c   :  { %v7075_v60 = vpop.eup %7074 }
 0x69d   :  { %v708_v62 = vmul.f32 %v7075_v60, %v7729_v17 }
 0x69f   :  { %v711_v1 = vpack.c.bf16 %v709_v63, %v708_v62 }
 0x6a0   :  { %6492 = vmatmul.mubr.msk.bf16.vlgmr.msra.gmra.mxu1 %vm386_vm1, %v1067_v0 }
 0x6a1   :  { %6455 = vmatprep.mubr.msk.bf16.mxu0 %vm447_vm2, %v711_v1 }
 0x6a2   :  { %6456 = vmatmul.mubr.msk.bf16.vlgmr.msra.gmra.mxu0 %vm447_vm2, %v712_v5 }
 0x6a3   :  { %6460 = vmatpush3.bf16.msra.mxu0 %v7782_v8 }
 0x710   :  { %v907_v9 = vpop.xlane.xlu1 %906 }
 0x711   :  { %v914_v12 = vsub.f32 %v7754_v30, %v907_v9 }
 0x713   :  { %v917_v17 = vmul.f32 1.442695, %v914_v12 }
 0x714   :  { %v910_v10 = vpop.xlane.xlu0 %909 }
 0x715   :  { %v915_v11 = vsub.f32 %v895_v7, %v910_v10 }
 0x717   :  { %v919_v13 = vmul.f32 1.442695, %v915_v11 }
 0x718   :  { %v913_v14 = vpop.xlane.xlu0 %912 }
 0x719   :  { %7076 = vpow2.f32 %v919_v13  ;;  %v916_v15 = vsub.f32 %v900_v38, %v913_v14 }
 0x71b   :  { %v921_v18 = vmul.f32 1.442695, %v916_v15 }
 0x71d   :  { %7078 = vpow2.f32 %v921_v18 }
 0x71e   :  { %7080 = vpow2.f32 %v917_v17 }
 0x726   :  { %v7077_v19 = vpop.eup %7076 }
 0x727   :  { %v926_v27 = vsel %vm447_vm2, %v7077_v19, 0.0 }
 0x728   :  { %927 = vadd.xlane.f32.xlu1 %v926_v27 }
 0x72a   :  { %v7079_v28 = vpop.eup %7078 }
 0x72b   :  { %v929_v31 = vsel %vm447_vm2, %v7079_v28, 0.0  ;;  %v7081_v21 = vpop.eup %7080 }
 0x72c   :  { %930 = vadd.xlane.f32.xlu0 %v929_v31  ;;  %v923_v32 = vsel %vm447_vm2, %v7081_v21, 0.0 }
 0x730   :  { %924 = vadd.xlane.f32.xlu0 %v923_v32  ;;  %v374_v32 = vld [vmem:[%s9012_s15 + $0x8] sm:$0xf] }
 0x739   :  { %942 = vrot.lane.b32.xlu1 %v7586_v45, %s9036_s30 }
 0x746   :  { %940 = vrot.lane.b32.xlu0 %v7593_v51, %s9036_s30  ;;  %s9078_s30 = smov 72  }
 0x74e   :  { %v7793_v30 = vpop.f32.mrf.mxu0 }
 0x750   :  { %v7795_v33 = vpop.f32.mrf.mxu0 }
 0x752   :  { %v6442_v34 = vpop.f32.mrf.mxu0 }
 0x753   :  { %v7819_v34 = vsel %vm494_vm3, %v374_v32, 0 }
 0x754   :  { %v7797_v35 = vpop.f32.mrf.mxu0 }
 0x760   :  { %v6493_v7 = vpop.f32.mrf.mxu1 }
 0x761   :  { %v1127_v41 = vadd.f32 %v6493_v7, %v7684_v57  ;;  %v607_v7 = vadd.f32 %v7793_v30, %v7536_v4 }
 0x762   :  { %v1118_v36 = vpop.f32.mrf.mxu1  ;;  %v6457_v38 = vpop.f32.mrf.mxu0 }
 0x763   :  { %v1119_v37 = vadd.f32 %v1118_v36, %v7672_v50  ;;  %v1138_v49 = vsel %vm447_vm2, %v1127_v41, -inf  ;;  %v776_v53 = vpack.c.bf16 %v6457_v38, %v6457_v38  ;;  %v605_v38 = vadd.f32 %v7532_v2, %v7795_v33 }
 0x764   :  { %v6494_v39 = vpop.f32.mrf.mxu1  ;;  %v761_v40 = vpop.f32.mrf.mxu0 }
 0x765   :  { %v1132_v42 = vsel %vm447_vm2, %v1119_v37, -inf }
 0x766   :  { %v1121_v43 = vpop.f32.mrf.mxu1  ;;  %1133 = vmax.xlane.f32.xlu1 %v1132_v42  ;;  %v6458_v44 = vpop.f32.mrf.mxu0 }
 0x767   :  { %v1122_v46 = vadd.f32 %v1121_v43, %v7678_v55 }
 0x768   :  { %v764_v47 = vpop.f32.mrf.mxu0 }
 0x769   :  { %v775_v48 = vpack.c.bf16 %v764_v47, %v761_v40  ;;  %v1135_v52 = vsel %vm447_vm2, %v1122_v46, -inf }
 0x76a   :  { %1139 = vmax.xlane.f32.xlu1 %v1138_v49  ;;  %1136 = vmax.xlane.f32.xlu0 %v1135_v52 }
 0x76b   :  { %6461 = vmatprep.mubr.msk.bf16.mxu0 %vm386_vm1, %v775_v48 }
 0x76c   :  { %6462 = vmatmul.mubr.msk.bf16.vlgmr.msra.gmra.mxu0 %vm386_vm1, %v776_v53 }
 0x7b1   :  { %v928_v50 = vpop.xlane.xlu1 %927 }
 0x7b5   :  { %v931_v57 = vpop.xlane.xlu0 %930  ;;  %v943_v54 = vpop.permute.xlu1 %942 }
 0x7b6   :  { %6951 = vmatprep.subr.msk.bf16.mxu0 %vm494_vm3, %v943_v54  ;;  %v952_v55 = vsel %vm494_vm3, %v943_v54, 0  ;;  %7082 = vrcp.f32 %v931_v57 }
 0x7b7   :  { %6474 = vmatpush3.bf16.msra.mxu0 %v952_v55  ;;  %7084 = vrcp.f32 %v928_v50 }
 0x7b9   :  { %v925_v56 = vpop.xlane.xlu0 %924 }
 0x7ba   :  { %7086 = vrcp.f32 %v925_v56 }
 0x7bd   :  { %v941_v58 = vpop.permute.xlu0 %940 }
 0x7be   :  { %6475 = vmatprep.subr.bf16.mxu0 %v941_v58 }
 0x7bf   :  { %6476 = vmatpush3.bf16.msra.mxu0 %v941_v58 }
 0x7c0   :  { %6952 = vmatprep.subr.msk.bf16.mxu0 %vm494_vm3, %v374_v32 }
 0x7c3   :  { %v7083_v59 = vpop.eup %7082 }
 0x7c4   :  { %v7085_v60 = vpop.eup %7084  ;;  %v937_v62 = vmul.f32 %v7083_v59, %v7079_v28  ;;  %v375_v59 = vld [vmem:[%s9012_s15 + $0xc] sm:$0xf] }
 0x7c5   :  { %v936_v0 = vmul.f32 %v7085_v60, %v7077_v19  ;;  %v7841_v60 = vsel %vm494_vm3, %v375_v59, 0 }
 0x7c6   :  { %v939_v5 = vpack.c.bf16 %v937_v62, %v937_v62 }
 0x7c7   :  { %v7087_v61 = vpop.eup %7086 }
 0x7c8   :  { %v935_v63 = vmul.f32 %v7087_v61, %v7081_v21 }
 0x7ca   :  { %v938_v1 = vpack.c.bf16 %v936_v0, %v935_v63 }
 0x7cc   :  { %6477 = vmatprep.mubr.msk.bf16.mxu0 %vm447_vm2, %v938_v1 }
 0x7cd   :  { %6478 = vmatmul.mubr.msk.bf16.vlgmr.msra.gmra.mxu0 %vm447_vm2, %v939_v5 }
 0x7ce   :  { %6482 = vmatpush3.bf16.msra.mxu0 %v7819_v34 }
 0x7ef   :  { %v1134_v6 = vpop.xlane.xlu1 %1133 }
 0x7f0   :  { %v1141_v9 = vsub.f32 %v1119_v37, %v1134_v6 }
 0x7f2   :  { %v1144_v17 = vmul.f32 1.442695, %v1141_v9 }
 0x7f3   :  { %v1137_v10 = vpop.xlane.xlu0 %1136  ;;  %v1140_v11 = vpop.xlane.xlu1 %1139 }
 0x7f4   :  { %v1142_v12 = vsub.f32 %v1122_v46, %v1137_v10  ;;  %v1143_v13 = vsub.f32 %v1127_v41, %v1140_v11 }
 0x7f6   :  { %v1146_v14 = vmul.f32 1.442695, %v1142_v12  ;;  %v1148_v15 = vmul.f32 1.442695, %v1143_v13 }
 0x7f8   :  { %7088 = vpow2.f32 %v1146_v14 }
 0x7f9   :  { %7090 = vpow2.f32 %v1148_v15  ;;  %v606_v15 = vadd.f32 %v7534_v3, %v7797_v35 }
 0x7fa   :  { %7092 = vpow2.f32 %v1144_v17 }
 0x805   :  { %v7089_v18 = vpop.eup %7088 }
 0x806   :  { %v7091_v19 = vpop.eup %7090  ;;  %v1153_v27 = vsel %vm447_vm2, %v7089_v18, 0.0 }
 0x807   :  { %1154 = vadd.xlane.f32.xlu1 %v1153_v27  ;;  %v1156_v28 = vsel %vm447_vm2, %v7091_v19, 0.0  ;;  %v7093_v31 = vpop.eup %7092 }
 0x808   :  { %1157 = vadd.xlane.f32.xlu0 %v1156_v28  ;;  %v1150_v21 = vsel %vm447_vm2, %v7093_v31, 0.0 }
 0x80c   :  { %1151 = vadd.xlane.f32.xlu0 %v1150_v21 }
 0x818   :  { %1169 = vrot.lane.b32.xlu1 %v7586_v45, %s9040_s14 }
 0x822   :  { %1167 = vrot.lane.b32.xlu0 %v7593_v51, %s9040_s14  ;;  %s9081_s14 = smov 40  }
 0x82c   :  { %v6463_v36 = vpop.f32.mrf.mxu0 }
 0x82d   :  { %v836_v37 = vadd.f32 %v6463_v36, %v607_v7 }
 0x82e   :  { %v820_v39 = vpop.f32.mrf.mxu0 }
 0x82f   :  { %v834_v40 = vadd.f32 %v820_v39, %v605_v38  ;;  %v7024_v39 = vld [vmem:[%s9013_s16 + $0x8] sm:$0xff]  }
 0x830   :  { %v6464_v41 = vpop.f32.mrf.mxu0  ;;  %6509 = vmatprep.subr.bf16.mxu1 %v7024_v39 }
 0x831   :  { %6510 = vmatpush3.bf16.msra.mxu1 %v7024_v39 }
 0x832   :  { %v823_v42 = vpop.f32.mrf.mxu0 }
 0x88d   :  { %v6479_v43 = vpop.f32.mrf.mxu0 }
 0x88e   :  { %v1003_v4 = vpack.c.bf16 %v6479_v43, %v6479_v43 }
 0x88f   :  { %v988_v44 = vpop.f32.mrf.mxu0 }
 0x890   :  { %v1155_v46 = vpop.xlane.xlu1 %1154 }
 0x891   :  { %v1158_v47 = vpop.xlane.xlu0 %1157  ;;  %v6480_v45 = vpop.f32.mrf.mxu0 }
 0x892   :  { %7094 = vrcp.f32 %v1158_v47 }
 0x893   :  { %v991_v48 = vpop.f32.mrf.mxu0  ;;  %7096 = vrcp.f32 %v1155_v46 }
 0x894   :  { %v1002_v51 = vpack.c.bf16 %v991_v48, %v988_v44  ;;  %v1170_v49 = vpop.permute.xlu1 %1169 }
 0x895   :  { %v1152_v30 = vpop.xlane.xlu0 %1151  ;;  %6955 = vmatprep.subr.msk.bf16.mxu0 %vm494_vm3, %v1170_v49  ;;  %v1179_v2 = vsel %vm494_vm3, %v1170_v49, 0  ;;  %v1291_v49 = vld [vmem:[%s9014_s11] sm:$0x1] }
 0x896   :  { %7098 = vrcp.f32 %v1152_v30  ;;  %6483 = vmatprep.mubr.msk.bf16.mxu0 %vm386_vm1, %v1002_v51 }
 0x897   :  { %6484 = vmatmul.mubr.msk.bf16.vlgmr.msra.gmra.mxu0 %vm386_vm1, %v1003_v4  ;;  %v1316_v4 = vunpack.c.l.bf16 %v1291_v49 }
 0x898   :  { %6496 = vmatpush3.bf16.msra.mxu0 %v1179_v2 }
 0x899   :  { %v1168_v33 = vpop.permute.xlu0 %1167 }
 0x89a   :  { %6497 = vmatprep.subr.bf16.mxu0 %v1168_v33 }
 0x89c   :  { %6498 = vmatpush3.bf16.msra.mxu0 %v1168_v33 }
 0x89d   :  { %6956 = vmatprep.subr.msk.bf16.mxu0 %vm494_vm3, %v375_v59 }
 0x89f   :  { %v7095_v52 = vpop.eup %7094 }
 0x8a0   :  { %v7097_v53 = vpop.eup %7096  ;;  %v1164_v57 = vmul.f32 %v7095_v52, %v7091_v19  ;;  %v7874_v52 = vrot.slane %v1316_v4, %v7560_v26 }
 0x8a1   :  { %v1163_v55 = vmul.f32 %v7097_v53, %v7089_v18  ;;  %v835_v18 = vadd.f32 %v823_v42, %v606_v15 }
 0x8a2   :  { %v1166_v58 = vpack.c.bf16 %v1164_v57, %v1164_v57 }
 0x8a3   :  { %v7099_v50 = vpop.eup %7098 }
 0x8a4   :  { %v1162_v54 = vmul.f32 %v7099_v50, %v7093_v31 }
 0x8a6   :  { %v1165_v56 = vpack.c.bf16 %v1163_v55, %v1162_v54 }
 0x8a8   :  { %6499 = vmatprep.mubr.msk.bf16.mxu0 %vm447_vm2, %v1165_v56 }
 0x8a9   :  { %6500 = vmatmul.mubr.msk.bf16.vlgmr.msra.gmra.mxu0 %vm447_vm2, %v1166_v58 }
 0x8aa   :  { %6504 = vmatpush3.bf16.msra.mxu0 %v7841_v60 }
 0x957   :  { %v6485_v61 = vpop.f32.mrf.mxu0 }
 0x958   :  { %v1063_v62 = vadd.f32 %v6485_v61, %v836_v37  ;;  %v7026_v61 = vld [vmem:[%s9015_s17 + $0x18] sm:$0xff]  }
 0x959   :  { %v1047_v63 = vpop.f32.mrf.mxu0  ;;  %6517 = vmatprep.subr.bf16.mxu0 %v7026_v61 }
 0x95a   :  { %v1061_v0 = vadd.f32 %v1047_v63, %v834_v40  ;;  %v7025_v40 = vld [vmem:[%s9013_s16] sm:$0xff]   ;;  %v7028_v63 = vld [vmem:[%s9015_s17 + $0x8] sm:$0xff]  }
 0x95b   :  { %v6486_v1 = vpop.f32.mrf.mxu0  ;;  %6511 = vmatprep.subr.bf16.mxu1 %v7025_v40 }
 0x95c   :  { %6512 = vmatpush3.bf16.msra.mxu1 %v7025_v40 }
 0x95d   :  { %v1050_v5 = vpop.f32.mrf.mxu0 }
 0x95e   :  { %v1062_v31 = vadd.f32 %v1050_v5, %v835_v18  ;;  %v7898_v5 = vld [vmem:[%s9069_s10 + $0x8] sm:$0xff]  }
 0x969   :  { %v6501_v6 = vpop.f32.mrf.mxu0 }
 0x96a   :  { %v1230_v13 = vpack.c.bf16 %v6501_v6, %v6501_v6 }
 0x96b   :  { %v1215_v9 = vpop.f32.mrf.mxu0 }
 0x96d   :  { %v6502_v10 = vpop.f32.mrf.mxu0 }
 0x96f   :  { %v1218_v11 = vpop.f32.mrf.mxu0 }
 0x970   :  { %v1229_v12 = vpack.c.bf16 %v1218_v11, %v1215_v9 }
 0x972   :  { %6505 = vmatprep.mubr.msk.bf16.mxu0 %vm386_vm1, %v1229_v12 }
 0x973   :  { %6506 = vmatmul.mubr.msk.bf16.vlgmr.msra.gmra.mxu0 %vm386_vm1, %v1230_v13 }
 0x974   :  { %6518 = vmatpush3.bf16.msra.mxu0 %v7026_v61 }
 0xa33   :  { %v6507_v14 = vpop.f32.mrf.mxu0 }
 0xa34   :  { %v7848_v19 = vadd.f32 %v6507_v14, %v1063_v62  ;;  %v7027_v62 = vld [vmem:[%s9015_s17 + $0x10] sm:$0xff]  }
 0xa35   :  { %v1274_v17 = vpop.f32.mrf.mxu0  ;;  %6519 = vmatprep.subr.bf16.mxu0 %v7027_v62 }
 0xa36   :  { %v7850_v27 = vadd.f32 %v1274_v17, %v1061_v0  ;;  %v1294_v38 = vmul.f32 %v7848_v19, %v7848_v19  ;;  %6520 = vmatpush3.bf16.msra.mxu0 %v7027_v62  ;;  %v7029_v0 = vld [vmem:[%s9015_s17] sm:$0xff]  }
 0xa37   :  { %v6508_v28 = vpop.f32.mrf.mxu0  ;;  %6521 = vmatprep.subr.bf16.mxu0 %v7028_v63 }
 0xa38   :  { %v1292_v21 = vmul.f32 %v7850_v27, %v7850_v27  ;;  %v1301_v35 = vsel %vm96_vm0, %v1294_v38, 0.0 }
 0xa39   :  { %v1277_v32 = vpop.f32.mrf.mxu0 }
 0xa3a   :  { %v7854_v7 = vadd.f32 %v1277_v32, %v1062_v31  ;;  %v1295_v36 = vsel %vm96_vm0, %v1292_v21, 0.0  ;;  %6522 = vmatpush3.bf16.msra.mxu0 %v7028_v63 }
 0xa3b   :  { %1296 = vadd.xlane.f32.xlu1 %v1295_v36  ;;  %6523 = vmatprep.subr.bf16.mxu0 %v7029_v0 }
 0xa3c   :  { %v1293_v3 = vmul.f32 %v7854_v7, %v7854_v7 }
 0xa3e   :  { %v1298_v37 = vsel %vm96_vm0, %v1293_v3, 0.0  ;;  %6524 = vmatpush3.bf16.msra.mxu0 %v7029_v0 }
 0xa3f   :  { %1302 = vadd.xlane.f32.xlu1 %v1301_v35  ;;  %1299 = vadd.xlane.f32.xlu0 %v1298_v37 }
 0xa40   :  { %6545 = vmatprep.subr.bf16.mxu0 %v7898_v5 }
 0xac4   :  { %v1297_v41 = vpop.xlane.xlu1 %1296 }
 0xac5   :  { %v1304_v42 = vmul.f32 0.03125, %v1297_v41 }
 0xac7   :  { %v1307_v43 = vadd.f32 1e-06, %v1304_v42 }
 0xac8   :  { %v1303_v44 = vpop.xlane.xlu1 %1302  ;;  %v1300_v46 = vpop.xlane.xlu0 %1299 }
 0xac9   :  { %v1306_v47 = vmul.f32 0.03125, %v1303_v44  ;;  %v1305_v45 = vmul.f32 0.03125, %v1300_v46  ;;  %7100 = vrsqrt.f32 %v1307_v43 }
 0xacb   :  { %v1309_v48 = vadd.f32 1e-06, %v1306_v47  ;;  %v1308_v51 = vadd.f32 1e-06, %v1305_v45  ;;  %v7359_v47 = vld [vmem:[%s9069_s10] sm:$0xff]  }
 0xacd   :  { %7102 = vrsqrt.f32 %v1309_v48 }
 0xace   :  { %7104 = vrsqrt.f32 %v1308_v51 }
 0xad6   :  { %v7101_v30 = vpop.eup %7100 }
 0xad7   :  { %v1313_v33 = vmul.f32 %v7101_v30, %v7850_v27 }
 0xad9   :  { %v1321_v55 = vmul.f32 %v7874_v52, %v1313_v33 }
 0xada   :  { %v7103_v2 = vpop.eup %7102 }
 0xadb   :  { %v7105_v53 = vpop.eup %7104  ;;  %v1315_v50 = vmul.f32 %v7103_v2, %v7848_v19 }
 0xadc   :  { %v1314_v57 = vmul.f32 %v7105_v53, %v7854_v7 }
 0xadd   :  { %v1323_v54 = vmul.f32 %v7874_v52, %v1315_v50 }
 0xade   :  { %v1322_v56 = vmul.f32 %v7874_v52, %v1314_v57 }
 0xadf   :  { %v1325_v58 = vpack.c.bf16 %v1323_v54, %v1323_v54 }
 0xae0   :  { %v1324_v59 = vpack.c.bf16 %v1322_v56, %v1321_v55 }
 0xae2   :  { %6513 = vmatprep.mubr.msk.bf16.mxu1 %vm96_vm0, %v1324_v59 }
 0xae3   :  { %6514 = vmatmul.mubr.msk.bf16.vlgmr.msra.gmra.mxu1 %vm96_vm0, %v1325_v58 }
 0xba3   :  { %v6515_v1 = vpop.f32.mrf.mxu1 }
 0xba4   :  { %v5951_v13 = vmul.f32 -1.442695, %v6515_v1 }
 0xba5   :  { %v1382_v6 = vpop.f32.mrf.mxu1 }
 0xba6   :  { %1420 = vrot.lane.b32.xlu0 %v1382_v6, %s9054_s27  ;;  %v5949_v11 = vmul.f32 -1.442695, %v1382_v6 }
 0xba7   :  { %v6516_v9 = vpop.f32.mrf.mxu1 }
 0xba8   :  { %7106 = vpow2.f32 %v5949_v11 }
 0xba9   :  { %v1385_v10 = vpop.f32.mrf.mxu1 }
 0xbaa   :  { %1422 = vrot.lane.b32.xlu1 %v1385_v10, %s9054_s27  ;;  %v5950_v12 = vmul.f32 -1.442695, %v1385_v10 }
 0xbac   :  { %7108 = vpow2.f32 %v5950_v12 }
 0xbad   :  { %7110 = vpow2.f32 %v5951_v13 }
 0xbae   :  { %1424 = vrot.lane.b32.xlu1 %v6515_v1, %s9054_s27 }
 0xbb5   :  { %v7107_v14 = vpop.eup %7106 }
 0xbb6   :  { %v1405_v17 = vadd.f32 1.0, %v7107_v14 }
 0xbb8   :  { %7112 = vrcp.f32 %v1405_v17 }
 0xbb9   :  { %v7109_v15 = vpop.eup %7108 }
 0xbba   :  { %v1406_v18 = vadd.f32 1.0, %v7109_v15  ;;  %v7111_v28 = vpop.eup %7110 }
 0xbbb   :  { %v1407_v31 = vadd.f32 1.0, %v7111_v28 }
 0xbbc   :  { %7114 = vrcp.f32 %v1406_v18 }
 0xbbd   :  { %7116 = vrcp.f32 %v1407_v31 }
 0xbc5   :  { %v7113_v21 = vpop.eup %7112 }
 0xbc6   :  { %v1414_v38 = vmul.f32 %v7113_v21, %v1382_v6  ;;  %v5962_v6 = vld [vmem:[%s9068_s23 + $0x1] sm:$0x1]  ;;  %s9080_s23 = smov 48  }
 0xbc7   :  { %v1555_v9 = vunpack.c.l.bf16 %v5962_v6 }
 0xbc9   :  { %v7115_v32 = vpop.eup %7114  ;;  %v7940_v12 = vrot.slane %v1555_v9, %v7560_v26 }
 0xbca   :  { %v1415_v3 = vmul.f32 %v7115_v32, %v1385_v10  ;;  %v7117_v35 = vpop.eup %7116 }
 0xbcb   :  { %v1416_v41 = vmul.f32 %v7117_v35, %v6515_v1 }
 0xc18   :  { %v1421_v36 = vpop.permute.xlu0 %1420 }
 0xc19   :  { %v1429_v39 = vmul.f32 %v1421_v36, %v1414_v38  ;;  %v5964_v36 = vld [vmem:[%s9070_s28 + $0x1] ss:$0 sm:$0xff] }
 0xc1c   :  { %v1423_v37 = vpop.permute.xlu1 %1422 }
 0xc1d   :  { %v1430_v40 = vmul.f32 %v1423_v37, %v1415_v3 }
 0xc1f   :  { %v1440_v42 = vpack.c.bf16 %v1430_v40, %v1429_v39 }
 0xc20   :  { %v1425_v43 = vpop.permute.xlu1 %1424 }
 0xc21   :  { %v1431_v44 = vmul.f32 %v1425_v43, %v1416_v41  ;;  %6525 = vmatprep.mubr.msk.bf16.mxu0 %vm1466_vm4, %v1440_v42 }
 0xc23   :  { %v1441_v46 = vpack.c.bf16 %v1431_v44, %v1431_v44 }
 0xc25   :  { %6526 = vmatmul.mubr.msk.bf16.vlgmr.msra.gmra.mxu0 %vm1466_vm4, %v1441_v46 }
 0xc26   :  { %6546 = vmatpush3.bf16.msra.mxu0 %v7898_v5 }
 0xc27   :  { %6547 = vmatprep.subr.bf16.mxu0 %v7359_v47 }
 0xc2a   :  { %6548 = vmatpush3.bf16.msra.mxu0 %v7359_v47 }
 0xce5   :  { %v6527_v45 = vpop.f32.mrf.mxu0 }
 0xce6   :  { %v7916_v2 = vadd.f32 %v6527_v45, %v7848_v19  ;;  %v7030_v19 = vld [vmem:[%s9067_s0 + $0x18] sm:$0xff]  }
 0xce7   :  { %v1507_v48 = vpop.f32.mrf.mxu0  ;;  %6529 = vmatprep.subr.bf16.mxu1 %v7030_v19 }
 0xce8   :  { %v7911_v51 = vadd.f32 %v1507_v48, %v7850_v27  ;;  %v1533_v57 = vmul.f32 %v7916_v2, %v7916_v2  ;;  %6530 = vmatpush3.bf16.msra.mxu1 %v7030_v19  ;;  %v7361_v48 = vld [vmem:[%s9010_s4 + $0x10] sm:$0xff] }
 0xce9   :  { %v6528_v49 = vpop.f32.mrf.mxu0 }
 0xcea   :  { %v1531_v4 = vmul.f32 %v7911_v51, %v7911_v51  ;;  %v1540_v54 = vsel %vm96_vm0, %v1533_v57, 0.0 }
 0xceb   :  { %v1510_v30 = vpop.f32.mrf.mxu0 }
 0xcec   :  { %v7919_v33 = vadd.f32 %v1510_v30, %v7854_v7  ;;  %v1534_v53 = vsel %vm96_vm0, %v1531_v4, 0.0  ;;  %v7031_v7 = vld [vmem:[%s9067_s0 + $0x10] sm:$0xff]  }
 0xced   :  { %1535 = vadd.xlane.f32.xlu1 %v1534_v53  ;;  %6531 = vmatprep.subr.bf16.mxu1 %v7031_v7 }
 0xcee   :  { %v1532_v50 = vmul.f32 %v7919_v33, %v7919_v33  ;;  %6532 = vmatpush3.bf16.msra.mxu1 %v7031_v7  ;;  %v7364_v7 = vld [vmem:[%s9071_s3 + $0x8] sm:$0xff] }
 0xcef   :  { %6537 = vmatprep.subr.bf16.mxu1 %v7898_v5 }
 0xcf0   :  { %v1537_v27 = vsel %vm96_vm0, %v1532_v50, 0.0  ;;  %v7362_v50 = vld [vmem:[%s9010_s4] sm:$0xff] }
 0xcf1   :  { %1538 = vadd.xlane.f32.xlu0 %v1537_v27 }
 0xcf5   :  { %1541 = vadd.xlane.f32.xlu0 %v1540_v54  ;;  %v7363_v54 = vld [vmem:[%s9071_s3] sm:$0xff] }
 0xd76   :  { %v1536_v55 = vpop.xlane.xlu1 %1535 }
 0xd77   :  { %v1543_v56 = vmul.f32 0.03125, %v1536_v55 }
 0xd79   :  { %v1546_v58 = vadd.f32 1e-06, %v1543_v56  ;;  %v7365_v56 = vld [vmem:[%s9010_s4 + $0x8] sm:$0xff]  ;;  %s9073_s4 = smov 88  }
 0xd7a   :  { %v1539_v59 = vpop.xlane.xlu0 %1538 }
 0xd7b   :  { %7118 = vrsqrt.f32 %v1546_v58  ;;  %v1544_v61 = vmul.f32 0.03125, %v1539_v59 }
 0xd7d   :  { %v1547_v62 = vadd.f32 1e-06, %v1544_v61 }
 0xd7e   :  { %v1542_v63 = vpop.xlane.xlu0 %1541 }
 0xd7f   :  { %7120 = vrsqrt.f32 %v1547_v62  ;;  %v1545_v0 = vmul.f32 0.03125, %v1542_v63 }
 0xd81   :  { %v1548_v1 = vadd.f32 1e-06, %v1545_v0 }
 0xd83   :  { %7122 = vrsqrt.f32 %v1548_v1 }
 0xd88   :  { %v7119_v10 = vpop.eup %7118 }
 0xd89   :  { %v1552_v11 = vmul.f32 %v7119_v10, %v7911_v51 }
 0xd8b   :  { %v1560_v15 = vmul.f32 %v7940_v12, %v1552_v11 }
 0xd8c   :  { %v7121_v13 = vpop.eup %7120 }
 0xd8d   :  { %v1553_v14 = vmul.f32 %v7121_v13, %v7919_v33 }
 0xd8f   :  { %v1561_v17 = vmul.f32 %v7940_v12, %v1553_v14 }
 0xd90   :  { %v7123_v18 = vpop.eup %7122 }
 0xd91   :  { %v1563_v28 = vpack.c.bf16 %v1561_v17, %v1560_v15  ;;  %v1554_v31 = vmul.f32 %v7123_v18, %v7916_v2 }
 0xd93   :  { %6533 = vmatprep.mubr.msk.bf16.mxu1 %vm96_vm0, %v1563_v28  ;;  %v1562_v21 = vmul.f32 %v7940_v12, %v1554_v31 }
 0xd95   :  { %v1564_v32 = vpack.c.bf16 %v1562_v21, %v1562_v21 }
 0xd97   :  { %6534 = vmatmul.mubr.msk.bf16.vlgmr.msra.gmra.mxu1 %vm96_vm0, %v1564_v32 }
 0xd98   :  { %6538 = vmatpush3.bf16.msra.mxu1 %v7898_v5 }
 0xd99   :  { %6539 = vmatprep.subr.bf16.mxu1 %v7359_v47 }
 0xd9c   :  { %6540 = vmatpush3.bf16.msra.mxu1 %v7359_v47  ;;  %v7360_v47 = vld [vmem:[%s9071_s3 + $0x10] sm:$0xff]  ;;  %s9074_s3 = smov 120  }
 0xe57   :  { %v6535_v38 = vpop.f32.mrf.mxu1 }
 0xe58   :  { %v1634_v3 = vadd.f32 %v6535_v38, %v5964_v36 }
 0xe59   :  { %v1625_v35 = vpop.f32.mrf.mxu1 }
 0xe5a   :  { %v7953_v37 = vpack.c.bf16 %v1634_v3, %v1634_v3  ;;  %v1626_v41 = vadd.f32 %v5964_v36, %v1625_v35  ;;  %v1641_v45 = vmul.f32 %v7360_v47, %v1634_v3  ;;  %v1706_v13 = vmul.f32 %v1634_v3, %v7628_v16 }
 0xe5b   :  { %v6536_v39 = vpop.f32.mrf.mxu1 }
 0xe5c   :  { %1711 = vrot.lane.b32.xlu1 %v7953_v37, %s9052_s29  ;;  %v1639_v19 = vmul.f32 %v7363_v54, %v1626_v41  ;;  %v1704_v28 = vmul.f32 %v1626_v41, %v7636_v24 }
 0xe5d   :  { %v1628_v40 = vpop.f32.mrf.mxu1 }
 0xe5e   :  { %v1629_v42 = vadd.f32 %v5964_v36, %v1628_v40 }
 0xe60   :  { %v7957_v43 = vpack.c.bf16 %v1629_v42, %v1626_v41  ;;  %v1640_v55 = vmul.f32 %v7364_v7, %v1629_v42  ;;  %v1705_v31 = vmul.f32 %v1629_v42, %v7632_v20 }
 0xe62   :  { %1709 = vrot.lane.b32.xlu0 %v7957_v43, %s9052_s29  ;;  %6541 = vmatprep.mubr.msk.bf16.mxu1 %vm96_vm0, %v7957_v43 }
 0xe63   :  { %6542 = vmatmul.mubr.msk.bf16.vlgmr.msra.gmra.mxu1 %vm96_vm0, %v7953_v37 }
 0xece   :  { %v1712_v44 = vpop.permute.xlu1 %1711 }
 0xed4   :  { %v1710_v5 = vpop.permute.xlu0 %1709 }
 0xed5   :  { %6549 = vmatprep.mubr.msk.bf16.mxu0 %vm96_vm0, %v1710_v5 }
 0xed6   :  { %6550 = vmatmul.mubr.msk.bf16.vlgmr.msra.gmra.mxu0 %vm96_vm0, %v1712_v44 }
 0xf23   :  { %v6543_v46 = vpop.f32.mrf.mxu1 }
 0xf24   :  { %v1700_v49 = vmul.f32 %v7361_v48, %v6543_v46 }
 0xf25   :  { %v1684_v4 = vpop.f32.mrf.mxu1 }
 0xf26   :  { %v1703_v30 = vadd.f32 %v1700_v49, %v1641_v45  ;;  %v1698_v27 = vmul.f32 %v7362_v50, %v1684_v4  ;;  %v8028_v45 = vld [vmem:[%s9011_s5] sm:$0xff] }
 0xf27   :  { %v6544_v53 = vpop.f32.mrf.mxu1 }
 0xf28   :  { %v1701_v59 = vadd.f32 %v1698_v27, %v1639_v19  ;;  %v8009_v16 = vpack.c.bf16 %v1703_v30, %v1703_v30  ;;  %v8035_v53 = vld [vmem:[%s9011_s5 + $0x8] sm:$0xff]  ;;  %v8041_v27 = vld [vmem:[%s9011_s5 + $0x10] sm:$0xff]  ;;  %s9075_s5 = smov 80  }
 0xf29   :  { %v1687_v57 = vpop.f32.mrf.mxu1 }
 0xf2a   :  { %v1699_v58 = vmul.f32 %v7365_v56, %v1687_v57 }
 0xf2c   :  { %v1702_v61 = vadd.f32 %v1699_v58, %v1640_v55 }
 0xf2e   :  { %v7985_v62 = vpack.c.bf16 %v1702_v61, %v1701_v59 }
 0xf30   :  { %6557 = vmatprep.mubr.msk.bf16.mxu1 %vm386_vm1, %v7985_v62 }
 0xf96   :  { %v6551_v63 = vpop.f32.mrf.mxu0 }
 0xf97   :  { %v1769_v0 = vmul.f32 %v7361_v48, %v6551_v63 }
 0xf98   :  { %v1753_v1 = vpop.f32.mrf.mxu0 }
 0xf99   :  { %1777 = vrot.lane.b32.xlu1 %v1769_v0, %s9072_s26  ;;  %v1767_v9 = vmul.f32 %v7362_v50, %v1753_v1 }
 0xf9a   :  { %v6552_v6 = vpop.f32.mrf.mxu0 }
 0xf9c   :  { %v1756_v10 = vpop.f32.mrf.mxu0 }
 0xf9d   :  { %v1768_v11 = vmul.f32 %v7365_v56, %v1756_v10  ;;  %1773 = vrot.lane.b32.xlu1 %v1767_v9, %s9072_s26 }
 0xf9f   :  { %1775 = vrot.lane.b32.xlu0 %v1768_v11, %s9072_s26 }
0x100b   :  { %v1778_v14 = vpop.permute.xlu1 %1777 }
0x100c   :  { %v1784_v15 = vadd.f32 %v1778_v14, %v1706_v13 }
0x100e   :  { %v7993_v17 = vpack.c.bf16 %v1784_v15, %v1784_v15 }
0x100f   :  { %v1774_v18 = vpop.permute.xlu1 %1773 }
0x1010   :  { %1798 = vrot.lane.b32.xlu1 %v7993_v17, %s9052_s29  ;;  %v1782_v32 = vadd.f32 %v1774_v18, %v1704_v28 }
0x1011   :  { %v1776_v21 = vpop.permute.xlu0 %1775 }
0x1012   :  { %v1783_v36 = vadd.f32 %v1776_v21, %v1705_v31 }
0x1014   :  { %v7999_v38 = vpack.c.bf16 %v1783_v36, %v1782_v32  ;;  %2027 = vrot.lane.b32.xlu1 %v7993_v17, %s9073_s4 }
0x1016   :  { %1796 = vrot.lane.b32.xlu0 %v7999_v38, %s9052_s29 }
0x1018   :  { %2021 = vrot.lane.b32.xlu1 %v7985_v62, %s9074_s3 }
0x101a   :  { %2025 = vrot.lane.b32.xlu0 %v7999_v38, %s9073_s4 }
0x101e   :  { %2023 = vrot.lane.b32.xlu0 %v8009_v16, %s9074_s3 }
0x1082   :  { %v1799_v20 = vpop.permute.xlu1 %1798 }
0x1083   :  { %6957 = vmatprep.subr.msk.bf16.mxu1 %vm386_vm1, %v1799_v20  ;;  %v1810_v24 = vsel %vm386_vm1, %v1799_v20, 0 }
0x1084   :  { %6554 = vmatpush3.bf16.xpose.msra.mxu1 %v1810_v24 }
0x1086   :  { %v2028_v39 = vpop.permute.xlu1 %2027 }
0x1087   :  { %v2039_v41 = vsel %vm386_vm1, %v2028_v39, 0 }
0x1088   :  { %v1797_v3 = vpop.permute.xlu0 %1796 }
0x1089   :  { %6958 = vmatprep.subr.msk.bf16.mxu1 %vm386_vm1, %v1797_v3  ;;  %v1807_v35 = vsel %vm386_vm1, %v1797_v3, 0 }
0x108a   :  { %v2022_v40 = vpop.permute.xlu1 %2021 }
0x108c   :  { %6556 = vmatpush3.bf16.xpose.msra.mxu1 %v1807_v35  ;;  %v2026_v42 = vpop.permute.xlu0 %2025 }
0x108d   :  { %6961 = vmatprep.subr.msk.bf16.mxu1 %vm386_vm1, %v2028_v39  ;;  %v2036_v5 = vsel %vm386_vm1, %v2026_v42, 0 }
0x1090   :  { %v2024_v44 = vpop.permute.xlu0 %2023 }
0x1093   :  { %6558 = vmatmul.mubr.msk.bf16.vlgmr.msra.gmra.mxu1 %vm386_vm1, %v8009_v16 }
0x1094   :  { %6576 = vmatpush3.bf16.xpose.msra.mxu1 %v2039_v41  ;;  %6579 = vmatprep.mubr.msk.bf16.mxu1 %vm386_vm1, %v2022_v40 }
0x1095   :  { %6962 = vmatprep.subr.msk.bf16.mxu1 %vm386_vm1, %v2026_v42 }
0x109c   :  { %6578 = vmatpush3.bf16.xpose.msra.mxu1 %v2036_v5 }
0x10a3   :  { %6580 = vmatmul.mubr.msk.bf16.vlgmr.msra.gmra.mxu1 %vm386_vm1, %v2024_v44 }
0x1153   :  { %v6559_v46 = vpop.f32.mrf.mxu1 }
0x1154   :  { %v1855_v57 = vadd.f32 %v8041_v27, %v6559_v46 }
0x1155   :  { %v1846_v47 = vpop.f32.mrf.mxu1 }
0x1156   :  { %v1847_v48 = vadd.f32 %v8028_v45, %v1846_v47  ;;  %v1866_v19 = vsel %vm447_vm2, %v1855_v57, -inf }
0x1157   :  { %v6560_v49 = vpop.f32.mrf.mxu1 }
0x1158   :  { %v1860_v4 = vsel %vm447_vm2, %v1847_v48, -inf }
0x1159   :  { %v1849_v30 = vpop.f32.mrf.mxu1  ;;  %1861 = vmax.xlane.f32.xlu1 %v1860_v4 }
0x115a   :  { %v1850_v50 = vadd.f32 %v8035_v53, %v1849_v30 }
0x115c   :  { %v1863_v54 = vsel %vm447_vm2, %v1850_v50, -inf }
0x115d   :  { %1864 = vmax.xlane.f32.xlu0 %v1863_v54 }
0x1161   :  { %1867 = vmax.xlane.f32.xlu0 %v1866_v19 }
0x1163   :  { %v6581_v7 = vpop.f32.mrf.mxu1 }
0x1164   :  { %v2084_v36 = vadd.f32 %v8041_v27, %v6581_v7 }
0x1165   :  { %v2075_v55 = vpop.f32.mrf.mxu1 }
0x1166   :  { %v2076_v21 = vadd.f32 %v8028_v45, %v2075_v55  ;;  %v2095_v3 = vsel %vm447_vm2, %v2084_v36, -inf }
0x1167   :  { %v6582_v56 = vpop.f32.mrf.mxu1 }
0x1168   :  { %v2089_v20 = vsel %vm447_vm2, %v2076_v21, -inf }
0x1169   :  { %v2078_v31 = vpop.f32.mrf.mxu1 }
0x116a   :  { %v2079_v32 = vadd.f32 %v8035_v53, %v2078_v31  ;;  %v5973_v31 = vld [vmem:[%s9012_s15 + $0x10] sm:$0xf] }
0x116c   :  { %v2092_v24 = vsel %vm447_vm2, %v2079_v32, -inf }
0x11e2   :  { %v1862_v58 = vpop.xlane.xlu1 %1861 }
0x11e3   :  { %v1869_v63 = vsub.f32 %v1847_v48, %v1862_v58 }
0x11e5   :  { %v1872_v9 = vmul.f32 1.442695, %v1869_v63 }
0x11e6   :  { %v1865_v59 = vpop.xlane.xlu0 %1864 }
0x11e7   :  { %v1870_v61 = vsub.f32 %v1850_v50, %v1865_v59 }
0x11e9   :  { %v1874_v0 = vmul.f32 1.442695, %v1870_v61 }
0x11ea   :  { %v1868_v1 = vpop.xlane.xlu0 %1867 }
0x11eb   :  { %7124 = vpow2.f32 %v1874_v0  ;;  %v1871_v6 = vsub.f32 %v1855_v57, %v1868_v1 }
0x11ed   :  { %v1876_v10 = vmul.f32 1.442695, %v1871_v6 }
0x11ef   :  { %7126 = vpow2.f32 %v1876_v10 }
0x11f0   :  { %7128 = vpow2.f32 %v1872_v9 }
0x11f8   :  { %v7125_v11 = vpop.eup %7124 }
0x11f9   :  { %v1881_v13 = vsel %vm447_vm2, %v7125_v11, 0.0 }
0x11fa   :  { %1882 = vadd.xlane.f32.xlu1 %v1881_v13 }
0x11fc   :  { %v7127_v14 = vpop.eup %7126 }
0x11fd   :  { %v1884_v15 = vsel %vm447_vm2, %v7127_v14, 0.0  ;;  %v7129_v18 = vpop.eup %7128 }
0x11fe   :  { %1885 = vadd.xlane.f32.xlu0 %v1884_v15  ;;  %v1878_v28 = vsel %vm447_vm2, %v7129_v18, 0.0 }
0x1202   :  { %1879 = vadd.xlane.f32.xlu0 %v1878_v28 }
0x120b   :  { %1897 = vrot.lane.b32.xlu1 %v7953_v37, %s9054_s27 }
0x120f   :  { %2254 = vrot.lane.b32.xlu1 %v7993_v17, %s9075_s5 }
0x1213   :  { %2252 = vrot.lane.b32.xlu1 %v7999_v38, %s9075_s5 }
0x1217   :  { %2248 = vrot.lane.b32.xlu1 %v7985_v62, %s9076_s24 }
0x1218   :  { %1895 = vrot.lane.b32.xlu0 %v7957_v43, %s9054_s27 }
0x121c   :  { %2250 = vrot.lane.b32.xlu0 %v8009_v16, %s9076_s24 }
0x123b   :  { %2090 = vmax.xlane.f32.xlu1 %v2089_v20  ;;  %2093 = vmax.xlane.f32.xlu0 %v2092_v24 }
0x123f   :  { %2096 = vmax.xlane.f32.xlu0 %v2095_v3 }
0x1283   :  { %v1883_v35 = vpop.xlane.xlu1 %1882 }
0x1287   :  { %v1886_v39 = vpop.xlane.xlu0 %1885  ;;  %v1898_v40 = vpop.permute.xlu1 %1897 }
0x1288   :  { %6959 = vmatprep.subr.msk.bf16.mxu0 %vm494_vm3, %v1898_v40  ;;  %v1907_v41 = vsel %vm494_vm3, %v1898_v40, 0  ;;  %7130 = vrcp.f32 %v1886_v39 }
0x1289   :  { %6562 = vmatpush3.bf16.msra.mxu0 %v1907_v41  ;;  %7132 = vrcp.f32 %v1883_v35 }
0x128b   :  { %v1880_v42 = vpop.xlane.xlu0 %1879  ;;  %v2255_v5 = vpop.permute.xlu1 %2254 }
0x128c   :  { %7134 = vrcp.f32 %v1880_v42  ;;  %6965 = vmatprep.subr.msk.bf16.mxu1 %vm386_vm1, %v2255_v5  ;;  %v2266_v44 = vsel %vm386_vm1, %v2255_v5, 0 }
0x128d   :  { %6598 = vmatpush3.bf16.xpose.msra.mxu1 %v2266_v44 }
0x128f   :  { %v1896_v46 = vpop.permute.xlu0 %1895  ;;  %v2253_v47 = vpop.permute.xlu1 %2252 }
0x1290   :  { %6563 = vmatprep.subr.bf16.mxu0 %v1896_v46  ;;  %6966 = vmatprep.subr.msk.bf16.mxu1 %vm386_vm1, %v2253_v47  ;;  %v2263_v49 = vsel %vm386_vm1, %v2253_v47, 0 }
0x1291   :  { %6564 = vmatpush3.bf16.msra.mxu0 %v1896_v46 }
0x1292   :  { %6960 = vmatprep.subr.msk.bf16.mxu0 %vm494_vm3, %v5973_v31 }
0x1293   :  { %v2249_v48 = vpop.permute.xlu1 %2248  ;;  %v2251_v7 = vpop.permute.xlu0 %2250 }
0x1294   :  { %6601 = vmatprep.mubr.msk.bf16.mxu1 %vm386_vm1, %v2249_v48 }
0x1295   :  { %6600 = vmatpush3.bf16.xpose.msra.mxu1 %v2263_v49  ;;  %v7131_v4 = vpop.eup %7130 }
0x1296   :  { %v7133_v30 = vpop.eup %7132  ;;  %v1892_v57 = vmul.f32 %v7131_v4, %v7127_v14 }
0x1297   :  { %v1891_v19 = vmul.f32 %v7133_v30, %v7125_v11 }
0x1298   :  { %v1894_v56 = vpack.c.bf16 %v1892_v57, %v1892_v57 }
0x1299   :  { %v7135_v50 = vpop.eup %7134 }
0x129a   :  { %v1890_v54 = vmul.f32 %v7135_v50, %v7129_v18 }
0x129c   :  { %6602 = vmatmul.mubr.msk.bf16.vlgmr.msra.gmra.mxu1 %vm386_vm1, %v2251_v7  ;;  %v1893_v55 = vpack.c.bf16 %v1891_v19, %v1890_v54 }
0x129e   :  { %6565 = vmatprep.mubr.msk.bf16.mxu0 %vm447_vm2, %v1893_v55 }
0x129f   :  { %6566 = vmatmul.mubr.msk.bf16.vlgmr.msra.gmra.mxu0 %vm447_vm2, %v1894_v56 }
0x12c4   :  { %v2094_v58 = vpop.xlane.xlu0 %2093  ;;  %v2091_v59 = vpop.xlane.xlu1 %2090 }
0x12c5   :  { %v2099_v61 = vsub.f32 %v2079_v32, %v2094_v58  ;;  %v2098_v0 = vsub.f32 %v2076_v21, %v2091_v59  ;;  %v8091_v21 = vsel %vm494_vm3, %v5973_v31, 0 }
0x12c6   :  { %6570 = vmatpush3.bf16.msra.mxu0 %v8091_v21 }
0x12c7   :  { %v2103_v63 = vmul.f32 1.442695, %v2099_v61  ;;  %v2101_v9 = vmul.f32 1.442695, %v2098_v0 }
0x12c8   :  { %v2097_v1 = vpop.xlane.xlu0 %2096 }
0x12c9   :  { %7136 = vpow2.f32 %v2103_v63  ;;  %v2100_v6 = vsub.f32 %v2084_v36, %v2097_v1 }
0x12cb   :  { %v2105_v10 = vmul.f32 1.442695, %v2100_v6 }
0x12cd   :  { %7138 = vpow2.f32 %v2105_v10 }
0x12ce   :  { %7140 = vpow2.f32 %v2101_v9  ;;  %v5974_v9 = vld [vmem:[%s9012_s15 + $0x14] sm:$0xf] }
0x12cf   :  { %v8134_v10 = vsel %vm494_vm3, %v5974_v9, 0 }
0x12d6   :  { %v8077_v11 = vpop.eup %7136 }
0x12d7   :  { %v2110_v13 = vsel %vm447_vm2, %v8077_v11, 0.0 }
0x12d8   :  { %2111 = vadd.xlane.f32.xlu1 %v2110_v13 }
0x12da   :  { %v8081_v14 = vpop.eup %7138 }
0x12db   :  { %v2113_v15 = vsel %vm447_vm2, %v8081_v14, 0.0  ;;  %v7141_v18 = vpop.eup %7140 }
0x12dc   :  { %2114 = vadd.xlane.f32.xlu0 %v2113_v15  ;;  %v2107_v28 = vsel %vm447_vm2, %v7141_v18, 0.0 }
0x12e0   :  { %2108 = vadd.xlane.f32.xlu0 %v2107_v28 }
0x12e9   :  { %2126 = vrot.lane.b32.xlu1 %v7953_v37, %s9077_s9 }
0x12ed   :  { %2481 = vrot.lane.b32.xlu1 %v7993_v17, %s9078_s30 }
0x12f1   :  { %2479 = vrot.lane.b32.xlu1 %v7999_v38, %s9078_s30 }
0x12f5   :  { %2475 = vrot.lane.b32.xlu1 %v7985_v62, %s9079_s12 }
0x12f6   :  { %2124 = vrot.lane.b32.xlu0 %v7957_v43, %s9077_s9 }
0x12fa   :  { %2477 = vrot.lane.b32.xlu0 %v8009_v16, %s9079_s12 }
0x135c   :  { %v6603_v32 = vpop.f32.mrf.mxu1 }
0x135d   :  { %v2311_v41 = vadd.f32 %v8041_v27, %v6603_v32 }
0x135e   :  { %v2302_v36 = vpop.f32.mrf.mxu1 }
0x135f   :  { %v8107_v20 = vadd.f32 %v8028_v45, %v2302_v36  ;;  %v6567_v24 = vpop.f32.mrf.mxu0  ;;  %v2322_v4 = vsel %vm447_vm2, %v2311_v41, -inf }
0x1360   :  { %v6604_v3 = vpop.f32.mrf.mxu1  ;;  %v1958_v47 = vpack.c.bf16 %v6567_v24, %v6567_v24 }
0x1361   :  { %v1943_v17 = vpop.f32.mrf.mxu0  ;;  %v2112_v35 = vpop.xlane.xlu1 %2111  ;;  %v2316_v38 = vsel %vm447_vm2, %v8107_v20, -inf }
0x1362   :  { %v2305_v39 = vpop.f32.mrf.mxu1  ;;  %2317 = vmax.xlane.f32.xlu1 %v2316_v38 }
0x1363   :  { %v2306_v62 = vadd.f32 %v8035_v53, %v2305_v39  ;;  %v6568_v40 = vpop.f32.mrf.mxu0 }
0x1365   :  { %v2115_v16 = vpop.xlane.xlu0 %2114  ;;  %v1946_v42 = vpop.f32.mrf.mxu0  ;;  %v2319_v5 = vsel %vm447_vm2, %v2306_v62, -inf }
0x1366   :  { %v1957_v44 = vpack.c.bf16 %v1946_v42, %v1943_v17  ;;  %v2127_v46 = vpop.permute.xlu1 %2126  ;;  %2320 = vmax.xlane.f32.xlu0 %v2319_v5  ;;  %7142 = vrcp.f32 %v2115_v16 }
0x1367   :  { %6963 = vmatprep.subr.msk.bf16.mxu0 %vm494_vm3, %v2127_v46  ;;  %7144 = vrcp.f32 %v2112_v35  ;;  %v2136_v49 = vsel %vm494_vm3, %v2127_v46, 0 }
0x1368   :  { %6571 = vmatprep.mubr.msk.bf16.mxu0 %vm386_vm1, %v1957_v44 }
0x1369   :  { %6572 = vmatmul.mubr.msk.bf16.vlgmr.msra.gmra.mxu0 %vm386_vm1, %v1958_v47  ;;  %v2109_v48 = vpop.xlane.xlu0 %2108 }
0x136a   :  { %7146 = vrcp.f32 %v2109_v48  ;;  %6584 = vmatpush3.bf16.msra.mxu0 %v2136_v49  ;;  %v2482_v30 = vpop.permute.xlu1 %2481  ;;  %2323 = vmax.xlane.f32.xlu0 %v2322_v4 }
0x136b   :  { %6969 = vmatprep.subr.msk.bf16.mxu1 %vm386_vm1, %v2482_v30  ;;  %v2493_v50 = vsel %vm386_vm1, %v2482_v30, 0 }
0x136c   :  { %6620 = vmatpush3.bf16.xpose.msra.mxu1 %v2493_v50 }
0x136d   :  { %v2125_v57 = vpop.permute.xlu0 %2124 }
0x136e   :  { %v2480_v54 = vpop.permute.xlu1 %2479  ;;  %6585 = vmatprep.subr.bf16.mxu0 %v2125_v57 }
0x136f   :  { %6970 = vmatprep.subr.msk.bf16.mxu1 %vm386_vm1, %v2480_v54  ;;  %6586 = vmatpush3.bf16.msra.mxu0 %v2125_v57  ;;  %v2490_v7 = vsel %vm386_vm1, %v2480_v54, 0 }
0x1370   :  { %6964 = vmatprep.subr.msk.bf16.mxu0 %vm494_vm3, %v5974_v9 }
0x1371   :  { %v2478_v0 = vpop.permute.xlu0 %2477 }
0x1372   :  { %v2476_v19 = vpop.permute.xlu1 %2475 }
0x1373   :  { %6623 = vmatprep.mubr.msk.bf16.mxu1 %vm386_vm1, %v2476_v19  ;;  %v7143_v55 = vpop.eup %7142 }
0x1374   :  { %6622 = vmatpush3.bf16.xpose.msra.mxu1 %v2490_v7  ;;  %v7145_v56 = vpop.eup %7144  ;;  %v2121_v59 = vmul.f32 %v7143_v55, %v8081_v14 }
0x1375   :  { %v2120_v63 = vmul.f32 %v7145_v56, %v8077_v11 }
0x1376   :  { %v2123_v6 = vpack.c.bf16 %v2121_v59, %v2121_v59 }
0x1377   :  { %v7147_v58 = vpop.eup %7146 }
0x1378   :  { %v2119_v61 = vmul.f32 %v7147_v58, %v7141_v18 }
0x137a   :  { %v2122_v1 = vpack.c.bf16 %v2120_v63, %v2119_v61 }
0x137b   :  { %6624 = vmatmul.mubr.msk.bf16.vlgmr.msra.gmra.mxu1 %vm386_vm1, %v2478_v0 }
0x137c   :  { %6587 = vmatprep.mubr.msk.bf16.mxu0 %vm447_vm2, %v2122_v1 }
0x137d   :  { %6588 = vmatmul.mubr.msk.bf16.vlgmr.msra.gmra.mxu0 %vm447_vm2, %v2123_v6 }
0x137e   :  { %6592 = vmatpush3.bf16.msra.mxu0 %v8134_v10 }
0x13eb   :  { %v2318_v11 = vpop.xlane.xlu1 %2317 }
0x13ec   :  { %v2325_v15 = vsub.f32 %v8107_v20, %v2318_v11 }
0x13ee   :  { %v2328_v32 = vmul.f32 1.442695, %v2325_v15 }
0x13ef   :  { %v2321_v13 = vpop.xlane.xlu0 %2320 }
0x13f0   :  { %v2326_v14 = vsub.f32 %v2306_v62, %v2321_v13 }
0x13f2   :  { %v2330_v18 = vmul.f32 1.442695, %v2326_v14 }
0x13f3   :  { %v2324_v28 = vpop.xlane.xlu0 %2323 }
0x13f4   :  { %7148 = vpow2.f32 %v2330_v18  ;;  %v2327_v31 = vsub.f32 %v2311_v41, %v2324_v28 }
0x13f6   :  { %v2332_v36 = vmul.f32 1.442695, %v2327_v31 }
0x13f8   :  { %7150 = vpow2.f32 %v2332_v36 }
0x13f9   :  { %7152 = vpow2.f32 %v2328_v32 }
0x1401   :  { %v7149_v24 = vpop.eup %7148 }
0x1402   :  { %v2337_v3 = vsel %vm447_vm2, %v7149_v24, 0.0 }
0x1403   :  { %2338 = vadd.xlane.f32.xlu1 %v2337_v3 }
0x1405   :  { %v7151_v17 = vpop.eup %7150 }
0x1406   :  { %v2340_v35 = vsel %vm447_vm2, %v7151_v17, 0.0  ;;  %v7153_v38 = vpop.eup %7152 }
0x1407   :  { %2341 = vadd.xlane.f32.xlu0 %v2340_v35  ;;  %v2334_v39 = vsel %vm447_vm2, %v7153_v38, 0.0 }
0x140b   :  { %2335 = vadd.xlane.f32.xlu0 %v2334_v39 }
0x1414   :  { %2353 = vrot.lane.b32.xlu1 %v7953_v37, %s9080_s23 }
0x1421   :  { %2351 = vrot.lane.b32.xlu0 %v7957_v43, %s9080_s23 }
0x1429   :  { %v8145_v20 = vpop.f32.mrf.mxu0 }
0x142b   :  { %v8147_v62 = vpop.f32.mrf.mxu0 }
0x142d   :  { %v6574_v40 = vpop.f32.mrf.mxu0 }
0x142f   :  { %v8149_v41 = vpop.f32.mrf.mxu0 }
0x143b   :  { %v6625_v16 = vpop.f32.mrf.mxu1 }
0x143c   :  { %v2538_v48 = vadd.f32 %v8041_v27, %v6625_v16 }
0x143d   :  { %v2529_v42 = vpop.f32.mrf.mxu1  ;;  %v6589_v5 = vpop.f32.mrf.mxu0 }
0x143e   :  { %v2530_v44 = vadd.f32 %v8028_v45, %v2529_v42  ;;  %v2549_v19 = vsel %vm447_vm2, %v2538_v48, -inf  ;;  %v2187_v55 = vpack.c.bf16 %v6589_v5, %v6589_v5  ;;  %v5975_v42 = vld [vmem:[%s9012_s15 + $0x18] sm:$0xf] }
0x143f   :  { %v6626_v46 = vpop.f32.mrf.mxu1  ;;  %v2172_v47 = vpop.f32.mrf.mxu0  ;;  %v8171_v5 = vsel %vm494_vm3, %v5975_v42, 0 }
0x1440   :  { %v2543_v49 = vsel %vm447_vm2, %v2530_v44, -inf }
0x1441   :  { %v2532_v4 = vpop.f32.mrf.mxu1  ;;  %2544 = vmax.xlane.f32.xlu1 %v2543_v49  ;;  %v6590_v30 = vpop.f32.mrf.mxu0 }
0x1442   :  { %v2533_v50 = vadd.f32 %v8035_v53, %v2532_v4 }
0x1443   :  { %v2175_v57 = vpop.f32.mrf.mxu0 }
0x1444   :  { %v2186_v54 = vpack.c.bf16 %v2175_v57, %v2172_v47  ;;  %v2546_v7 = vsel %vm447_vm2, %v2533_v50, -inf  ;;  %v2016_v47 = vadd.f32 %v8147_v62, %v7911_v51 }
0x1445   :  { %2550 = vmax.xlane.f32.xlu1 %v2549_v19  ;;  %2547 = vmax.xlane.f32.xlu0 %v2546_v7 }
0x1446   :  { %6593 = vmatprep.mubr.msk.bf16.mxu0 %vm386_vm1, %v2186_v54 }
0x1447   :  { %6594 = vmatmul.mubr.msk.bf16.vlgmr.msra.gmra.mxu0 %vm386_vm1, %v2187_v55 }
0x148c   :  { %v2339_v45 = vpop.xlane.xlu1 %2338 }
0x1490   :  { %v2342_v27 = vpop.xlane.xlu0 %2341  ;;  %v2354_v56 = vpop.permute.xlu1 %2353 }
0x1491   :  { %6967 = vmatprep.subr.msk.bf16.mxu0 %vm494_vm3, %v2354_v56  ;;  %v2363_v53 = vsel %vm494_vm3, %v2354_v56, 0  ;;  %7154 = vrcp.f32 %v2342_v27 }
0x1492   :  { %6606 = vmatpush3.bf16.msra.mxu0 %v2363_v53  ;;  %7156 = vrcp.f32 %v2339_v45 }
0x1494   :  { %v2336_v58 = vpop.xlane.xlu0 %2335 }
0x1495   :  { %7158 = vrcp.f32 %v2336_v58 }
0x1498   :  { %v2352_v59 = vpop.permute.xlu0 %2351 }
0x1499   :  { %6607 = vmatprep.subr.bf16.mxu0 %v2352_v59 }
0x149a   :  { %6608 = vmatpush3.bf16.msra.mxu0 %v2352_v59 }
0x149b   :  { %6968 = vmatprep.subr.msk.bf16.mxu0 %vm494_vm3, %v5975_v42 }
0x149e   :  { %v7155_v61 = vpop.eup %7154 }
0x149f   :  { %v7157_v63 = vpop.eup %7156  ;;  %v2348_v1 = vmul.f32 %v7155_v61, %v7151_v17 }
0x14a0   :  { %v2347_v9 = vmul.f32 %v7157_v63, %v7149_v24 }
0x14a1   :  { %v2350_v13 = vpack.c.bf16 %v2348_v1, %v2348_v1  ;;  %v5976_v1 = vld [vmem:[%s9012_s15 + $0x1c] sm:$0xf] }
0x14a2   :  { %v7159_v0 = vpop.eup %7158 }
0x14a3   :  { %v2346_v6 = vmul.f32 %v7159_v0, %v7153_v38 }
0x14a5   :  { %v2349_v11 = vpack.c.bf16 %v2347_v9, %v2346_v6  ;;  %v8193_v6 = vsel %vm494_vm3, %v5976_v1, 0 }
0x14a7   :  { %6609 = vmatprep.mubr.msk.bf16.mxu0 %vm447_vm2, %v2349_v11 }
0x14a8   :  { %6610 = vmatmul.mubr.msk.bf16.vlgmr.msra.gmra.mxu0 %vm447_vm2, %v2350_v13 }
0x14a9   :  { %6614 = vmatpush3.bf16.msra.mxu0 %v8171_v5 }
0x14ca   :  { %v2545_v14 = vpop.xlane.xlu1 %2544 }
0x14cb   :  { %v2552_v15 = vsub.f32 %v2530_v44, %v2545_v14  ;;  %v2018_v44 = vadd.f32 %v8145_v20, %v7916_v2  ;;  %v2017_v14 = vadd.f32 %v8149_v41, %v7919_v33 }
0x14cd   :  { %v2555_v35 = vmul.f32 1.442695, %v2552_v15 }
0x14ce   :  { %v2548_v18 = vpop.xlane.xlu0 %2547  ;;  %v2551_v28 = vpop.xlane.xlu1 %2550 }
0x14cf   :  { %v2553_v31 = vsub.f32 %v2533_v50, %v2548_v18  ;;  %v2554_v32 = vsub.f32 %v2538_v48, %v2551_v28 }
0x14d1   :  { %v2557_v36 = vmul.f32 1.442695, %v2553_v31  ;;  %v2559_v3 = vmul.f32 1.442695, %v2554_v32 }
0x14d3   :  { %7160 = vpow2.f32 %v2557_v36 }
0x14d4   :  { %7162 = vpow2.f32 %v2559_v3 }
0x14d5   :  { %7164 = vpow2.f32 %v2555_v35 }
0x14e0   :  { %v7161_v17 = vpop.eup %7160 }
0x14e1   :  { %v7163_v24 = vpop.eup %7162  ;;  %v2564_v38 = vsel %vm447_vm2, %v7161_v17, 0.0 }
0x14e2   :  { %2565 = vadd.xlane.f32.xlu1 %v2564_v38  ;;  %v2567_v39 = vsel %vm447_vm2, %v7163_v24, 0.0  ;;  %v7165_v40 = vpop.eup %7164 }
0x14e3   :  { %2568 = vadd.xlane.f32.xlu0 %v2567_v39  ;;  %v2561_v16 = vsel %vm447_vm2, %v7165_v40, 0.0 }
0x14e7   :  { %2562 = vadd.xlane.f32.xlu0 %v2561_v16 }
0x14f3   :  { %2580 = vrot.lane.b32.xlu1 %v7953_v37, %s9081_s14 }
0x14fd   :  { %2578 = vrot.lane.b32.xlu0 %v7957_v43, %s9081_s14 }
0x1507   :  { %v6595_v46 = vpop.f32.mrf.mxu0 }
0x1508   :  { %v2247_v48 = vadd.f32 %v6595_v46, %v2018_v44 }
0x1509   :  { %v2231_v49 = vpop.f32.mrf.mxu0 }
0x150a   :  { %v2245_v4 = vadd.f32 %v2231_v49, %v2016_v47 }
0x150b   :  { %v6596_v30 = vpop.f32.mrf.mxu0 }
0x150d   :  { %v2234_v50 = vpop.f32.mrf.mxu0 }
0x150e   :  { %v2246_v28 = vadd.f32 %v2234_v50, %v2017_v14  ;;  %v7032_v50 = vld [vmem:[%s9013_s16 + $0x18] sm:$0xff]  }
0x150f   :  { %6641 = vmatprep.subr.bf16.mxu1 %v7032_v50  ;;  %v7034_v14 = vld [vmem:[%s9015_s17 + $0x38] sm:$0xff]  }
0x1510   :  { %6642 = vmatpush3.bf16.msra.mxu1 %v7032_v50 }
0x1568   :  { %v6611_v57 = vpop.f32.mrf.mxu0 }
0x1569   :  { %v2414_v2 = vpack.c.bf16 %v6611_v57, %v6611_v57  ;;  %v7033_v57 = vld [vmem:[%s9013_s16 + $0x10] sm:$0xff]  }
0x156a   :  { %v2399_v54 = vpop.f32.mrf.mxu0  ;;  %6643 = vmatprep.subr.bf16.mxu1 %v7033_v57 }
0x156b   :  { %v2566_v19 = vpop.xlane.xlu1 %2565  ;;  %6644 = vmatpush3.bf16.msra.mxu1 %v7033_v57 }
0x156c   :  { %v2569_v7 = vpop.xlane.xlu0 %2568  ;;  %v6612_v37 = vpop.f32.mrf.mxu0 }
0x156d   :  { %7166 = vrcp.f32 %v2569_v7 }
0x156e   :  { %v2402_v55 = vpop.f32.mrf.mxu0  ;;  %7168 = vrcp.f32 %v2566_v19 }
0x156f   :  { %v2413_v43 = vpack.c.bf16 %v2402_v55, %v2399_v54  ;;  %v2581_v45 = vpop.permute.xlu1 %2580 }
0x1570   :  { %v2563_v20 = vpop.xlane.xlu0 %2562  ;;  %6971 = vmatprep.subr.msk.bf16.mxu0 %vm494_vm3, %v2581_v45  ;;  %v2590_v51 = vsel %vm494_vm3, %v2581_v45, 0 }
0x1571   :  { %7170 = vrcp.f32 %v2563_v20  ;;  %6615 = vmatprep.mubr.msk.bf16.mxu0 %vm386_vm1, %v2413_v43 }
0x1572   :  { %6616 = vmatmul.mubr.msk.bf16.vlgmr.msra.gmra.mxu0 %vm386_vm1, %v2414_v2 }
0x1573   :  { %6628 = vmatpush3.bf16.msra.mxu0 %v2590_v51  ;;  %v6001_v51 = vld [vmem:[%s9014_s11 + $0x1] sm:$0x1] }
0x1574   :  { %v2579_v62 = vpop.permute.xlu0 %2578 }
0x1575   :  { %6629 = vmatprep.subr.bf16.mxu0 %v2579_v62 }
0x1577   :  { %6630 = vmatpush3.bf16.msra.mxu0 %v2579_v62  ;;  %v2728_v62 = vunpack.c.l.bf16 %v6001_v51 }
0x1578   :  { %6972 = vmatprep.subr.msk.bf16.mxu0 %vm494_vm3, %v5976_v1 }
0x157a   :  { %v7167_v27 = vpop.eup %7166 }
0x157b   :  { %v7169_v56 = vpop.eup %7168  ;;  %v2575_v58 = vmul.f32 %v7167_v27, %v7163_v24 }
0x157c   :  { %v2574_v61 = vmul.f32 %v7169_v56, %v7161_v17 }
0x157d   :  { %v2577_v0 = vpack.c.bf16 %v2575_v58, %v2575_v58  ;;  %v8226_v58 = vrot.slane %v2728_v62, %v7560_v26 }
0x157e   :  { %v7171_v53 = vpop.eup %7170 }
0x157f   :  { %v2573_v59 = vmul.f32 %v7171_v53, %v7165_v40 }
0x1581   :  { %v2576_v63 = vpack.c.bf16 %v2574_v61, %v2573_v59 }
0x1583   :  { %6631 = vmatprep.mubr.msk.bf16.mxu0 %vm447_vm2, %v2576_v63 }
0x1584   :  { %6632 = vmatmul.mubr.msk.bf16.vlgmr.msra.gmra.mxu0 %vm447_vm2, %v2577_v0 }
0x1585   :  { %6636 = vmatpush3.bf16.msra.mxu0 %v8193_v6 }
0x1586   :  { %6649 = vmatprep.subr.bf16.mxu0 %v7034_v14 }
0x1632   :  { %v6617_v9 = vpop.f32.mrf.mxu0 }
0x1633   :  { %v2474_v11 = vadd.f32 %v6617_v9, %v2247_v48 }
0x1634   :  { %v2458_v13 = vpop.f32.mrf.mxu0 }
0x1635   :  { %v2472_v15 = vadd.f32 %v2458_v13, %v2245_v4 }
0x1636   :  { %v6618_v18 = vpop.f32.mrf.mxu0 }
0x1637   :  { %v7036_v18 = vld [vmem:[%s9015_s17 + $0x28] sm:$0xff]  }
0x1638   :  { %v2461_v31 = vpop.f32.mrf.mxu0 }
0x1639   :  { %v2473_v32 = vadd.f32 %v2461_v31, %v2246_v28  ;;  %v7037_v28 = vld [vmem:[%s9015_s17 + $0x20] sm:$0xff]  }
0x1644   :  { %v6633_v36 = vpop.f32.mrf.mxu0 }
0x1645   :  { %v2641_v38 = vpack.c.bf16 %v6633_v36, %v6633_v36 }
0x1646   :  { %v2626_v3 = vpop.f32.mrf.mxu0 }
0x1648   :  { %v6634_v35 = vpop.f32.mrf.mxu0 }
0x164a   :  { %v2629_v17 = vpop.f32.mrf.mxu0 }
0x164b   :  { %v2640_v24 = vpack.c.bf16 %v2629_v17, %v2626_v3 }
0x164d   :  { %6637 = vmatprep.mubr.msk.bf16.mxu0 %vm386_vm1, %v2640_v24 }
0x164e   :  { %6638 = vmatmul.mubr.msk.bf16.vlgmr.msra.gmra.mxu0 %vm386_vm1, %v2641_v38 }
0x164f   :  { %6650 = vmatpush3.bf16.msra.mxu0 %v7034_v14 }
0x170e   :  { %v6639_v39 = vpop.f32.mrf.mxu0 }
0x170f   :  { %v8200_v16 = vadd.f32 %v6639_v39, %v2474_v11 }
0x1710   :  { %v2685_v40 = vpop.f32.mrf.mxu0 }
0x1711   :  { %v8202_v33 = vadd.f32 %v2685_v40, %v2472_v15  ;;  %v2706_v48 = vmul.f32 %v8200_v16, %v8200_v16  ;;  %v7035_v15 = vld [vmem:[%s9015_s17 + $0x30] sm:$0xff]  }
0x1712   :  { %v6640_v41 = vpop.f32.mrf.mxu0  ;;  %6651 = vmatprep.subr.bf16.mxu0 %v7035_v15 }
0x1713   :  { %v2704_v42 = vmul.f32 %v8202_v33, %v8202_v33  ;;  %v2713_v4 = vsel %vm96_vm0, %v2706_v48, 0.0  ;;  %6652 = vmatpush3.bf16.msra.mxu0 %v7035_v15 }
0x1714   :  { %v2688_v44 = vpop.f32.mrf.mxu0  ;;  %6653 = vmatprep.subr.bf16.mxu0 %v7036_v18 }
0x1715   :  { %v8206_v46 = vadd.f32 %v2688_v44, %v2473_v32  ;;  %v2707_v47 = vsel %vm96_vm0, %v2704_v42, 0.0  ;;  %v8250_v32 = vld [vmem:[%s9069_s10 + $0x8] sm:$0xff]  }
0x1716   :  { %2708 = vadd.xlane.f32.xlu1 %v2707_v47 }
0x1717   :  { %v2705_v49 = vmul.f32 %v8206_v46, %v8206_v46  ;;  %6654 = vmatpush3.bf16.msra.mxu0 %v7036_v18 }
0x1718   :  { %6655 = vmatprep.subr.bf16.mxu0 %v7037_v28 }
0x1719   :  { %v2710_v30 = vsel %vm96_vm0, %v2705_v49, 0.0 }
0x171a   :  { %2714 = vadd.xlane.f32.xlu1 %v2713_v4  ;;  %2711 = vadd.xlane.f32.xlu0 %v2710_v30 }
0x171b   :  { %6656 = vmatpush3.bf16.msra.mxu0 %v7037_v28 }
0x171c   :  { %6677 = vmatprep.subr.bf16.mxu0 %v8250_v32 }
0x179f   :  { %v2709_v54 = vpop.xlane.xlu1 %2708 }
0x17a0   :  { %v2716_v19 = vmul.f32 0.03125, %v2709_v54 }
0x17a2   :  { %v2719_v7 = vadd.f32 1e-06, %v2716_v19 }
0x17a3   :  { %v2715_v37 = vpop.xlane.xlu1 %2714  ;;  %v2712_v55 = vpop.xlane.xlu0 %2711 }
0x17a4   :  { %v2718_v43 = vmul.f32 0.03125, %v2715_v37  ;;  %v2717_v45 = vmul.f32 0.03125, %v2712_v55  ;;  %7172 = vrsqrt.f32 %v2719_v7 }
0x17a6   :  { %v2721_v2 = vadd.f32 1e-06, %v2718_v43  ;;  %v2720_v20 = vadd.f32 1e-06, %v2717_v45 }
0x17a8   :  { %7174 = vrsqrt.f32 %v2721_v2 }
0x17a9   :  { %7176 = vrsqrt.f32 %v2720_v20  ;;  %v8262_v20 = vld [vmem:[%s9069_s10] sm:$0xff]  }
0x17b1   :  { %v7173_v27 = vpop.eup %7172 }
0x17b2   :  { %v2725_v53 = vmul.f32 %v7173_v27, %v8202_v33 }
0x17b4   :  { %v2733_v1 = vmul.f32 %v8226_v58, %v2725_v53 }
0x17b5   :  { %v7175_v56 = vpop.eup %7174 }
0x17b6   :  { %v7177_v59 = vpop.eup %7176  ;;  %v2727_v61 = vmul.f32 %v7175_v56, %v8200_v16 }
0x17b7   :  { %v2726_v63 = vmul.f32 %v7177_v59, %v8206_v46 }
0x17b8   :  { %v2735_v0 = vmul.f32 %v8226_v58, %v2727_v61 }
0x17b9   :  { %v2734_v9 = vmul.f32 %v8226_v58, %v2726_v63 }
0x17ba   :  { %v2737_v11 = vpack.c.bf16 %v2735_v0, %v2735_v0 }
0x17bb   :  { %v2736_v13 = vpack.c.bf16 %v2734_v9, %v2733_v1 }
0x17bd   :  { %6645 = vmatprep.mubr.msk.bf16.mxu1 %vm96_vm0, %v2736_v13 }
0x17be   :  { %6646 = vmatmul.mubr.msk.bf16.vlgmr.msra.gmra.mxu1 %vm96_vm0, %v2737_v11 }
0x187e   :  { %v6647_v31 = vpop.f32.mrf.mxu1 }
0x187f   :  { %v6012_v38 = vmul.f32 -1.442695, %v6647_v31 }
0x1880   :  { %v2795_v36 = vpop.f32.mrf.mxu1 }
0x1881   :  { %2833 = vrot.lane.b32.xlu0 %v2795_v36, %s9082_s22  ;;  %v6010_v17 = vmul.f32 -1.442695, %v2795_v36 }
0x1882   :  { %v6648_v3 = vpop.f32.mrf.mxu1 }
0x1883   :  { %7178 = vpow2.f32 %v6010_v17 }
0x1884   :  { %v2798_v35 = vpop.f32.mrf.mxu1 }
0x1885   :  { %2835 = vrot.lane.b32.xlu1 %v2798_v35, %s9082_s22  ;;  %v6011_v24 = vmul.f32 -1.442695, %v2798_v35 }
0x1887   :  { %7180 = vpow2.f32 %v6011_v24 }
0x1888   :  { %7182 = vpow2.f32 %v6012_v38 }
0x1889   :  { %2837 = vrot.lane.b32.xlu1 %v6647_v31, %s9082_s22 }
0x1890   :  { %v7179_v39 = vpop.eup %7178 }
0x1891   :  { %v2818_v41 = vadd.f32 1.0, %v7179_v39 }
0x1893   :  { %7184 = vrcp.f32 %v2818_v41 }
0x1894   :  { %v7181_v40 = vpop.eup %7180 }
0x1895   :  { %v2819_v42 = vadd.f32 1.0, %v7181_v40  ;;  %v7183_v44 = vpop.eup %7182 }
0x1896   :  { %v2820_v47 = vadd.f32 1.0, %v7183_v44 }
0x1897   :  { %7186 = vrcp.f32 %v2819_v42 }
0x1898   :  { %7188 = vrcp.f32 %v2820_v47 }
0x18a0   :  { %v7185_v48 = vpop.eup %7184 }
0x18a1   :  { %v2827_v30 = vmul.f32 %v7185_v48, %v2795_v36 }
0x18a4   :  { %v7187_v49 = vpop.eup %7186 }
0x18a5   :  { %v2828_v50 = vmul.f32 %v7187_v49, %v2798_v35  ;;  %v7189_v57 = vpop.eup %7188  ;;  %v2937_v35 = vld [vmem:[%s9017_s18] sm:$0x1] }
0x18a6   :  { %v2829_v37 = vmul.f32 %v7189_v57, %v6647_v31  ;;  %v2962_v17 = vunpack.c.l.bf16 %v2937_v35  ;;  %v2977_v57 = vld [vmem:[%s9018_s1 + $0x8] sm:$0xf] }
0x18a8   :  { %v8280_v24 = vrot.slane %v2962_v17, %v7560_v26 }
0x18f3   :  { %v2834_v4 = vpop.permute.xlu0 %2833 }
0x18f4   :  { %v2842_v19 = vmul.f32 %v2834_v4, %v2827_v30 }
0x18f7   :  { %v2836_v54 = vpop.permute.xlu1 %2835 }
0x18f8   :  { %v2843_v7 = vmul.f32 %v2836_v54, %v2828_v50  ;;  %v7039_v50 = vld [vmem:[%s9016_s2 + $0x8] ss:$0 sps:$4 sm:$0xff]   ;;  %v6122_v54 = vld [vmem:[%s9018_s1] sm:$0xff]  }
0x18fa   :  { %v2854_v55 = vpack.c.bf16 %v2843_v7, %v2842_v19  ;;  %v2980_v19 = vunpack.c.l.bf16 %v2977_v57  ;;  %v6123_v7 = vunpack.c.l.bf16 %v6122_v54 }
0x18fb   :  { %v2838_v43 = vpop.permute.xlu1 %2837 }
0x18fc   :  { %v2844_v45 = vmul.f32 %v2838_v43, %v2829_v37  ;;  %6657 = vmatprep.mubr.msk.bf16.mxu0 %vm1466_vm4, %v2854_v55 }
0x18fe   :  { %v2855_v2 = vpack.c.bf16 %v2844_v45, %v2844_v45 }
0x1900   :  { %6658 = vmatmul.mubr.msk.bf16.vlgmr.msra.gmra.mxu0 %vm1466_vm4, %v2855_v2  ;;  %v6124_v2 = vunpack.c.h.bf16 %v6122_v54  ;;  %v3048_v54 = vld [vmem:[%s9020_s6 + $0x10] sm:$0xff] }
0x1901   :  { %6678 = vmatpush3.bf16.msra.mxu0 %v8250_v32 }
0x1902   :  { %6679 = vmatprep.subr.bf16.mxu0 %v8262_v20 }
0x1905   :  { %6680 = vmatpush3.bf16.msra.mxu0 %v8262_v20 }
0x19c0   :  { %v6659_v51 = vpop.f32.mrf.mxu0 }
0x19c1   :  { %v2936_v62 = vadd.f32 %v6659_v51, %v8200_v16  ;;  %v7038_v16 = vld [vmem:[%s9016_s2] sm:$0xff]  }
0x19c2   :  { %v2920_v27 = vpop.f32.mrf.mxu0  ;;  %6665 = vmatprep.mubr.msk.bf16.mxu1 %vm447_vm2, %v7038_v16 }
0x19c3   :  { %v2940_v56 = vmul.f32 %v2936_v62, %v2936_v62  ;;  %v2934_v53 = vadd.f32 %v2920_v27, %v8202_v33 }
0x19c4   :  { %v6660_v59 = vpop.f32.mrf.mxu0 }
0x19c5   :  { %v2938_v61 = vmul.f32 %v2934_v53, %v2934_v53  ;;  %v2947_v63 = vsel %vm96_vm0, %v2940_v56, 0.0 }
0x19c6   :  { %2948 = vadd.xlane.f32.xlu1 %v2947_v63  ;;  %v2923_v0 = vpop.f32.mrf.mxu0 }
0x19c7   :  { %v2935_v1 = vadd.f32 %v2923_v0, %v8206_v46  ;;  %v2941_v9 = vsel %vm96_vm0, %v2938_v61, 0.0 }
0x19c8   :  { %2942 = vadd.xlane.f32.xlu0 %v2941_v9  ;;  %v7041_v9 = vld [vmem:[%s9019_s13] sm:$0xff]  }
0x19c9   :  { %v2939_v11 = vmul.f32 %v2935_v1, %v2935_v1 }
0x19cb   :  { %v2944_v13 = vsel %vm96_vm0, %v2939_v11, 0.0 }
0x19cc   :  { %2945 = vadd.xlane.f32.xlu0 %v2944_v13 }
0x1a4f   :  { %v2949_v33 = vpop.xlane.xlu1 %2948 }
0x1a50   :  { %v2952_v14 = vmul.f32 0.03125, %v2949_v33 }
0x1a51   :  { %v2943_v15 = vpop.xlane.xlu0 %2942 }
0x1a52   :  { %v2955_v18 = vadd.f32 1e-06, %v2952_v14  ;;  %v2950_v28 = vmul.f32 0.03125, %v2943_v15 }
0x1a54   :  { %7190 = vrsqrt.f32 %v2955_v18  ;;  %v2953_v46 = vadd.f32 1e-06, %v2950_v28 }
0x1a55   :  { %v2946_v31 = vpop.xlane.xlu0 %2945 }
0x1a56   :  { %7192 = vrsqrt.f32 %v2953_v46  ;;  %v2951_v36 = vmul.f32 0.03125, %v2946_v31 }
0x1a58   :  { %v2954_v3 = vadd.f32 1e-06, %v2951_v36 }
0x1a5a   :  { %7194 = vrsqrt.f32 %v2954_v3 }
0x1a61   :  { %v7191_v38 = vpop.eup %7190 }
0x1a62   :  { %v2961_v39 = vmul.f32 %v7191_v38, %v2936_v62 }
0x1a63   :  { %v7193_v40 = vpop.eup %7192 }
0x1a64   :  { %v2969_v41 = vmul.f32 %v8280_v24, %v2961_v39  ;;  %v2959_v44 = vmul.f32 %v7193_v40, %v2934_v53 }
0x1a66   :  { %v2974_v42 = vpack.c.bf16 %v2969_v41, %v2969_v41  ;;  %v2967_v4 = vmul.f32 %v8280_v24, %v2959_v44 }
0x1a67   :  { %v7195_v47 = vpop.eup %7194 }
0x1a68   :  { %6973 = vmatprep.subr.msk.bf16.mxu1 %vm494_vm3, %v2974_v42  ;;  %v2996_v48 = vsel %vm494_vm3, %v2974_v42, 0  ;;  %v2960_v49 = vmul.f32 %v7195_v47, %v2935_v1  ;;  %v7040_v1 = vld [vmem:[%s9019_s13 + $0x8] sm:$0xff]  }
0x1a69   :  { %6662 = vmatpush3.bf16.msra.mxu1 %v2996_v48  ;;  %v7371_v48 = vld [vmem:[%s9070_s28] ss:$0 sm:$0xff] }
0x1a6a   :  { %v2968_v30 = vmul.f32 %v8280_v24, %v2960_v49 }
0x1a6c   :  { %v2973_v26 = vpack.c.bf16 %v2968_v30, %v2967_v4 }
0x1a6e   :  { %6663 = vmatprep.subr.bf16.mxu1 %v2973_v26 }
0x1a6f   :  { %6664 = vmatpush3.bf16.msra.mxu1 %v2973_v26 }
0x1a70   :  { %6669 = vmatprep.subr.bf16.mxu1 %v7040_v1 }
0x1a72   :  { %6666 = vmatmul.mubr.msk.bf16.vlgmr.msra.gmra.mxu1 %vm447_vm2, %v7039_v50 }
0x1a73   :  { %6670 = vmatpush3.bf16.msra.mxu1 %v7040_v1 }
0x1a74   :  { %6671 = vmatprep.subr.bf16.mxu1 %v7041_v9 }
0x1a77   :  { %6672 = vmatpush3.bf16.msra.mxu1 %v7041_v9 }
0x1a78   :  { %6685 = vmatprep.subr.bf16.mxu1 %v8250_v32 }
0x1b32   :  { %v6667_v37 = vpop.f32.mrf.mxu1 }
0x1b33   :  { %v8297_v43 = vadd.f32 %v6667_v37, %v2980_v19 }
0x1b34   :  { %v3032_v55 = vpop.f32.mrf.mxu1 }
0x1b35   :  { %v8299_v45 = vadd.f32 %v6123_v7, %v3032_v55  ;;  %v3061_v59 = vmul.f32 %v8297_v43, %v8297_v43  ;;  %v3049_v55 = vld [vmem:[%s9021_s7] sm:$0xff] }
0x1b36   :  { %v6668_v51 = vpop.f32.mrf.mxu1 }
0x1b37   :  { %v3059_v62 = vmul.f32 %v8299_v45, %v8299_v45  ;;  %v3068_v0 = vsel %vm96_vm0, %v3061_v59, 0.0  ;;  %v3046_v51 = vld [vmem:[%s9020_s6] sm:$0xff] }
0x1b38   :  { %v3035_v27 = vpop.f32.mrf.mxu1 }
0x1b39   :  { %v8303_v56 = vadd.f32 %v6124_v2, %v3035_v27  ;;  %v3062_v53 = vsel %vm96_vm0, %v3059_v62, 0.0  ;;  %v3050_v27 = vld [vmem:[%s9021_s7 + $0x8] sm:$0xff] }
0x1b3a   :  { %3063 = vadd.xlane.f32.xlu0 %v3062_v53 }
0x1b3b   :  { %v3060_v61 = vmul.f32 %v8303_v56, %v8303_v56 }
0x1b3d   :  { %v3065_v63 = vsel %vm96_vm0, %v3060_v61, 0.0 }
0x1b3e   :  { %3066 = vadd.xlane.f32.xlu1 %v3065_v63  ;;  %3069 = vadd.xlane.f32.xlu0 %v3068_v0 }
0x1bc3   :  { %v3064_v11 = vpop.xlane.xlu0 %3063 }
0x1bc4   :  { %v3071_v13 = vmul.f32 0.03125, %v3064_v11 }
0x1bc6   :  { %v3074_v16 = vadd.f32 1e-06, %v3071_v13  ;;  %v3051_v13 = vld [vmem:[%s9021_s7 + $0x10] sm:$0xff] }
0x1bc7   :  { %v3067_v33 = vpop.xlane.xlu1 %3066  ;;  %v3070_v14 = vpop.xlane.xlu0 %3069 }
0x1bc8   :  { %7196 = vrsqrt.f32 %v3074_v16  ;;  %v3072_v15 = vmul.f32 0.03125, %v3067_v33  ;;  %v3073_v18 = vmul.f32 0.03125, %v3070_v14 }
0x1bca   :  { %v3075_v28 = vadd.f32 1e-06, %v3072_v15  ;;  %v3076_v46 = vadd.f32 1e-06, %v3073_v18 }
0x1bcc   :  { %7198 = vrsqrt.f32 %v3075_v28 }
0x1bcd   :  { %7200 = vrsqrt.f32 %v3076_v46 }
0x1bd5   :  { %v7197_v31 = vpop.eup %7196 }
0x1bd6   :  { %v3080_v36 = vmul.f32 %v7197_v31, %v8299_v45 }
0x1bd8   :  { %v3083_v39 = vmul.f32 %v3080_v36, %v7563_v29 }
0x1bd9   :  { %v7199_v3 = vpop.eup %7198 }
0x1bda   :  { %v7201_v35 = vpop.eup %7200  ;;  %v3081_v17 = vmul.f32 %v7199_v3, %v8303_v56 }
0x1bdb   :  { %v3082_v38 = vmul.f32 %v7201_v35, %v8297_v43 }
0x1bdc   :  { %v3084_v40 = vmul.f32 %v3081_v17, %v7563_v29 }
0x1bdd   :  { %v3085_v41 = vmul.f32 %v3082_v38, %v7563_v29 }
0x1bde   :  { %v3086_v42 = vpack.c.bf16 %v3084_v40, %v3083_v39 }
0x1bdf   :  { %v3087_v44 = vpack.c.bf16 %v3085_v41, %v3085_v41 }
0x1be0   :  { %6673 = vmatprep.mubr.msk.bf16.mxu1 %vm96_vm0, %v3086_v42 }
0x1be1   :  { %6674 = vmatmul.mubr.msk.bf16.vlgmr.msra.gmra.mxu1 %vm96_vm0, %v3087_v44 }
0x1be2   :  { %6686 = vmatpush3.bf16.msra.mxu1 %v8250_v32 }
0x1be3   :  { %6687 = vmatprep.subr.bf16.mxu1 %v8262_v20 }
0x1be6   :  { %6688 = vmatpush3.bf16.msra.mxu1 %v8262_v20  ;;  %v3047_v20 = vld [vmem:[%s9020_s6 + $0x8] sm:$0xff] }
0x1ca1   :  { %v6675_v47 = vpop.f32.mrf.mxu1 }
0x1ca2   :  { %v8333_v49 = vadd.f32 %v7371_v48, %v6675_v47 }
0x1ca3   :  { %v3140_v29 = vpop.f32.mrf.mxu1 }
0x1ca4   :  { %v8337_v4 = vpack.c.bf16 %v8333_v49, %v8333_v49  ;;  %v3141_v26 = vadd.f32 %v7371_v48, %v3140_v29 }
0x1ca5   :  { %v6676_v30 = vpop.f32.mrf.mxu1 }
0x1ca6   :  { %3238 = vrot.lane.b32.xlu0 %v8337_v4, %s9083_s20  ;;  %v3154_v61 = vmul.f32 %v3141_v26, %v3046_v51 }
0x1ca7   :  { %v3143_v32 = vpop.f32.mrf.mxu1 }
0x1ca8   :  { %v3144_v50 = vadd.f32 %v7371_v48, %v3143_v32  ;;  %v3156_v32 = vmul.f32 %v8333_v49, %v3048_v54 }
0x1caa   :  { %v8344_v57 = vpack.c.bf16 %v3144_v50, %v3141_v26  ;;  %3224 = vrot.lane.b32.xlu0 %v3047_v20, %s9072_s26  ;;  %v3155_v63 = vmul.f32 %v3144_v50, %v3047_v20 }
0x1cac   :  { %3236 = vrot.lane.b32.xlu1 %v8344_v57, %s9083_s20  ;;  %6681 = vmatprep.mubr.msk.bf16.mxu0 %vm96_vm0, %v8344_v57 }
0x1cad   :  { %6682 = vmatmul.mubr.msk.bf16.vlgmr.msra.gmra.mxu0 %vm96_vm0, %v8337_v4 }
0x1cb0   :  { %3226 = vrot.lane.b32.xlu1 %v3048_v54, %s9072_s26 }
0x1d18   :  { %v3239_v7 = vpop.permute.xlu0 %3238 }
0x1d1c   :  { %v8383_v17 = vpop.permute.xlu0 %3224 }
0x1d1d   :  { %v3232_v41 = vmul.f32 %v8383_v17, %v3144_v50 }
0x1d1e   :  { %v3237_v19 = vpop.permute.xlu1 %3236 }
0x1d1f   :  { %6689 = vmatprep.mubr.msk.bf16.mxu1 %vm96_vm0, %v3237_v19 }
0x1d20   :  { %6690 = vmatmul.mubr.msk.bf16.vlgmr.msra.gmra.mxu1 %vm96_vm0, %v3239_v7 }
0x1d22   :  { %v8379_v31 = vpop.permute.xlu1 %3226 }
0x1d23   :  { %v3233_v36 = vmul.f32 %v8379_v31, %v8333_v49 }
0x1d6d   :  { %v6683_v37 = vpop.f32.mrf.mxu0 }
0x1d6e   :  { %v3215_v29 = vmul.f32 %v6683_v37, %v3051_v13 }
0x1d6f   :  { %v3199_v2 = vpop.f32.mrf.mxu0 }
0x1d70   :  { %v3213_v53 = vmul.f32 %v3199_v2, %v3049_v55  ;;  %v3218_v20 = vadd.f32 %v3215_v29, %v3156_v32 }
0x1d71   :  { %v6684_v62 = vpop.f32.mrf.mxu0 }
0x1d72   :  { %v3216_v1 = vadd.f32 %v3213_v53, %v3154_v61  ;;  %v8423_v53 = vld [vmem:[%s9022_s8] sm:$0xff] }
0x1d73   :  { %v3202_v59 = vpop.f32.mrf.mxu0 }
0x1d74   :  { %v3214_v0 = vmul.f32 %v3202_v59, %v3050_v27 }
0x1d76   :  { %v3217_v9 = vadd.f32 %v3214_v0, %v3155_v63  ;;  %v8429_v0 = vld [vmem:[%s9022_s8 + $0x8] sm:$0xff] }
0x1d78   :  { %v8368_v11 = vpack.c.bf16 %v3217_v9, %v3216_v1  ;;  %v8435_v9 = vld [vmem:[%s9022_s8 + $0x10] sm:$0xff] }
0x1d7a   :  { %6697 = vmatprep.mubr.msk.bf16.mxu0 %vm386_vm1, %v8368_v11 }
0x1de0   :  { %v6691_v16 = vpop.f32.mrf.mxu1 }
0x1de1   :  { %v3296_v33 = vmul.f32 %v6691_v16, %v3051_v13 }
0x1de2   :  { %v3280_v14 = vpop.f32.mrf.mxu1 }
0x1de3   :  { %3304 = vrot.lane.b32.xlu1 %v3296_v33, %s9072_s26  ;;  %v3294_v46 = vmul.f32 %v3280_v14, %v3049_v55 }
0x1de4   :  { %v6692_v15 = vpop.f32.mrf.mxu1 }
0x1de6   :  { %v3283_v18 = vpop.f32.mrf.mxu1 }
0x1de7   :  { %v3295_v28 = vmul.f32 %v3283_v18, %v3050_v27  ;;  %3222 = vrot.lane.b32.xlu1 %v3046_v51, %s9072_s26 }
0x1de9   :  { %3302 = vrot.lane.b32.xlu0 %v3295_v28, %s9072_s26 }
0x1deb   :  { %3300 = vrot.lane.b32.xlu1 %v3294_v46, %s9072_s26 }
0x1e55   :  { %v3305_v3 = vpop.permute.xlu1 %3304 }
0x1e56   :  { %v3311_v35 = vadd.f32 %v3305_v3, %v3233_v36 }
0x1e58   :  { %v8385_v38 = vpack.c.bf16 %v3311_v35, %v3311_v35 }
0x1e59   :  { %v8387_v39 = vpop.permute.xlu1 %3222 }
0x1e5a   :  { %3320 = vrot.lane.b32.xlu1 %v8385_v38, %s9083_s20  ;;  %v3231_v42 = vmul.f32 %v8387_v39, %v3141_v26  ;;  %v8404_v26 = vpack.c.bf16 %v3218_v20, %v3218_v20 }
0x1e5b   :  { %v3303_v40 = vpop.permute.xlu0 %3302 }
0x1e5c   :  { %v3310_v47 = vadd.f32 %v3303_v40, %v3232_v41 }
0x1e5d   :  { %v3301_v44 = vpop.permute.xlu1 %3300 }
0x1e5e   :  { %v3309_v48 = vadd.f32 %v3301_v44, %v3231_v42  ;;  %3546 = vrot.lane.b32.xlu1 %v8385_v38, %s9073_s4 }
0x1e60   :  { %v8395_v30 = vpack.c.bf16 %v3310_v47, %v3309_v48 }
0x1e62   :  { %3318 = vrot.lane.b32.xlu0 %v8395_v30, %s9083_s20  ;;  %3540 = vrot.lane.b32.xlu1 %v8368_v11, %s9074_s3 }
0x1e66   :  { %3544 = vrot.lane.b32.xlu0 %v8395_v30, %s9073_s4 }
0x1e6a   :  { %3542 = vrot.lane.b32.xlu0 %v8404_v26, %s9074_s3 }
0x1ecc   :  { %v3321_v50 = vpop.permute.xlu1 %3320 }
0x1ecd   :  { %6974 = vmatprep.subr.msk.bf16.mxu0 %vm386_vm1, %v3321_v50  ;;  %v3332_v49 = vsel %vm386_vm1, %v3321_v50, 0 }
0x1ece   :  { %6694 = vmatpush3.bf16.xpose.msra.mxu0 %v3332_v49 }
0x1ed0   :  { %v3547_v7 = vpop.permute.xlu1 %3546 }
0x1ed1   :  { %v3558_v55 = vsel %vm386_vm1, %v3547_v7, 0 }
0x1ed4   :  { %v3319_v54 = vpop.permute.xlu0 %3318  ;;  %v3541_v37 = vpop.permute.xlu1 %3540 }
0x1ed5   :  { %6975 = vmatprep.subr.msk.bf16.mxu0 %vm386_vm1, %v3319_v54  ;;  %v3329_v19 = vsel %vm386_vm1, %v3319_v54, 0 }
0x1ed6   :  { %6696 = vmatpush3.bf16.xpose.msra.mxu0 %v3329_v19 }
0x1ed7   :  { %6978 = vmatprep.subr.msk.bf16.mxu0 %vm386_vm1, %v3547_v7 }
0x1ed8   :  { %v3545_v2 = vpop.permute.xlu0 %3544 }
0x1ed9   :  { %v3555_v51 = vsel %vm386_vm1, %v3545_v2, 0 }
0x1edc   :  { %v3543_v62 = vpop.permute.xlu0 %3542 }
0x1edd   :  { %6698 = vmatmul.mubr.msk.bf16.vlgmr.msra.gmra.mxu0 %vm386_vm1, %v8404_v26 }
0x1ede   :  { %6716 = vmatpush3.bf16.xpose.msra.mxu0 %v3558_v55  ;;  %6719 = vmatprep.mubr.msk.bf16.mxu0 %vm386_vm1, %v3541_v37 }
0x1edf   :  { %6979 = vmatprep.subr.msk.bf16.mxu0 %vm386_vm1, %v3545_v2 }
0x1ee6   :  { %6718 = vmatpush3.bf16.xpose.msra.mxu0 %v3555_v51 }
0x1eed   :  { %6720 = vmatmul.mubr.msk.bf16.vlgmr.msra.gmra.mxu0 %vm386_vm1, %v3543_v62 }
0x1f9d   :  { %v6699_v27 = vpop.f32.mrf.mxu0 }
0x1f9e   :  { %v3377_v33 = vadd.f32 %v6699_v27, %v8435_v9 }
0x1f9f   :  { %v3368_v59 = vpop.f32.mrf.mxu0 }
0x1fa0   :  { %v3369_v61 = vadd.f32 %v3368_v59, %v8423_v53  ;;  %v3388_v15 = vsel %vm447_vm2, %v3377_v33, -inf }
0x1fa1   :  { %v6700_v63 = vpop.f32.mrf.mxu0 }
0x1fa2   :  { %v3382_v1 = vsel %vm447_vm2, %v3369_v61, -inf }
0x1fa3   :  { %v3371_v13 = vpop.f32.mrf.mxu0  ;;  %3383 = vmax.xlane.f32.xlu1 %v3382_v1 }
0x1fa4   :  { %v3372_v16 = vadd.f32 %v3371_v13, %v8429_v0 }
0x1fa6   :  { %v3385_v14 = vsel %vm447_vm2, %v3372_v16, -inf }
0x1fa7   :  { %3386 = vmax.xlane.f32.xlu0 %v3385_v14 }
0x1fab   :  { %3389 = vmax.xlane.f32.xlu0 %v3388_v15  ;;  %v7372_v15 = vld [vmem:[%s9012_s15] sm:$0xf] }
0x1fad   :  { %v6721_v18 = vpop.f32.mrf.mxu0 }
0x1fae   :  { %v3603_v55 = vadd.f32 %v6721_v18, %v8435_v9 }
0x1faf   :  { %v3594_v28 = vpop.f32.mrf.mxu0 }
0x1fb0   :  { %v3595_v7 = vadd.f32 %v3594_v28, %v8423_v53  ;;  %v3614_v62 = vsel %vm447_vm2, %v3603_v55, -inf }
0x1fb1   :  { %v6722_v46 = vpop.f32.mrf.mxu0 }
0x1fb2   :  { %v3608_v2 = vsel %vm447_vm2, %v3595_v7, -inf }
0x1fb3   :  { %v3597_v19 = vpop.f32.mrf.mxu0 }
0x1fb4   :  { %v3598_v37 = vadd.f32 %v3597_v19, %v8429_v0 }
0x1fb6   :  { %v3611_v51 = vsel %vm447_vm2, %v3598_v37, -inf }
0x202c   :  { %v3384_v36 = vpop.xlane.xlu1 %3383 }
0x202d   :  { %v3391_v40 = vsub.f32 %v3369_v61, %v3384_v36 }
0x202f   :  { %v3394_v47 = vmul.f32 1.442695, %v3391_v40 }
0x2030   :  { %v3387_v3 = vpop.xlane.xlu0 %3386 }
0x2031   :  { %v3392_v35 = vsub.f32 %v3372_v16, %v3387_v3 }
0x2033   :  { %v3396_v41 = vmul.f32 1.442695, %v3392_v35 }
0x2034   :  { %v3390_v42 = vpop.xlane.xlu0 %3389 }
0x2035   :  { %7202 = vpow2.f32 %v3396_v41  ;;  %v3393_v44 = vsub.f32 %v3377_v33, %v3390_v42 }
0x2037   :  { %v3398_v48 = vmul.f32 1.442695, %v3393_v44 }
0x2039   :  { %7204 = vpow2.f32 %v3398_v48 }
0x203a   :  { %7206 = vpow2.f32 %v3394_v47 }
0x2042   :  { %v7203_v29 = vpop.eup %7202 }
0x2043   :  { %v3403_v32 = vsel %vm447_vm2, %v7203_v29, 0.0 }
0x2044   :  { %3404 = vadd.xlane.f32.xlu1 %v3403_v32 }
0x2046   :  { %v7205_v20 = vpop.eup %7204 }
0x2047   :  { %v3406_v50 = vsel %vm447_vm2, %v7205_v20, 0.0  ;;  %v7207_v49 = vpop.eup %7206 }
0x2048   :  { %3407 = vadd.xlane.f32.xlu0 %v3406_v50  ;;  %v3400_v54 = vsel %vm447_vm2, %v7207_v49, 0.0 }
0x204c   :  { %3401 = vadd.xlane.f32.xlu0 %v3400_v54 }
0x2055   :  { %3419 = vrot.lane.b32.xlu1 %v8337_v4, %s9082_s22 }
0x2059   :  { %3770 = vrot.lane.b32.xlu1 %v8385_v38, %s9075_s5 }
0x205d   :  { %3768 = vrot.lane.b32.xlu1 %v8395_v30, %s9075_s5 }
0x2061   :  { %3764 = vrot.lane.b32.xlu1 %v8368_v11, %s9076_s24 }
0x2062   :  { %3417 = vrot.lane.b32.xlu0 %v8344_v57, %s9082_s22 }
0x2066   :  { %3766 = vrot.lane.b32.xlu0 %v8404_v26, %s9076_s24 }
0x2085   :  { %3609 = vmax.xlane.f32.xlu1 %v3608_v2  ;;  %3612 = vmax.xlane.f32.xlu0 %v3611_v51 }
0x2089   :  { %3615 = vmax.xlane.f32.xlu0 %v3614_v62 }
0x20cd   :  { %v3405_v27 = vpop.xlane.xlu1 %3404 }
0x20d1   :  { %v3408_v59 = vpop.xlane.xlu0 %3407  ;;  %v3420_v61 = vpop.permute.xlu1 %3419 }
0x20d2   :  { %6976 = vmatprep.subr.msk.bf16.mxu1 %vm494_vm3, %v3420_v61  ;;  %v3429_v63 = vsel %vm494_vm3, %v3420_v61, 0  ;;  %7208 = vrcp.f32 %v3408_v59 }
0x20d3   :  { %6702 = vmatpush3.bf16.msra.mxu1 %v3429_v63  ;;  %7210 = vrcp.f32 %v3405_v27 }
0x20d5   :  { %v3402_v1 = vpop.xlane.xlu0 %3401  ;;  %v3771_v13 = vpop.permute.xlu1 %3770 }
0x20d6   :  { %7212 = vrcp.f32 %v3402_v1  ;;  %6982 = vmatprep.subr.msk.bf16.mxu0 %vm386_vm1, %v3771_v13  ;;  %v3782_v16 = vsel %vm386_vm1, %v3771_v13, 0 }
0x20d7   :  { %6738 = vmatpush3.bf16.xpose.msra.mxu0 %v3782_v16 }
0x20d9   :  { %v3418_v33 = vpop.permute.xlu0 %3417  ;;  %v3769_v14 = vpop.permute.xlu1 %3768 }
0x20da   :  { %6703 = vmatprep.subr.bf16.mxu1 %v3418_v33  ;;  %6983 = vmatprep.subr.msk.bf16.mxu0 %vm386_vm1, %v3769_v14  ;;  %v3779_v28 = vsel %vm386_vm1, %v3769_v14, 0 }
0x20db   :  { %6704 = vmatpush3.bf16.msra.mxu1 %v3418_v33 }
0x20dc   :  { %6977 = vmatprep.subr.msk.bf16.mxu1 %vm494_vm3, %v7372_v15 }
0x20dd   :  { %v3765_v18 = vpop.permute.xlu1 %3764  ;;  %v3767_v42 = vpop.permute.xlu0 %3766 }
0x20de   :  { %6741 = vmatprep.mubr.msk.bf16.mxu0 %vm386_vm1, %v3765_v18 }
0x20df   :  { %6740 = vmatpush3.bf16.xpose.msra.mxu0 %v3779_v28  ;;  %v7209_v46 = vpop.eup %7208 }
0x20e0   :  { %v7211_v36 = vpop.eup %7210  ;;  %v3414_v35 = vmul.f32 %v7209_v46, %v7205_v20 }
0x20e1   :  { %v3413_v41 = vmul.f32 %v7211_v36, %v7203_v29 }
0x20e2   :  { %v3416_v47 = vpack.c.bf16 %v3414_v35, %v3414_v35 }
0x20e3   :  { %v7213_v3 = vpop.eup %7212 }
0x20e4   :  { %v3412_v40 = vmul.f32 %v7213_v3, %v7207_v49 }
0x20e6   :  { %6742 = vmatmul.mubr.msk.bf16.vlgmr.msra.gmra.mxu0 %vm386_vm1, %v3767_v42  ;;  %v3415_v44 = vpack.c.bf16 %v3413_v41, %v3412_v40 }
0x20e8   :  { %6705 = vmatprep.mubr.msk.bf16.mxu1 %vm447_vm2, %v3415_v44 }
0x20e9   :  { %6706 = vmatmul.mubr.msk.bf16.vlgmr.msra.gmra.mxu1 %vm447_vm2, %v3416_v47 }
0x20ea   :  { %6710 = vmatpush3.bf16.msra.mxu1 %v7738_v25 }
0x210e   :  { %v3613_v48 = vpop.xlane.xlu0 %3612  ;;  %v3610_v32 = vpop.xlane.xlu1 %3609 }
0x210f   :  { %v3618_v50 = vsub.f32 %v3598_v37, %v3613_v48  ;;  %v3617_v19 = vsub.f32 %v3595_v7, %v3610_v32  ;;  %v7373_v48 = vld [vmem:[%s9012_s15 + $0x4] sm:$0xf] }
0x2111   :  { %v3622_v54 = vmul.f32 1.442695, %v3618_v50  ;;  %v3620_v29 = vmul.f32 1.442695, %v3617_v19 }
0x2112   :  { %v3616_v2 = vpop.xlane.xlu0 %3615 }
0x2113   :  { %7214 = vpow2.f32 %v3622_v54  ;;  %v3619_v20 = vsub.f32 %v3603_v55, %v3616_v2  ;;  %v7374_v2 = vld [vmem:[%s9013_s16 + $0x8] sm:$0xff]  }
0x2115   :  { %v3624_v49 = vmul.f32 1.442695, %v3619_v20 }
0x2117   :  { %7216 = vpow2.f32 %v3624_v49 }
0x2118   :  { %7218 = vpow2.f32 %v3620_v29 }
0x2120   :  { %v8477_v51 = vpop.eup %7214 }
0x2121   :  { %v3629_v62 = vsel %vm447_vm2, %v8477_v51, 0.0 }
0x2122   :  { %3630 = vadd.xlane.f32.xlu1 %v3629_v62 }
0x2124   :  { %v8481_v27 = vpop.eup %7216 }
0x2125   :  { %v3632_v25 = vsel %vm447_vm2, %v8481_v27, 0.0  ;;  %v7219_v37 = vpop.eup %7218 }
0x2126   :  { %3633 = vadd.xlane.f32.xlu0 %v3632_v25  ;;  %v3626_v7 = vsel %vm447_vm2, %v7219_v37, 0.0 }
0x212a   :  { %3627 = vadd.xlane.f32.xlu0 %v3626_v7 }
0x2133   :  { %3645 = vrot.lane.b32.xlu1 %v8337_v4, %s9077_s9 }
0x2137   :  { %3994 = vrot.lane.b32.xlu1 %v8385_v38, %s9078_s30 }
0x213b   :  { %3992 = vrot.lane.b32.xlu1 %v8395_v30, %s9078_s30 }
0x213f   :  { %3988 = vrot.lane.b32.xlu1 %v8368_v11, %s9079_s12 }
0x2140   :  { %3643 = vrot.lane.b32.xlu0 %v8344_v57, %s9077_s9 }
0x2144   :  { %3990 = vrot.lane.b32.xlu0 %v8404_v26, %s9079_s12 }
0x21a6   :  { %v6743_v55 = vpop.f32.mrf.mxu0 }
0x21a7   :  { %v3827_v14 = vadd.f32 %v6743_v55, %v8435_v9 }
0x21a8   :  { %v3818_v59 = vpop.f32.mrf.mxu0 }
0x21a9   :  { %v8499_v61 = vadd.f32 %v3818_v59, %v8423_v53  ;;  %v6707_v63 = vpop.f32.mrf.mxu1  ;;  %v3838_v40 = vsel %vm447_vm2, %v3827_v14, -inf  ;;  %v7375_v59 = vld [vmem:[%s9013_s16] sm:$0xff]  }
0x21aa   :  { %v6744_v1 = vpop.f32.mrf.mxu0  ;;  %v3480_v36 = vpack.c.bf16 %v6707_v63, %v6707_v63 }
0x21ab   :  { %v3465_v38 = vpop.f32.mrf.mxu1  ;;  %v3631_v13 = vpop.xlane.xlu1 %3630  ;;  %v3832_v30 = vsel %vm447_vm2, %v8499_v61, -inf }
0x21ac   :  { %v3821_v16 = vpop.f32.mrf.mxu0  ;;  %3833 = vmax.xlane.f32.xlu1 %v3832_v30 }
0x21ad   :  { %v3822_v11 = vadd.f32 %v3821_v16, %v8429_v0  ;;  %v6708_v33 = vpop.f32.mrf.mxu1 }
0x21af   :  { %v3634_v26 = vpop.xlane.xlu0 %3633  ;;  %v3468_v15 = vpop.f32.mrf.mxu1  ;;  %v3835_v18 = vsel %vm447_vm2, %v3822_v11, -inf }
0x21b0   :  { %v3479_v28 = vpack.c.bf16 %v3468_v15, %v3465_v38  ;;  %v3646_v46 = vpop.permute.xlu1 %3645  ;;  %3836 = vmax.xlane.f32.xlu0 %v3835_v18  ;;  %7220 = vrcp.f32 %v3634_v26 }
0x21b1   :  { %6980 = vmatprep.subr.msk.bf16.mxu1 %vm494_vm3, %v3646_v46  ;;  %7222 = vrcp.f32 %v3631_v13  ;;  %v3655_v35 = vsel %vm494_vm3, %v3646_v46, 0 }
0x21b2   :  { %6711 = vmatprep.mubr.msk.bf16.mxu1 %vm386_vm1, %v3479_v28 }
0x21b3   :  { %6712 = vmatmul.mubr.msk.bf16.vlgmr.msra.gmra.mxu1 %vm386_vm1, %v3480_v36  ;;  %v3628_v3 = vpop.xlane.xlu0 %3627 }
0x21b4   :  { %7224 = vrcp.f32 %v3628_v3  ;;  %6724 = vmatpush3.bf16.msra.mxu1 %v3655_v35  ;;  %v3995_v41 = vpop.permute.xlu1 %3994  ;;  %3839 = vmax.xlane.f32.xlu0 %v3838_v40 }
0x21b5   :  { %6986 = vmatprep.subr.msk.bf16.mxu0 %vm386_vm1, %v3995_v41  ;;  %v4006_v42 = vsel %vm386_vm1, %v3995_v41, 0 }
0x21b6   :  { %6760 = vmatpush3.bf16.xpose.msra.mxu0 %v4006_v42 }
0x21b7   :  { %v3644_v44 = vpop.permute.xlu0 %3643 }
0x21b8   :  { %v3993_v47 = vpop.permute.xlu1 %3992  ;;  %6725 = vmatprep.subr.bf16.mxu1 %v3644_v44 }
0x21b9   :  { %6987 = vmatprep.subr.msk.bf16.mxu0 %vm386_vm1, %v3993_v47  ;;  %6726 = vmatpush3.bf16.msra.mxu1 %v3644_v44  ;;  %v4003_v50 = vsel %vm386_vm1, %v3993_v47, 0 }
0x21ba   :  { %6981 = vmatprep.subr.msk.bf16.mxu1 %vm494_vm3, %v7373_v48 }
0x21bb   :  { %v3991_v25 = vpop.permute.xlu0 %3990 }
0x21bc   :  { %v3989_v32 = vpop.permute.xlu1 %3988 }
0x21bd   :  { %6763 = vmatprep.mubr.msk.bf16.mxu0 %vm386_vm1, %v3989_v32  ;;  %v7221_v54 = vpop.eup %7220 }
0x21be   :  { %6762 = vmatpush3.bf16.xpose.msra.mxu0 %v4003_v50  ;;  %v7223_v19 = vpop.eup %7222  ;;  %v3640_v29 = vmul.f32 %v7221_v54, %v8481_v27 }
0x21bf   :  { %6781 = vmatprep.subr.bf16.mxu0 %v7374_v2  ;;  %v3639_v62 = vmul.f32 %v7223_v19, %v8477_v51 }
0x21c0   :  { %v3642_v55 = vpack.c.bf16 %v3640_v29, %v3640_v29 }
0x21c1   :  { %v7225_v20 = vpop.eup %7224 }
0x21c2   :  { %v3638_v49 = vmul.f32 %v7225_v20, %v7219_v37 }
0x21c4   :  { %v3641_v7 = vpack.c.bf16 %v3639_v62, %v3638_v49 }
0x21c5   :  { %6764 = vmatmul.mubr.msk.bf16.vlgmr.msra.gmra.mxu0 %vm386_vm1, %v3991_v25 }
0x21c6   :  { %6727 = vmatprep.mubr.msk.bf16.mxu1 %vm447_vm2, %v3641_v7  ;;  %6782 = vmatpush3.bf16.msra.mxu0 %v7374_v2  ;;  %v7376_v7 = vld [vmem:[%s9012_s15 + $0x8] sm:$0xf] }
0x21c7   :  { %6728 = vmatmul.mubr.msk.bf16.vlgmr.msra.gmra.mxu1 %vm447_vm2, %v3642_v55  ;;  %6783 = vmatprep.subr.bf16.mxu0 %v7375_v59 }
0x21c8   :  { %6732 = vmatpush3.bf16.msra.mxu1 %v7782_v8 }
0x21ca   :  { %6784 = vmatpush3.bf16.msra.mxu0 %v7375_v59 }
0x2235   :  { %v3834_v27 = vpop.xlane.xlu1 %3833 }
0x2236   :  { %v3841_v63 = vsub.f32 %v8499_v61, %v3834_v27 }
0x2238   :  { %v3844_v30 = vmul.f32 1.442695, %v3841_v63 }
0x2239   :  { %v3837_v51 = vpop.xlane.xlu0 %3836 }
0x223a   :  { %v3842_v37 = vsub.f32 %v3822_v11, %v3837_v51 }
0x223c   :  { %v3846_v1 = vmul.f32 1.442695, %v3842_v37 }
0x223d   :  { %v3840_v38 = vpop.xlane.xlu0 %3839 }
0x223e   :  { %7226 = vpow2.f32 %v3846_v1  ;;  %v3843_v13 = vsub.f32 %v3827_v14, %v3840_v38 }
0x2240   :  { %v3848_v16 = vmul.f32 1.442695, %v3843_v13 }
0x2242   :  { %7228 = vpow2.f32 %v3848_v16 }
0x2243   :  { %7230 = vpow2.f32 %v3844_v30 }
0x224b   :  { %v7227_v33 = vpop.eup %7226 }
0x224c   :  { %v3853_v26 = vsel %vm447_vm2, %v7227_v33, 0.0 }
0x224d   :  { %3854 = vadd.xlane.f32.xlu1 %v3853_v26 }
0x224f   :  { %v7229_v15 = vpop.eup %7228 }
0x2250   :  { %v3856_v8 = vsel %vm447_vm2, %v7229_v15, 0.0  ;;  %v7231_v18 = vpop.eup %7230 }
0x2251   :  { %3857 = vadd.xlane.f32.xlu0 %v3856_v8  ;;  %v3850_v11 = vsel %vm447_vm2, %v7231_v18, 0.0 }
0x2255   :  { %3851 = vadd.xlane.f32.xlu0 %v3850_v11 }
0x225e   :  { %3869 = vrot.lane.b32.xlu1 %v8337_v4, %s9080_s23 }
0x226b   :  { %3867 = vrot.lane.b32.xlu0 %v8344_v57, %s9080_s23 }
0x2273   :  { %v8540_v61 = vpop.f32.mrf.mxu1 }
0x2275   :  { %v8542_v14 = vpop.f32.mrf.mxu1 }
0x2277   :  { %v6714_v28 = vpop.f32.mrf.mxu1 }
0x2279   :  { %v8544_v46 = vpop.f32.mrf.mxu1 }
0x2285   :  { %v6765_v36 = vpop.f32.mrf.mxu0 }
0x2286   :  { %v4051_v44 = vadd.f32 %v6765_v36, %v8435_v9 }
0x2287   :  { %v4042_v3 = vpop.f32.mrf.mxu0  ;;  %v6729_v35 = vpop.f32.mrf.mxu1 }
0x2288   :  { %v4043_v40 = vadd.f32 %v4042_v3, %v8423_v53  ;;  %v4062_v2 = vsel %vm447_vm2, %v4051_v44, -inf  ;;  %v3706_v29 = vpack.c.bf16 %v6729_v35, %v6729_v35 }
0x2289   :  { %v6766_v41 = vpop.f32.mrf.mxu0  ;;  %v3691_v42 = vpop.f32.mrf.mxu1 }
0x228a   :  { %v4056_v47 = vsel %vm447_vm2, %v4043_v40, -inf  ;;  %v3537_v41 = vadd.f32 %v8540_v61, %v8297_v43 }
0x228b   :  { %v4045_v48 = vpop.f32.mrf.mxu0  ;;  %4057 = vmax.xlane.f32.xlu1 %v4056_v47  ;;  %v6730_v32 = vpop.f32.mrf.mxu1 }
0x228c   :  { %v4046_v50 = vadd.f32 %v4045_v48, %v8429_v0 }
0x228d   :  { %v3694_v54 = vpop.f32.mrf.mxu1 }
0x228e   :  { %v3705_v19 = vpack.c.bf16 %v3694_v54, %v3691_v42  ;;  %v4059_v20 = vsel %vm447_vm2, %v4046_v50, -inf }
0x228f   :  { %4063 = vmax.xlane.f32.xlu1 %v4062_v2  ;;  %4060 = vmax.xlane.f32.xlu0 %v4059_v20 }
0x2290   :  { %6733 = vmatprep.mubr.msk.bf16.mxu1 %vm386_vm1, %v3705_v19 }
0x2291   :  { %6734 = vmatmul.mubr.msk.bf16.vlgmr.msra.gmra.mxu1 %vm386_vm1, %v3706_v29 }
0x22d6   :  { %v3855_v53 = vpop.xlane.xlu1 %3854 }
0x22da   :  { %v3858_v9 = vpop.xlane.xlu0 %3857  ;;  %v3870_v49 = vpop.permute.xlu1 %3869 }
0x22db   :  { %v3879_v62 = vsel %vm494_vm3, %v3870_v49, 0  ;;  %6984 = vmatprep.subr.msk.bf16.mxu1 %vm494_vm3, %v3870_v49  ;;  %7232 = vrcp.f32 %v3858_v9  ;;  %v7377_v49 = vld [vmem:[%s9012_s15 + $0xc] sm:$0xf] }
0x22dc   :  { %6746 = vmatpush3.bf16.msra.mxu1 %v3879_v62  ;;  %7234 = vrcp.f32 %v3855_v53 }
0x22de   :  { %v3852_v0 = vpop.xlane.xlu0 %3851 }
0x22df   :  { %7236 = vrcp.f32 %v3852_v0 }
0x22e2   :  { %v3868_v25 = vpop.permute.xlu0 %3867 }
0x22e3   :  { %6747 = vmatprep.subr.bf16.mxu1 %v3868_v25 }
0x22e4   :  { %6748 = vmatpush3.bf16.msra.mxu1 %v3868_v25 }
0x22e5   :  { %6985 = vmatprep.subr.msk.bf16.mxu1 %vm494_vm3, %v7376_v7 }
0x22e8   :  { %v7233_v55 = vpop.eup %7232 }
0x22e9   :  { %v7235_v59 = vpop.eup %7234  ;;  %v3864_v51 = vmul.f32 %v7233_v55, %v7229_v15 }
0x22ea   :  { %v3863_v63 = vmul.f32 %v7235_v59, %v7227_v33 }
0x22eb   :  { %v3866_v38 = vpack.c.bf16 %v3864_v51, %v3864_v51 }
0x22ec   :  { %v7237_v27 = vpop.eup %7236 }
0x22ed   :  { %v3862_v37 = vmul.f32 %v7237_v27, %v7231_v18 }
0x22ef   :  { %v3865_v1 = vpack.c.bf16 %v3863_v63, %v3862_v37  ;;  %v7378_v37 = vld [vmem:[%s9015_s17 + $0x18] sm:$0xff]  }
0x22f1   :  { %6749 = vmatprep.mubr.msk.bf16.mxu1 %vm447_vm2, %v3865_v1 }
0x22f2   :  { %6750 = vmatmul.mubr.msk.bf16.vlgmr.msra.gmra.mxu1 %vm447_vm2, %v3866_v38 }
0x22f3   :  { %6754 = vmatpush3.bf16.msra.mxu1 %v7819_v34 }
0x2314   :  { %v4058_v13 = vpop.xlane.xlu1 %4057 }
0x2315   :  { %v4065_v30 = vsub.f32 %v4043_v40, %v4058_v13  ;;  %v3536_v13 = vadd.f32 %v8544_v46, %v8303_v56  ;;  %v7379_v56 = vld [vmem:[%s9015_s17 + $0x10] sm:$0xff]   ;;  %v7380_v46 = vld [vmem:[%s9015_s17 + $0x8] sm:$0xff]  }
0x2317   :  { %v4068_v3 = vmul.f32 1.442695, %v4065_v30 }
0x2318   :  { %v4061_v16 = vpop.xlane.xlu0 %4060  ;;  %v4064_v26 = vpop.xlane.xlu1 %4063 }
0x2319   :  { %v4066_v8 = vsub.f32 %v4046_v50, %v4061_v16  ;;  %v4067_v11 = vsub.f32 %v4051_v44, %v4064_v26  ;;  %v3535_v44 = vadd.f32 %v8542_v14, %v8299_v45 }
0x231b   :  { %v4070_v28 = vmul.f32 1.442695, %v4066_v8  ;;  %v4072_v36 = vmul.f32 1.442695, %v4067_v11 }
0x231d   :  { %7238 = vpow2.f32 %v4070_v28 }
0x231e   :  { %7240 = vpow2.f32 %v4072_v36 }
0x231f   :  { %7242 = vpow2.f32 %v4068_v3 }
0x232a   :  { %v7239_v33 = vpop.eup %7238 }
0x232b   :  { %v7241_v15 = vpop.eup %7240  ;;  %v4077_v18 = vsel %vm447_vm2, %v7239_v33, 0.0 }
0x232c   :  { %4078 = vadd.xlane.f32.xlu1 %v4077_v18  ;;  %v4080_v35 = vsel %vm447_vm2, %v7241_v15, 0.0  ;;  %v7243_v34 = vpop.eup %7242  ;;  %v7381_v18 = vld [vmem:[%s9015_s17] sm:$0xff]  }
0x232d   :  { %4081 = vadd.xlane.f32.xlu0 %v4080_v35  ;;  %v4074_v40 = vsel %vm447_vm2, %v7243_v34, 0.0  ;;  %v8604_v35 = vld [vmem:[%s9069_s10 + $0x8] sm:$0xff]  }
0x2331   :  { %4075 = vadd.xlane.f32.xlu0 %v4074_v40 }
0x233d   :  { %4093 = vrot.lane.b32.xlu1 %v8337_v4, %s9081_s14 }
0x2347   :  { %4091 = vrot.lane.b32.xlu0 %v8344_v57, %s9081_s14 }
0x2351   :  { %v6735_v42 = vpop.f32.mrf.mxu1 }
0x2352   :  { %v3763_v47 = vadd.f32 %v6735_v42, %v3537_v41 }
0x2353   :  { %v3747_v48 = vpop.f32.mrf.mxu1 }
0x2354   :  { %v3761_v32 = vadd.f32 %v3747_v48, %v3535_v44 }
0x2355   :  { %v6736_v50 = vpop.f32.mrf.mxu1 }
0x2357   :  { %v3750_v54 = vpop.f32.mrf.mxu1 }
0x2358   :  { %v3762_v26 = vadd.f32 %v3750_v54, %v3536_v13 }
0x23b2   :  { %v6751_v19 = vpop.f32.mrf.mxu1 }
0x23b3   :  { %v3930_v43 = vpack.c.bf16 %v6751_v19, %v6751_v19 }
0x23b4   :  { %v3915_v2 = vpop.f32.mrf.mxu1 }
0x23b5   :  { %v4079_v20 = vpop.xlane.xlu1 %4078 }
0x23b6   :  { %v4082_v29 = vpop.xlane.xlu0 %4081  ;;  %v6752_v4 = vpop.f32.mrf.mxu1 }
0x23b7   :  { %7244 = vrcp.f32 %v4082_v29 }
0x23b8   :  { %v3918_v53 = vpop.f32.mrf.mxu1  ;;  %7246 = vrcp.f32 %v4079_v20 }
0x23b9   :  { %v3929_v57 = vpack.c.bf16 %v3918_v53, %v3915_v2  ;;  %v4094_v9 = vpop.permute.xlu1 %4093 }
0x23ba   :  { %v4076_v61 = vpop.xlane.xlu0 %4075  ;;  %6988 = vmatprep.subr.msk.bf16.mxu1 %vm494_vm3, %v4094_v9  ;;  %v4103_v45 = vsel %vm494_vm3, %v4094_v9, 0 }
0x23bb   :  { %7248 = vrcp.f32 %v4076_v61  ;;  %6755 = vmatprep.mubr.msk.bf16.mxu1 %vm386_vm1, %v3929_v57 }
0x23bc   :  { %6756 = vmatmul.mubr.msk.bf16.vlgmr.msra.gmra.mxu1 %vm386_vm1, %v3930_v43 }
0x23bd   :  { %6768 = vmatpush3.bf16.msra.mxu1 %v4103_v45 }
0x23be   :  { %v4092_v14 = vpop.permute.xlu0 %4091 }
0x23bf   :  { %6769 = vmatprep.subr.bf16.mxu1 %v4092_v14 }
0x23c1   :  { %6770 = vmatpush3.bf16.msra.mxu1 %v4092_v14 }
0x23c2   :  { %6989 = vmatprep.subr.msk.bf16.mxu1 %vm494_vm3, %v7377_v49 }
0x23c4   :  { %v7245_v62 = vpop.eup %7244 }
0x23c5   :  { %v7247_v0 = vpop.eup %7246  ;;  %v4088_v7 = vmul.f32 %v7245_v62, %v7241_v15 }
0x23c6   :  { %v4087_v59 = vmul.f32 %v7247_v0, %v7239_v33 }
0x23c7   :  { %v4090_v51 = vpack.c.bf16 %v4088_v7, %v4088_v7 }
0x23c8   :  { %v7249_v25 = vpop.eup %7248 }
0x23c9   :  { %v4086_v55 = vmul.f32 %v7249_v25, %v7243_v34 }
0x23cb   :  { %v4089_v27 = vpack.c.bf16 %v4087_v59, %v4086_v55 }
0x23cd   :  { %6771 = vmatprep.mubr.msk.bf16.mxu1 %vm447_vm2, %v4089_v27 }
0x23ce   :  { %6772 = vmatmul.mubr.msk.bf16.vlgmr.msra.gmra.mxu1 %vm447_vm2, %v4090_v51 }
0x23cf   :  { %6776 = vmatpush3.bf16.msra.mxu1 %v7841_v60 }
0x23d0   :  { %6789 = vmatprep.subr.bf16.mxu1 %v7378_v37 }
0x247c   :  { %v6757_v63 = vpop.f32.mrf.mxu1 }
0x247d   :  { %v3987_v1 = vadd.f32 %v6757_v63, %v3763_v47 }
0x247e   :  { %v3971_v38 = vpop.f32.mrf.mxu1 }
0x247f   :  { %v3985_v30 = vadd.f32 %v3971_v38, %v3761_v32 }
0x2480   :  { %v6758_v16 = vpop.f32.mrf.mxu1 }
0x2482   :  { %v3974_v8 = vpop.f32.mrf.mxu1 }
0x2483   :  { %v3986_v11 = vadd.f32 %v3974_v8, %v3762_v26 }
0x248e   :  { %v6773_v28 = vpop.f32.mrf.mxu1 }
0x248f   :  { %v4154_v15 = vpack.c.bf16 %v6773_v28, %v6773_v28 }
0x2490   :  { %v4139_v36 = vpop.f32.mrf.mxu1 }
0x2492   :  { %v6774_v3 = vpop.f32.mrf.mxu1 }
0x2494   :  { %v4142_v60 = vpop.f32.mrf.mxu1 }
0x2495   :  { %v4153_v33 = vpack.c.bf16 %v4142_v60, %v4139_v36 }
0x2497   :  { %6777 = vmatprep.mubr.msk.bf16.mxu1 %vm386_vm1, %v4153_v33 }
0x2498   :  { %6778 = vmatmul.mubr.msk.bf16.vlgmr.msra.gmra.mxu1 %vm386_vm1, %v4154_v15 }
0x2499   :  { %6790 = vmatpush3.bf16.msra.mxu1 %v7378_v37 }
0x249a   :  { %6791 = vmatprep.subr.bf16.mxu1 %v7379_v56 }
0x249d   :  { %6792 = vmatpush3.bf16.msra.mxu1 %v7379_v56 }
0x249e   :  { %6793 = vmatprep.subr.bf16.mxu1 %v7380_v46 }
0x24a1   :  { %6794 = vmatpush3.bf16.msra.mxu1 %v7380_v46 }
0x24a2   :  { %6795 = vmatprep.subr.bf16.mxu1 %v7381_v18 }
0x24a5   :  { %6796 = vmatpush3.bf16.msra.mxu1 %v7381_v18 }
0x24a6   :  { %6817 = vmatprep.subr.bf16.mxu1 %v8604_v35 }
0x2558   :  { %v6779_v34 = vpop.f32.mrf.mxu1 }
0x2559   :  { %v8607_v41 = vadd.f32 %v6779_v34, %v3987_v1 }
0x255a   :  { %v4195_v40 = vpop.f32.mrf.mxu1 }
0x255b   :  { %v8609_v42 = vadd.f32 %v4195_v40, %v3985_v30  ;;  %v4214_v54 = vmul.f32 %v8607_v41, %v8607_v41 }
0x255c   :  { %v6780_v44 = vpop.f32.mrf.mxu1 }
0x255d   :  { %v4212_v47 = vmul.f32 %v8609_v42, %v8609_v42  ;;  %v4221_v2 = vsel %vm96_vm0, %v4214_v54, 0.0 }
0x255e   :  { %v4198_v48 = vpop.f32.mrf.mxu1 }
0x255f   :  { %v8613_v32 = vadd.f32 %v4198_v48, %v3986_v11  ;;  %v4215_v50 = vsel %vm96_vm0, %v4212_v47, 0.0 }
0x2560   :  { %4216 = vadd.xlane.f32.xlu1 %v4215_v50 }
0x2561   :  { %v4213_v19 = vmul.f32 %v8613_v32, %v8613_v32 }
0x2563   :  { %v4218_v20 = vsel %vm96_vm0, %v4213_v19, 0.0 }
0x2564   :  { %4222 = vadd.xlane.f32.xlu1 %v4221_v2  ;;  %4219 = vadd.xlane.f32.xlu0 %v4218_v20  ;;  %v7383_v20 = vld [vmem:[%s9069_s10] sm:$0xff]  }
0x25e9   :  { %v4217_v29 = vpop.xlane.xlu1 %4216 }
0x25ea   :  { %v4224_v4 = vmul.f32 0.03125, %v4217_v29 }
0x25ec   :  { %v4227_v53 = vadd.f32 1e-06, %v4224_v4 }
0x25ed   :  { %v4223_v57 = vpop.xlane.xlu1 %4222  ;;  %v4220_v9 = vpop.xlane.xlu0 %4219 }
0x25ee   :  { %v4226_v43 = vmul.f32 0.03125, %v4223_v57  ;;  %v4225_v61 = vmul.f32 0.03125, %v4220_v9  ;;  %7250 = vrsqrt.f32 %v4227_v53 }
0x25f0   :  { %v4229_v45 = vadd.f32 1e-06, %v4226_v43  ;;  %v4228_v14 = vadd.f32 1e-06, %v4225_v61 }
0x25f2   :  { %7252 = vrsqrt.f32 %v4229_v45 }
0x25f3   :  { %7254 = vrsqrt.f32 %v4228_v14 }
0x25fb   :  { %v7251_v49 = vpop.eup %7250 }
0x25fc   :  { %v4233_v0 = vmul.f32 %v7251_v49, %v8609_v42 }
0x25fe   :  { %v4236_v27 = vmul.f32 %v4233_v0, %v7874_v52 }
0x25ff   :  { %v7253_v62 = vpop.eup %7252 }
0x2600   :  { %v7255_v25 = vpop.eup %7254  ;;  %v4235_v7 = vmul.f32 %v7253_v62, %v8607_v41 }
0x2601   :  { %v4234_v55 = vmul.f32 %v7255_v25, %v8613_v32 }
0x2602   :  { %v4238_v59 = vmul.f32 %v4235_v7, %v7874_v52 }
0x2603   :  { %v4237_v51 = vmul.f32 %v4234_v55, %v7874_v52 }
0x2604   :  { %v4240_v37 = vpack.c.bf16 %v4238_v59, %v4238_v59 }
0x2605   :  { %v4239_v63 = vpack.c.bf16 %v4237_v51, %v4236_v27 }
0x2607   :  { %6785 = vmatprep.mubr.msk.bf16.mxu0 %vm96_vm0, %v4239_v63 }
0x2608   :  { %6786 = vmatmul.mubr.msk.bf16.vlgmr.msra.gmra.mxu0 %vm96_vm0, %v4240_v37 }
0x26c8   :  { %v6787_v1 = vpop.f32.mrf.mxu0 }
0x26c9   :  { %v6067_v52 = vmul.f32 -1.442695, %v6787_v1 }
0x26ca   :  { %v4281_v38 = vpop.f32.mrf.mxu0 }
0x26cb   :  { %4319 = vrot.lane.b32.xlu0 %v4281_v38, %s9082_s22  ;;  %v6065_v16 = vmul.f32 -1.442695, %v4281_v38 }
0x26cc   :  { %v6788_v13 = vpop.f32.mrf.mxu0 }
0x26cd   :  { %7256 = vpow2.f32 %v6065_v16 }
0x26ce   :  { %v4284_v30 = vpop.f32.mrf.mxu0 }
0x26cf   :  { %4321 = vrot.lane.b32.xlu1 %v4284_v30, %s9082_s22  ;;  %v6066_v26 = vmul.f32 -1.442695, %v4284_v30 }
0x26d1   :  { %7258 = vpow2.f32 %v6066_v26 }
0x26d2   :  { %7260 = vpow2.f32 %v6067_v52 }
0x26d3   :  { %4323 = vrot.lane.b32.xlu1 %v6787_v1, %s9082_s22 }
0x26da   :  { %v7257_v8 = vpop.eup %7256 }
0x26db   :  { %v4304_v28 = vadd.f32 1.0, %v7257_v8 }
0x26dd   :  { %7262 = vrcp.f32 %v4304_v28 }
0x26de   :  { %v7259_v11 = vpop.eup %7258 }
0x26df   :  { %v4305_v36 = vadd.f32 1.0, %v7259_v11  ;;  %v7261_v3 = vpop.eup %7260 }
0x26e0   :  { %v4306_v60 = vadd.f32 1.0, %v7261_v3 }
0x26e1   :  { %7264 = vrcp.f32 %v4305_v36 }
0x26e2   :  { %7266 = vrcp.f32 %v4306_v60 }
0x26ea   :  { %v7263_v33 = vpop.eup %7262 }
0x26eb   :  { %v4313_v46 = vmul.f32 %v7263_v33, %v4281_v38  ;;  %v7384_v33 = vld [vmem:[%s9070_s28 + $0x1] ss:$0 sm:$0xff] }
0x26ee   :  { %v7265_v15 = vpop.eup %7264 }
0x26ef   :  { %v4314_v18 = vmul.f32 %v7265_v15, %v4284_v30  ;;  %v7267_v34 = vpop.eup %7266 }
0x26f0   :  { %v4315_v50 = vmul.f32 %v7267_v34, %v6787_v1 }
0x273d   :  { %v4320_v56 = vpop.permute.xlu0 %4319 }
0x273e   :  { %v4328_v44 = vmul.f32 %v4320_v56, %v4313_v46 }
0x2741   :  { %v4322_v40 = vpop.permute.xlu1 %4321 }
0x2742   :  { %v4329_v47 = vmul.f32 %v4322_v40, %v4314_v18 }
0x2744   :  { %v4331_v48 = vpack.c.bf16 %v4329_v47, %v4328_v44 }
0x2745   :  { %v4324_v54 = vpop.permute.xlu1 %4323 }
0x2746   :  { %v4330_v19 = vmul.f32 %v4324_v54, %v4315_v50  ;;  %6797 = vmatprep.mubr.msk.bf16.mxu1 %vm1466_vm4, %v4331_v48  ;;  %v7385_v50 = vld [vmem:[%s9020_s6 + $0x10] sm:$0xff] }
0x2748   :  { %v4332_v2 = vpack.c.bf16 %v4330_v19, %v4330_v19  ;;  %v7386_v19 = vld [vmem:[%s9021_s7 + $0x10] sm:$0xff] }
0x274a   :  { %6798 = vmatmul.mubr.msk.bf16.vlgmr.msra.gmra.mxu1 %vm1466_vm4, %v4332_v2 }
0x274b   :  { %6818 = vmatpush3.bf16.msra.mxu1 %v8604_v35 }
0x274c   :  { %6819 = vmatprep.subr.bf16.mxu1 %v7383_v20 }
0x274f   :  { %6820 = vmatpush3.bf16.msra.mxu1 %v7383_v20 }
0x280a   :  { %v6799_v29 = vpop.f32.mrf.mxu1 }
0x280b   :  { %v8645_v61 = vadd.f32 %v6799_v29, %v8607_v41  ;;  %v7042_v41 = vld [vmem:[%s9019_s13 + $0x18] sm:$0xff]  }
0x280c   :  { %v4373_v4 = vpop.f32.mrf.mxu1  ;;  %6801 = vmatprep.subr.bf16.mxu0 %v7042_v41 }
0x280d   :  { %v8640_v53 = vadd.f32 %v4373_v4, %v8609_v42  ;;  %v4397_v62 = vmul.f32 %v8645_v61, %v8645_v61  ;;  %6802 = vmatpush3.bf16.msra.mxu0 %v7042_v41 }
0x280e   :  { %v6800_v57 = vpop.f32.mrf.mxu1 }
0x280f   :  { %v4395_v9 = vmul.f32 %v8640_v53, %v8640_v53  ;;  %v4404_v0 = vsel %vm96_vm0, %v4397_v62, 0.0  ;;  %v7387_v57 = vld [vmem:[%s9021_s7] sm:$0xff] }
0x2810   :  { %v4376_v43 = vpop.f32.mrf.mxu1 }
0x2811   :  { %v8648_v45 = vadd.f32 %v4376_v43, %v8613_v32  ;;  %v4398_v14 = vsel %vm96_vm0, %v4395_v9, 0.0  ;;  %v7043_v32 = vld [vmem:[%s9019_s13 + $0x10] sm:$0xff]  }
0x2812   :  { %4399 = vadd.xlane.f32.xlu1 %v4398_v14  ;;  %6803 = vmatprep.subr.bf16.mxu0 %v7043_v32  ;;  %v7388_v14 = vld [vmem:[%s9020_s6] sm:$0xff] }
0x2813   :  { %v4396_v49 = vmul.f32 %v8648_v45, %v8648_v45  ;;  %6804 = vmatpush3.bf16.msra.mxu0 %v7043_v32 }
0x2814   :  { %6809 = vmatprep.subr.bf16.mxu0 %v8604_v35 }
0x2815   :  { %v4401_v42 = vsel %vm96_vm0, %v4396_v49, 0.0 }
0x2816   :  { %4402 = vadd.xlane.f32.xlu0 %v4401_v42  ;;  %v7389_v42 = vld [vmem:[%s9020_s6 + $0x8] sm:$0xff] }
0x281a   :  { %4405 = vadd.xlane.f32.xlu0 %v4404_v0  ;;  %v7390_v0 = vld [vmem:[%s9021_s7 + $0x8] sm:$0xff]  ;;  %s9084_s7 = sld [smem:[#allocation8_spill]] }
0x289b   :  { %v4400_v25 = vpop.xlane.xlu1 %4399 }
0x289c   :  { %v4407_v7 = vmul.f32 0.03125, %v4400_v25 }
0x289e   :  { %v4410_v55 = vadd.f32 1e-06, %v4407_v7 }
0x289f   :  { %v4403_v59 = vpop.xlane.xlu0 %4402 }
0x28a0   :  { %7268 = vrsqrt.f32 %v4410_v55  ;;  %v4408_v27 = vmul.f32 0.03125, %v4403_v59 }
0x28a2   :  { %v4411_v51 = vadd.f32 1e-06, %v4408_v27 }
0x28a3   :  { %v4406_v37 = vpop.xlane.xlu0 %4405 }
0x28a4   :  { %7270 = vrsqrt.f32 %v4411_v51  ;;  %v4409_v63 = vmul.f32 0.03125, %v4406_v37 }
0x28a6   :  { %v4412_v1 = vadd.f32 1e-06, %v4409_v63 }
0x28a8   :  { %7272 = vrsqrt.f32 %v4412_v1 }
0x28ad   :  { %v7269_v38 = vpop.eup %7268 }
0x28ae   :  { %v4416_v13 = vmul.f32 %v7269_v38, %v8640_v53 }
0x28b0   :  { %v4419_v26 = vmul.f32 %v4416_v13, %v7940_v12 }
0x28b1   :  { %v7271_v30 = vpop.eup %7270 }
0x28b2   :  { %v4417_v16 = vmul.f32 %v7271_v30, %v8648_v45 }
0x28b4   :  { %v4420_v52 = vmul.f32 %v4417_v16, %v7940_v12 }
0x28b5   :  { %v7273_v8 = vpop.eup %7272 }
0x28b6   :  { %v4422_v11 = vpack.c.bf16 %v4420_v52, %v4419_v26  ;;  %v4418_v28 = vmul.f32 %v7273_v8, %v8645_v61 }
0x28b8   :  { %6805 = vmatprep.mubr.msk.bf16.mxu0 %vm96_vm0, %v4422_v11  ;;  %v4421_v36 = vmul.f32 %v4418_v28, %v7940_v12 }
0x28ba   :  { %v4423_v3 = vpack.c.bf16 %v4421_v36, %v4421_v36 }
0x28bc   :  { %6806 = vmatmul.mubr.msk.bf16.vlgmr.msra.gmra.mxu0 %vm96_vm0, %v4423_v3 }
0x28bd   :  { %6810 = vmatpush3.bf16.msra.mxu0 %v8604_v35 }
0x28be   :  { %6811 = vmatprep.subr.bf16.mxu0 %v7383_v20 }
0x28c1   :  { %6812 = vmatpush3.bf16.msra.mxu0 %v7383_v20 }
0x297c   :  { %v6807_v60 = vpop.f32.mrf.mxu0 }
0x297d   :  { %v4485_v15 = vadd.f32 %v7384_v33, %v6807_v60 }
0x297e   :  { %v4476_v56 = vpop.f32.mrf.mxu0 }
0x297f   :  { %v8676_v46 = vpack.c.bf16 %v4485_v15, %v4485_v15  ;;  %v4477_v34 = vadd.f32 %v7384_v33, %v4476_v56  ;;  %v4492_v54 = vmul.f32 %v7385_v50, %v4485_v15  ;;  %v4557_v38 = vmul.f32 %v4485_v15, %v8379_v31 }
0x2980   :  { %v6808_v18 = vpop.f32.mrf.mxu0 }
0x2981   :  { %4562 = vrot.lane.b32.xlu1 %v8676_v46, %s9083_s20  ;;  %v4490_v49 = vmul.f32 %v7388_v14, %v4477_v34  ;;  %v4555_v52 = vmul.f32 %v4477_v34, %v8387_v39 }
0x2982   :  { %v4479_v12 = vpop.f32.mrf.mxu0 }
0x2983   :  { %v4480_v40 = vadd.f32 %v7384_v33, %v4479_v12 }
0x2985   :  { %v8680_v44 = vpack.c.bf16 %v4480_v40, %v4477_v34  ;;  %v4491_v62 = vmul.f32 %v7389_v42, %v4480_v40  ;;  %v4556_v8 = vmul.f32 %v4480_v40, %v8383_v17 }
0x2987   :  { %4560 = vrot.lane.b32.xlu0 %v8680_v44, %s9083_s20  ;;  %6813 = vmatprep.mubr.msk.bf16.mxu0 %vm96_vm0, %v8680_v44 }
0x2988   :  { %6814 = vmatmul.mubr.msk.bf16.vlgmr.msra.gmra.mxu0 %vm96_vm0, %v8676_v46 }
0x29f3   :  { %v4563_v47 = vpop.permute.xlu1 %4562 }
0x29f9   :  { %v4561_v35 = vpop.permute.xlu0 %4560 }
0x29fa   :  { %6821 = vmatprep.mubr.msk.bf16.mxu1 %vm96_vm0, %v4561_v35 }
0x29fb   :  { %6822 = vmatmul.mubr.msk.bf16.vlgmr.msra.gmra.mxu1 %vm96_vm0, %v4563_v47 }
0x2a48   :  { %v6815_v48 = vpop.f32.mrf.mxu0 }
0x2a49   :  { %v4551_v2 = vmul.f32 %v7386_v19, %v6815_v48  ;;  %v8751_v48 = vld [vmem:[%s9022_s8] sm:$0xff] }
0x2a4a   :  { %v4535_v20 = vpop.f32.mrf.mxu0 }
0x2a4b   :  { %v4554_v29 = vadd.f32 %v4551_v2, %v4492_v54  ;;  %v4549_v9 = vmul.f32 %v7387_v57, %v4535_v20  ;;  %v8758_v20 = vld [vmem:[%s9022_s8 + $0x8] sm:$0xff] }
0x2a4c   :  { %v6816_v4 = vpop.f32.mrf.mxu0 }
0x2a4d   :  { %v4552_v32 = vadd.f32 %v4549_v9, %v4490_v49  ;;  %v8732_v31 = vpack.c.bf16 %v4554_v29, %v4554_v29  ;;  %v8764_v4 = vld [vmem:[%s9022_s8 + $0x10] sm:$0xff]  ;;  %s9085_s8 = sld [smem:[#allocation9_spill]] }
0x2a4e   :  { %v4538_v43 = vpop.f32.mrf.mxu0 }
0x2a4f   :  { %v4550_v41 = vmul.f32 %v7390_v0, %v4538_v43 }
0x2a51   :  { %v4553_v25 = vadd.f32 %v4550_v41, %v4491_v62 }
0x2a53   :  { %v8708_v7 = vpack.c.bf16 %v4553_v25, %v4552_v32 }
0x2a55   :  { %6829 = vmatprep.mubr.msk.bf16.mxu0 %vm386_vm1, %v8708_v7 }
0x2abb   :  { %v6823_v55 = vpop.f32.mrf.mxu1 }
0x2abc   :  { %v4620_v59 = vmul.f32 %v7386_v19, %v6823_v55 }
0x2abd   :  { %v4604_v27 = vpop.f32.mrf.mxu1 }
0x2abe   :  { %4628 = vrot.lane.b32.xlu1 %v4620_v59, %s9072_s26  ;;  %v4618_v37 = vmul.f32 %v7387_v57, %v4604_v27 }
0x2abf   :  { %v6824_v51 = vpop.f32.mrf.mxu1 }
0x2ac1   :  { %v4607_v63 = vpop.f32.mrf.mxu1 }
0x2ac2   :  { %v4619_v1 = vmul.f32 %v7390_v0, %v4607_v63  ;;  %4624 = vrot.lane.b32.xlu1 %v4618_v37, %s9072_s26 }
0x2ac4   :  { %4626 = vrot.lane.b32.xlu0 %v4619_v1, %s9072_s26 }
0x2b30   :  { %v4629_v13 = vpop.permute.xlu1 %4628 }
0x2b31   :  { %v4635_v30 = vadd.f32 %v4629_v13, %v4557_v38 }
0x2b33   :  { %v8716_v16 = vpack.c.bf16 %v4635_v30, %v4635_v30 }
0x2b34   :  { %v4625_v26 = vpop.permute.xlu1 %4624 }
0x2b35   :  { %4644 = vrot.lane.b32.xlu1 %v8716_v16, %s9083_s20  ;;  %v4633_v28 = vadd.f32 %v4625_v26, %v4555_v52 }
0x2b36   :  { %v4627_v11 = vpop.permute.xlu0 %4626 }
0x2b37   :  { %v4634_v36 = vadd.f32 %v4627_v11, %v4556_v8 }
0x2b39   :  { %v8722_v3 = vpack.c.bf16 %v4634_v36, %v4633_v28  ;;  %4870 = vrot.lane.b32.xlu1 %v8716_v16, %s9073_s4 }
0x2b3b   :  { %4642 = vrot.lane.b32.xlu0 %v8722_v3, %s9083_s20 }
0x2b3d   :  { %4864 = vrot.lane.b32.xlu1 %v8708_v7, %s9074_s3 }
0x2b3f   :  { %4868 = vrot.lane.b32.xlu0 %v8722_v3, %s9073_s4 }
0x2b43   :  { %4866 = vrot.lane.b32.xlu0 %v8732_v31, %s9074_s3 }
0x2ba7   :  { %v4645_v17 = vpop.permute.xlu1 %4644 }
0x2ba8   :  { %v4656_v39 = vsel %vm386_vm1, %v4645_v17, 0  ;;  %6990 = vmatprep.subr.msk.bf16.mxu0 %vm386_vm1, %v4645_v17 }
0x2ba9   :  { %6826 = vmatpush3.bf16.xpose.msra.mxu0 %v4656_v39 }
0x2bab   :  { %v4871_v15 = vpop.permute.xlu1 %4870 }
0x2bac   :  { %v4882_v56 = vsel %vm386_vm1, %v4871_v15, 0 }
0x2bad   :  { %v4643_v60 = vpop.permute.xlu0 %4642 }
0x2bae   :  { %6991 = vmatprep.subr.msk.bf16.mxu0 %vm386_vm1, %v4643_v60  ;;  %v4653_v33 = vsel %vm386_vm1, %v4643_v60, 0 }
0x2baf   :  { %v4865_v18 = vpop.permute.xlu1 %4864 }
0x2bb1   :  { %6828 = vmatpush3.bf16.xpose.msra.mxu0 %v4653_v33  ;;  %v4869_v12 = vpop.permute.xlu0 %4868 }
0x2bb2   :  { %6994 = vmatprep.subr.msk.bf16.mxu0 %vm386_vm1, %v4871_v15  ;;  %v4879_v34 = vsel %vm386_vm1, %v4869_v12, 0 }
0x2bb5   :  { %v4867_v40 = vpop.permute.xlu0 %4866 }
0x2bb8   :  { %6830 = vmatmul.mubr.msk.bf16.vlgmr.msra.gmra.mxu0 %vm386_vm1, %v8732_v31 }
0x2bb9   :  { %6848 = vmatpush3.bf16.xpose.msra.mxu0 %v4882_v56  ;;  %6851 = vmatprep.mubr.msk.bf16.mxu0 %vm386_vm1, %v4865_v18 }
0x2bba   :  { %6995 = vmatprep.subr.msk.bf16.mxu0 %vm386_vm1, %v4869_v12 }
0x2bc1   :  { %6850 = vmatpush3.bf16.xpose.msra.mxu0 %v4879_v34 }
0x2bc8   :  { %6852 = vmatmul.mubr.msk.bf16.vlgmr.msra.gmra.mxu0 %vm386_vm1, %v4867_v40 }
0x2c78   :  { %v6831_v35 = vpop.f32.mrf.mxu0 }
0x2c79   :  { %v4701_v57 = vadd.f32 %v8764_v4, %v6831_v35  ;;  %v7394_v35 = vld [vmem:[%s9012_s15 + $0x10] sm:$0xf] }
0x2c7a   :  { %v4692_v47 = vpop.f32.mrf.mxu0 }
0x2c7b   :  { %v4693_v50 = vadd.f32 %v8751_v48, %v4692_v47  ;;  %v4712_v43 = vsel %vm447_vm2, %v4701_v57, -inf }
0x2c7c   :  { %v6832_v54 = vpop.f32.mrf.mxu0 }
0x2c7d   :  { %v4706_v19 = vsel %vm447_vm2, %v4693_v50, -inf }
0x2c7e   :  { %v4695_v2 = vpop.f32.mrf.mxu0  ;;  %4707 = vmax.xlane.f32.xlu1 %v4706_v19 }
0x2c7f   :  { %v4696_v29 = vadd.f32 %v8758_v20, %v4695_v2 }
0x2c81   :  { %v4709_v9 = vsel %vm447_vm2, %v4696_v29, -inf }
0x2c82   :  { %4710 = vmax.xlane.f32.xlu0 %v4709_v9 }
0x2c86   :  { %4713 = vmax.xlane.f32.xlu0 %v4712_v43 }
0x2c88   :  { %v6853_v14 = vpop.f32.mrf.mxu0 }
0x2c89   :  { %v4927_v11 = vadd.f32 %v8764_v4, %v6853_v14 }
0x2c8a   :  { %v4918_v49 = vpop.f32.mrf.mxu0 }
0x2c8b   :  { %v4919_v52 = vadd.f32 %v8751_v48, %v4918_v49  ;;  %v4938_v17 = vsel %vm447_vm2, %v4927_v11, -inf }
0x2c8c   :  { %v6854_v42 = vpop.f32.mrf.mxu0 }
0x2c8d   :  { %v4932_v28 = vsel %vm447_vm2, %v4919_v52, -inf }
0x2c8e   :  { %v4921_v26 = vpop.f32.mrf.mxu0 }
0x2c8f   :  { %v4922_v8 = vadd.f32 %v8758_v20, %v4921_v26 }
0x2c91   :  { %v4935_v36 = vsel %vm447_vm2, %v4922_v8, -inf }
0x2d07   :  { %v4708_v62 = vpop.xlane.xlu1 %4707 }
0x2d08   :  { %v4715_v32 = vsub.f32 %v4693_v50, %v4708_v62 }
0x2d0a   :  { %v4718_v27 = vmul.f32 1.442695, %v4715_v32 }
0x2d0b   :  { %v4711_v0 = vpop.xlane.xlu0 %4710 }
0x2d0c   :  { %v4716_v41 = vsub.f32 %v4696_v29, %v4711_v0 }
0x2d0e   :  { %v4720_v25 = vmul.f32 1.442695, %v4716_v41 }
0x2d0f   :  { %v4714_v55 = vpop.xlane.xlu0 %4713 }
0x2d10   :  { %7274 = vpow2.f32 %v4720_v25  ;;  %v4717_v59 = vsub.f32 %v4701_v57, %v4714_v55 }
0x2d12   :  { %v4722_v51 = vmul.f32 1.442695, %v4717_v59 }
0x2d14   :  { %7276 = vpow2.f32 %v4722_v51 }
0x2d15   :  { %7278 = vpow2.f32 %v4718_v27 }
0x2d1d   :  { %v7275_v37 = vpop.eup %7274 }
0x2d1e   :  { %v4727_v63 = vsel %vm447_vm2, %v7275_v37, 0.0 }
0x2d1f   :  { %4728 = vadd.xlane.f32.xlu1 %v4727_v63 }
0x2d21   :  { %v7277_v1 = vpop.eup %7276 }
0x2d22   :  { %v4730_v38 = vsel %vm447_vm2, %v7277_v1, 0.0  ;;  %v7279_v13 = vpop.eup %7278 }
0x2d23   :  { %4731 = vadd.xlane.f32.xlu0 %v4730_v38  ;;  %v4724_v30 = vsel %vm447_vm2, %v7279_v13, 0.0 }
0x2d27   :  { %4725 = vadd.xlane.f32.xlu0 %v4724_v30 }
0x2d30   :  { %4743 = vrot.lane.b32.xlu1 %v8676_v46, %s9082_s22 }
0x2d34   :  { %5094 = vrot.lane.b32.xlu1 %v8716_v16, %s9075_s5 }
0x2d38   :  { %5092 = vrot.lane.b32.xlu1 %v8722_v3, %s9075_s5 }
0x2d3c   :  { %5088 = vrot.lane.b32.xlu1 %v8708_v7, %s9076_s24 }
0x2d3d   :  { %4741 = vrot.lane.b32.xlu0 %v8680_v44, %s9082_s22 }
0x2d41   :  { %5090 = vrot.lane.b32.xlu0 %v8732_v31, %s9076_s24 }
0x2d60   :  { %4933 = vmax.xlane.f32.xlu1 %v4932_v28  ;;  %4936 = vmax.xlane.f32.xlu0 %v4935_v36 }
0x2d64   :  { %4939 = vmax.xlane.f32.xlu0 %v4938_v17 }
0x2da8   :  { %v4729_v39 = vpop.xlane.xlu1 %4728 }
0x2dac   :  { %v4732_v60 = vpop.xlane.xlu0 %4731  ;;  %v4744_v33 = vpop.permute.xlu1 %4743 }
0x2dad   :  { %v4753_v15 = vsel %vm494_vm3, %v4744_v33, 0  ;;  %6992 = vmatprep.subr.msk.bf16.mxu1 %vm494_vm3, %v4744_v33  ;;  %7280 = vrcp.f32 %v4732_v60 }
0x2dae   :  { %6834 = vmatpush3.bf16.msra.mxu1 %v4753_v15  ;;  %7282 = vrcp.f32 %v4729_v39 }
0x2db0   :  { %v4726_v56 = vpop.xlane.xlu0 %4725  ;;  %v5095_v18 = vpop.permute.xlu1 %5094 }
0x2db1   :  { %7284 = vrcp.f32 %v4726_v56  ;;  %v5106_v12 = vsel %vm386_vm1, %v5095_v18, 0  ;;  %6998 = vmatprep.subr.msk.bf16.mxu0 %vm386_vm1, %v5095_v18 }
0x2db2   :  { %6870 = vmatpush3.bf16.xpose.msra.mxu0 %v5106_v12 }
0x2db4   :  { %v4742_v34 = vpop.permute.xlu0 %4741  ;;  %v5093_v40 = vpop.permute.xlu1 %5092 }
0x2db5   :  { %6835 = vmatprep.subr.bf16.mxu1 %v4742_v34  ;;  %6999 = vmatprep.subr.msk.bf16.mxu0 %vm386_vm1, %v5093_v40  ;;  %v5103_v50 = vsel %vm386_vm1, %v5093_v40, 0 }
0x2db6   :  { %6836 = vmatpush3.bf16.msra.mxu1 %v4742_v34 }
0x2db7   :  { %6993 = vmatprep.subr.msk.bf16.mxu1 %vm494_vm3, %v7394_v35 }
0x2db8   :  { %v5089_v47 = vpop.permute.xlu1 %5088  ;;  %v5091_v43 = vpop.permute.xlu0 %5090 }
0x2db9   :  { %6873 = vmatprep.mubr.msk.bf16.mxu0 %vm386_vm1, %v5089_v47 }
0x2dba   :  { %6872 = vmatpush3.bf16.xpose.msra.mxu0 %v5103_v50  ;;  %v7281_v54 = vpop.eup %7280 }
0x2dbb   :  { %v7283_v19 = vpop.eup %7282  ;;  %v4738_v29 = vmul.f32 %v7281_v54, %v7277_v1  ;;  %v7395_v54 = vld [vmem:[%s9012_s15 + $0x14] sm:$0xf] }
0x2dbc   :  { %v4737_v9 = vmul.f32 %v7283_v19, %v7275_v37 }
0x2dbd   :  { %v4740_v49 = vpack.c.bf16 %v4738_v29, %v4738_v29 }
0x2dbe   :  { %v7285_v2 = vpop.eup %7284 }
0x2dbf   :  { %v4736_v57 = vmul.f32 %v7285_v2, %v7279_v13 }
0x2dc1   :  { %6874 = vmatmul.mubr.msk.bf16.vlgmr.msra.gmra.mxu0 %vm386_vm1, %v5091_v43  ;;  %v4739_v14 = vpack.c.bf16 %v4737_v9, %v4736_v57  ;;  %v7396_v9 = vld [vmem:[%s9013_s16 + $0x18] sm:$0xff]  }
0x2dc3   :  { %6837 = vmatprep.mubr.msk.bf16.mxu1 %vm447_vm2, %v4739_v14 }
0x2dc4   :  { %6838 = vmatmul.mubr.msk.bf16.vlgmr.msra.gmra.mxu1 %vm447_vm2, %v4740_v49 }
0x2dc5   :  { %6842 = vmatpush3.bf16.msra.mxu1 %v8091_v21 }
0x2de9   :  { %v4937_v42 = vpop.xlane.xlu0 %4936  ;;  %v4934_v62 = vpop.xlane.xlu1 %4933 }
0x2dea   :  { %v4942_v0 = vsub.f32 %v4922_v8, %v4937_v42  ;;  %v4941_v32 = vsub.f32 %v4919_v52, %v4934_v62 }
0x2dec   :  { %v4946_v41 = vmul.f32 1.442695, %v4942_v0  ;;  %v4944_v59 = vmul.f32 1.442695, %v4941_v32  ;;  %v7397_v32 = vld [vmem:[%s9013_s16 + $0x10] sm:$0xff]  }
0x2ded   :  { %v4940_v25 = vpop.xlane.xlu0 %4939 }
0x2dee   :  { %7286 = vpow2.f32 %v4946_v41  ;;  %v4943_v55 = vsub.f32 %v4927_v11, %v4940_v25 }
0x2df0   :  { %v4948_v27 = vmul.f32 1.442695, %v4943_v55 }
0x2df2   :  { %7288 = vpow2.f32 %v4948_v27 }
0x2df3   :  { %7290 = vpow2.f32 %v4944_v59 }
0x2dfb   :  { %v8805_v51 = vpop.eup %7286 }
0x2dfc   :  { %v4953_v37 = vsel %vm447_vm2, %v8805_v51, 0.0 }
0x2dfd   :  { %4954 = vadd.xlane.f32.xlu1 %v4953_v37 }
0x2dff   :  { %v8809_v63 = vpop.eup %7288 }
0x2e00   :  { %v4956_v21 = vsel %vm447_vm2, %v8809_v63, 0.0  ;;  %v7291_v1 = vpop.eup %7290 }
0x2e01   :  { %4957 = vadd.xlane.f32.xlu0 %v4956_v21  ;;  %v4950_v38 = vsel %vm447_vm2, %v7291_v1, 0.0 }
0x2e05   :  { %4951 = vadd.xlane.f32.xlu0 %v4950_v38 }
0x2e0e   :  { %4969 = vrot.lane.b32.xlu1 %v8676_v46, %s9077_s9 }
0x2e12   :  { %5318 = vrot.lane.b32.xlu1 %v8716_v16, %s9078_s30 }
0x2e16   :  { %5316 = vrot.lane.b32.xlu1 %v8722_v3, %s9078_s30 }
0x2e1a   :  { %5312 = vrot.lane.b32.xlu1 %v8708_v7, %s9079_s12 }
0x2e1b   :  { %4967 = vrot.lane.b32.xlu0 %v8680_v44, %s9077_s9 }
0x2e1f   :  { %5314 = vrot.lane.b32.xlu0 %v8732_v31, %s9079_s12 }
0x2e81   :  { %v6875_v13 = vpop.f32.mrf.mxu0 }
0x2e82   :  { %v5151_v17 = vadd.f32 %v8764_v4, %v6875_v13 }
0x2e83   :  { %v5142_v30 = vpop.f32.mrf.mxu0 }
0x2e84   :  { %v8827_v26 = vadd.f32 %v8751_v48, %v5142_v30  ;;  %v6839_v52 = vpop.f32.mrf.mxu1  ;;  %v5162_v34 = vsel %vm447_vm2, %v5151_v17, -inf }
0x2e85   :  { %v6876_v8 = vpop.f32.mrf.mxu0  ;;  %v4804_v56 = vpack.c.bf16 %v6839_v52, %v6839_v52 }
0x2e86   :  { %v4789_v16 = vpop.f32.mrf.mxu1  ;;  %v4955_v11 = vpop.xlane.xlu1 %4954  ;;  %v5156_v3 = vsel %vm447_vm2, %v8827_v26, -inf }
0x2e87   :  { %v5145_v28 = vpop.f32.mrf.mxu0  ;;  %5157 = vmax.xlane.f32.xlu1 %v5156_v3 }
0x2e88   :  { %v5146_v7 = vadd.f32 %v8758_v20, %v5145_v28  ;;  %v6840_v36 = vpop.f32.mrf.mxu1 }
0x2e8a   :  { %v4958_v31 = vpop.xlane.xlu0 %4957  ;;  %v4792_v39 = vpop.f32.mrf.mxu1  ;;  %v5159_v60 = vsel %vm447_vm2, %v5146_v7, -inf }
0x2e8b   :  { %v4803_v33 = vpack.c.bf16 %v4792_v39, %v4789_v16  ;;  %v4970_v15 = vpop.permute.xlu1 %4969  ;;  %5160 = vmax.xlane.f32.xlu0 %v5159_v60  ;;  %7292 = vrcp.f32 %v4958_v31 }
0x2e8c   :  { %6996 = vmatprep.subr.msk.bf16.mxu1 %vm494_vm3, %v4970_v15  ;;  %7294 = vrcp.f32 %v4955_v11  ;;  %v4979_v18 = vsel %vm494_vm3, %v4970_v15, 0 }
0x2e8d   :  { %6843 = vmatprep.mubr.msk.bf16.mxu1 %vm386_vm1, %v4803_v33 }
0x2e8e   :  { %6844 = vmatmul.mubr.msk.bf16.vlgmr.msra.gmra.mxu1 %vm386_vm1, %v4804_v56  ;;  %v4952_v12 = vpop.xlane.xlu0 %4951 }
0x2e8f   :  { %7296 = vrcp.f32 %v4952_v12  ;;  %6856 = vmatpush3.bf16.msra.mxu1 %v4979_v18  ;;  %v5319_v40 = vpop.permute.xlu1 %5318  ;;  %5163 = vmax.xlane.f32.xlu0 %v5162_v34 }
0x2e90   :  { %v5330_v35 = vsel %vm386_vm1, %v5319_v40, 0  ;;  %7002 = vmatprep.subr.msk.bf16.mxu0 %vm386_vm1, %v5319_v40 }
0x2e91   :  { %6892 = vmatpush3.bf16.xpose.msra.mxu0 %v5330_v35 }
0x2e92   :  { %v4968_v47 = vpop.permute.xlu0 %4967 }
0x2e93   :  { %v5317_v50 = vpop.permute.xlu1 %5316  ;;  %6857 = vmatprep.subr.bf16.mxu1 %v4968_v47 }
0x2e94   :  { %7003 = vmatprep.subr.msk.bf16.mxu0 %vm386_vm1, %v5317_v50  ;;  %6858 = vmatpush3.bf16.msra.mxu1 %v4968_v47  ;;  %v5327_v2 = vsel %vm386_vm1, %v5317_v50, 0 }
0x2e95   :  { %6997 = vmatprep.subr.msk.bf16.mxu1 %vm494_vm3, %v7395_v54 }
0x2e96   :  { %v5315_v62 = vpop.permute.xlu0 %5314 }
0x2e97   :  { %v5313_v19 = vpop.permute.xlu1 %5312 }
0x2e98   :  { %6895 = vmatprep.mubr.msk.bf16.mxu0 %vm386_vm1, %v5313_v19  ;;  %v7293_v29 = vpop.eup %7292 }
0x2e99   :  { %6894 = vmatpush3.bf16.xpose.msra.mxu0 %v5327_v2  ;;  %v7295_v57 = vpop.eup %7294  ;;  %v4964_v14 = vmul.f32 %v7293_v29, %v8809_v63  ;;  %v7398_v2 = vld [vmem:[%s9012_s15 + $0x18] sm:$0xf] }
0x2e9a   :  { %6913 = vmatprep.subr.bf16.mxu0 %v7396_v9  ;;  %v4963_v42 = vmul.f32 %v7295_v57, %v8805_v51 }
0x2e9b   :  { %v4966_v41 = vpack.c.bf16 %v4964_v14, %v4964_v14 }
0x2e9c   :  { %v7297_v43 = vpop.eup %7296 }
0x2e9d   :  { %v4962_v49 = vmul.f32 %v7297_v43, %v7291_v1 }
0x2e9f   :  { %v4965_v0 = vpack.c.bf16 %v4963_v42, %v4962_v49 }
0x2ea0   :  { %6896 = vmatmul.mubr.msk.bf16.vlgmr.msra.gmra.mxu0 %vm386_vm1, %v5315_v62 }
0x2ea1   :  { %6859 = vmatprep.mubr.msk.bf16.mxu1 %vm447_vm2, %v4965_v0  ;;  %6914 = vmatpush3.bf16.msra.mxu0 %v7396_v9 }
0x2ea2   :  { %6860 = vmatmul.mubr.msk.bf16.vlgmr.msra.gmra.mxu1 %vm447_vm2, %v4966_v41  ;;  %6915 = vmatprep.subr.bf16.mxu0 %v7397_v32 }
0x2ea3   :  { %6864 = vmatpush3.bf16.msra.mxu1 %v8134_v10 }
0x2ea5   :  { %6916 = vmatpush3.bf16.msra.mxu0 %v7397_v32 }
0x2f10   :  { %v5158_v25 = vpop.xlane.xlu1 %5157 }
0x2f11   :  { %v5165_v27 = vsub.f32 %v8827_v26, %v5158_v25 }
0x2f13   :  { %v5168_v21 = vmul.f32 1.442695, %v5165_v27 }
0x2f14   :  { %v5161_v55 = vpop.xlane.xlu0 %5160 }
0x2f15   :  { %v5166_v59 = vsub.f32 %v5146_v7, %v5161_v55 }
0x2f17   :  { %v5170_v51 = vmul.f32 1.442695, %v5166_v59 }
0x2f18   :  { %v5164_v37 = vpop.xlane.xlu0 %5163 }
0x2f19   :  { %7298 = vpow2.f32 %v5170_v51  ;;  %v5167_v63 = vsub.f32 %v5151_v17, %v5164_v37 }
0x2f1b   :  { %v5172_v1 = vmul.f32 1.442695, %v5167_v63 }
0x2f1d   :  { %7300 = vpow2.f32 %v5172_v1 }
0x2f1e   :  { %7302 = vpow2.f32 %v5168_v21 }
0x2f26   :  { %v7299_v38 = vpop.eup %7298 }
0x2f27   :  { %v5177_v13 = vsel %vm447_vm2, %v7299_v38, 0.0 }
0x2f28   :  { %5178 = vadd.xlane.f32.xlu1 %v5177_v13 }
0x2f2a   :  { %v7301_v30 = vpop.eup %7300 }
0x2f2b   :  { %v5180_v10 = vsel %vm447_vm2, %v7301_v30, 0.0  ;;  %v7303_v52 = vpop.eup %7302 }
0x2f2c   :  { %5181 = vadd.xlane.f32.xlu0 %v5180_v10  ;;  %v5174_v8 = vsel %vm447_vm2, %v7303_v52, 0.0 }
0x2f30   :  { %5175 = vadd.xlane.f32.xlu0 %v5174_v8 }
0x2f39   :  { %5193 = vrot.lane.b32.xlu1 %v8676_v46, %s9080_s23 }
0x2f46   :  { %5191 = vrot.lane.b32.xlu0 %v8680_v44, %s9080_s23 }
0x2f4e   :  { %v8868_v26 = vpop.f32.mrf.mxu1 }
0x2f50   :  { %v8870_v16 = vpop.f32.mrf.mxu1 }
0x2f52   :  { %v6846_v11 = vpop.f32.mrf.mxu1 }
0x2f54   :  { %v8872_v3 = vpop.f32.mrf.mxu1 }
0x2f60   :  { %v6897_v28 = vpop.f32.mrf.mxu0 }
0x2f61   :  { %v5375_v60 = vadd.f32 %v8764_v4, %v6897_v28 }
0x2f62   :  { %v5366_v7 = vpop.f32.mrf.mxu0  ;;  %v6861_v36 = vpop.f32.mrf.mxu1 }
0x2f63   :  { %v5367_v17 = vadd.f32 %v8751_v48, %v5366_v7  ;;  %v5386_v40 = vsel %vm447_vm2, %v5375_v60, -inf  ;;  %v5030_v47 = vpack.c.bf16 %v6861_v36, %v6861_v36 }
0x2f64   :  { %v6898_v31 = vpop.f32.mrf.mxu0  ;;  %v5015_v39 = vpop.f32.mrf.mxu1 }
0x2f65   :  { %v5380_v33 = vsel %vm447_vm2, %v5367_v17, -inf }
0x2f66   :  { %v5369_v15 = vpop.f32.mrf.mxu0  ;;  %5381 = vmax.xlane.f32.xlu1 %v5380_v33  ;;  %v6862_v56 = vpop.f32.mrf.mxu1 }
0x2f67   :  { %v5370_v18 = vadd.f32 %v8758_v20, %v5369_v15  ;;  %v7399_v56 = vld [vmem:[%s9012_s15 + $0x1c] sm:$0xf] }
0x2f68   :  { %v5018_v12 = vpop.f32.mrf.mxu1 }
0x2f69   :  { %v5029_v34 = vpack.c.bf16 %v5018_v12, %v5015_v39  ;;  %v5383_v35 = vsel %vm447_vm2, %v5370_v18, -inf }
0x2f6a   :  { %5387 = vmax.xlane.f32.xlu1 %v5386_v40  ;;  %5384 = vmax.xlane.f32.xlu0 %v5383_v35 }
0x2f6b   :  { %6865 = vmatprep.mubr.msk.bf16.mxu1 %vm386_vm1, %v5029_v34 }
0x2f6c   :  { %6866 = vmatmul.mubr.msk.bf16.vlgmr.msra.gmra.mxu1 %vm386_vm1, %v5030_v47 }
0x2fb1   :  { %v5179_v48 = vpop.xlane.xlu1 %5178 }
0x2fb5   :  { %v5182_v4 = vpop.xlane.xlu0 %5181  ;;  %v5194_v50 = vpop.permute.xlu1 %5193 }
0x2fb6   :  { %v5203_v54 = vsel %vm494_vm3, %v5194_v50, 0  ;;  %7000 = vmatprep.subr.msk.bf16.mxu1 %vm494_vm3, %v5194_v50  ;;  %7304 = vrcp.f32 %v5182_v4  ;;  %v7400_v50 = vld [vmem:[%s9015_s17 + $0x38] sm:$0xff]  }
0x2fb7   :  { %6878 = vmatpush3.bf16.msra.mxu1 %v5203_v54  ;;  %7306 = vrcp.f32 %v5179_v48 }
0x2fb9   :  { %v5176_v20 = vpop.xlane.xlu0 %5175 }
0x2fba   :  { %7308 = vrcp.f32 %v5176_v20 }
0x2fbd   :  { %v5192_v19 = vpop.permute.xlu0 %5191 }
0x2fbe   :  { %6879 = vmatprep.subr.bf16.mxu1 %v5192_v19 }
0x2fbf   :  { %6880 = vmatpush3.bf16.msra.mxu1 %v5192_v19 }
0x2fc0   :  { %7001 = vmatprep.subr.msk.bf16.mxu1 %vm494_vm3, %v7398_v2  ;;  %v4860_v2 = vadd.f32 %v8872_v3, %v8648_v45  ;;  %v7401_v45 = vld [vmem:[%s9015_s17 + $0x30] sm:$0xff]   ;;  %v7402_v3 = vld [vmem:[%s9015_s17 + $0x28] sm:$0xff]  }
0x2fc3   :  { %v7305_v29 = vpop.eup %7304 }
0x2fc4   :  { %v7307_v57 = vpop.eup %7306  ;;  %v5188_v43 = vmul.f32 %v7305_v29, %v7301_v30  ;;  %v4861_v30 = vadd.f32 %v8868_v26, %v8645_v61 }
0x2fc5   :  { %v5187_v49 = vmul.f32 %v7307_v57, %v7299_v38 }
0x2fc6   :  { %v5190_v62 = vpack.c.bf16 %v5188_v43, %v5188_v43 }
0x2fc7   :  { %v7309_v9 = vpop.eup %7308 }
0x2fc8   :  { %v5186_v14 = vmul.f32 %v7309_v9, %v7303_v52  ;;  %v4859_v52 = vadd.f32 %v8870_v16, %v8640_v53 }
0x2fca   :  { %v5189_v42 = vpack.c.bf16 %v5187_v49, %v5186_v14 }
0x2fcc   :  { %6881 = vmatprep.mubr.msk.bf16.mxu1 %vm447_vm2, %v5189_v42 }
0x2fcd   :  { %6882 = vmatmul.mubr.msk.bf16.vlgmr.msra.gmra.mxu1 %vm447_vm2, %v5190_v62 }
0x2fce   :  { %6886 = vmatpush3.bf16.msra.mxu1 %v8171_v5 }
0x2fef   :  { %v5382_v0 = vpop.xlane.xlu1 %5381 }
0x2ff0   :  { %v5389_v41 = vsub.f32 %v5367_v17, %v5382_v0 }
0x2ff2   :  { %v5392_v37 = vmul.f32 1.442695, %v5389_v41 }
0x2ff3   :  { %v5385_v32 = vpop.xlane.xlu0 %5384  ;;  %v5388_v25 = vpop.xlane.xlu1 %5387 }
0x2ff4   :  { %v5390_v55 = vsub.f32 %v5370_v18, %v5385_v32  ;;  %v5391_v59 = vsub.f32 %v5375_v60, %v5388_v25  ;;  %v7403_v32 = vld [vmem:[%s9015_s17 + $0x20] sm:$0xff]  }
0x2ff6   :  { %v5394_v27 = vmul.f32 1.442695, %v5390_v55  ;;  %v5396_v51 = vmul.f32 1.442695, %v5391_v59 }
0x2ff8   :  { %7310 = vpow2.f32 %v5394_v27 }
0x2ff9   :  { %7312 = vpow2.f32 %v5396_v51 }
0x2ffa   :  { %7314 = vpow2.f32 %v5392_v37 }
0x3005   :  { %v7311_v63 = vpop.eup %7310 }
0x3006   :  { %v7313_v21 = vpop.eup %7312  ;;  %v5401_v1 = vsel %vm447_vm2, %v7311_v63, 0.0 }
0x3007   :  { %5402 = vadd.xlane.f32.xlu1 %v5401_v1  ;;  %v5404_v38 = vsel %vm447_vm2, %v7313_v21, 0.0  ;;  %v7315_v5 = vpop.eup %7314 }
0x3008   :  { %5405 = vadd.xlane.f32.xlu0 %v5404_v38  ;;  %v5398_v13 = vsel %vm447_vm2, %v7315_v5, 0.0 }
0x300c   :  { %5399 = vadd.xlane.f32.xlu0 %v5398_v13 }
0x3018   :  { %5417 = vrot.lane.b32.xlu1 %v8676_v46, %s9081_s14 }
0x3022   :  { %5415 = vrot.lane.b32.xlu0 %v8680_v44, %s9081_s14 }
0x302c   :  { %v6867_v10 = vpop.f32.mrf.mxu1 }
0x302d   :  { %v5087_v8 = vadd.f32 %v6867_v10, %v4861_v30 }
0x302e   :  { %v5071_v11 = vpop.f32.mrf.mxu1 }
0x302f   :  { %v5085_v28 = vadd.f32 %v5071_v11, %v4859_v52 }
0x3030   :  { %v6868_v7 = vpop.f32.mrf.mxu1 }
0x3032   :  { %v5074_v36 = vpop.f32.mrf.mxu1 }
0x3033   :  { %v5086_v9 = vadd.f32 %v5074_v36, %v4860_v2 }
0x308d   :  { %v6883_v17 = vpop.f32.mrf.mxu1 }
0x308e   :  { %v5254_v61 = vpack.c.bf16 %v6883_v17, %v6883_v17 }
0x308f   :  { %v5239_v31 = vpop.f32.mrf.mxu1 }
0x3090   :  { %v5403_v39 = vpop.xlane.xlu1 %5402 }
0x3091   :  { %v5406_v60 = vpop.xlane.xlu0 %5405  ;;  %v6884_v46 = vpop.f32.mrf.mxu1 }
0x3092   :  { %7316 = vrcp.f32 %v5406_v60 }
0x3093   :  { %v5242_v33 = vpop.f32.mrf.mxu1  ;;  %7318 = vrcp.f32 %v5403_v39 }
0x3094   :  { %v5253_v44 = vpack.c.bf16 %v5242_v33, %v5239_v31  ;;  %v5418_v15 = vpop.permute.xlu1 %5417 }
0x3095   :  { %v5400_v26 = vpop.xlane.xlu0 %5399  ;;  %7004 = vmatprep.subr.msk.bf16.mxu1 %vm494_vm3, %v5418_v15  ;;  %v5427_v53 = vsel %vm494_vm3, %v5418_v15, 0 }
0x3096   :  { %7320 = vrcp.f32 %v5400_v26  ;;  %6887 = vmatprep.mubr.msk.bf16.mxu1 %vm386_vm1, %v5253_v44 }
0x3097   :  { %6888 = vmatmul.mubr.msk.bf16.vlgmr.msra.gmra.mxu1 %vm386_vm1, %v5254_v61 }
0x3098   :  { %6900 = vmatpush3.bf16.msra.mxu1 %v5427_v53 }
0x3099   :  { %v5416_v16 = vpop.permute.xlu0 %5415 }
0x309a   :  { %6901 = vmatprep.subr.bf16.mxu1 %v5416_v16 }
0x309c   :  { %6902 = vmatpush3.bf16.msra.mxu1 %v5416_v16 }
0x309d   :  { %7005 = vmatprep.subr.msk.bf16.mxu1 %vm494_vm3, %v7399_v56 }
0x309f   :  { %v7317_v18 = vpop.eup %7316 }
0x30a0   :  { %v7319_v12 = vpop.eup %7318  ;;  %v5412_v40 = vmul.f32 %v7317_v18, %v7313_v21 }
0x30a1   :  { %v5411_v47 = vmul.f32 %v7319_v12, %v7311_v63 }
0x30a2   :  { %v5414_v4 = vpack.c.bf16 %v5412_v40, %v5412_v40 }
0x30a3   :  { %v7321_v34 = vpop.eup %7320 }
0x30a4   :  { %v5410_v35 = vmul.f32 %v7321_v34, %v7315_v5 }
0x30a6   :  { %v5413_v48 = vpack.c.bf16 %v5411_v47, %v5410_v35 }
0x30a8   :  { %6903 = vmatprep.mubr.msk.bf16.mxu1 %vm447_vm2, %v5413_v48 }
0x30a9   :  { %6904 = vmatmul.mubr.msk.bf16.vlgmr.msra.gmra.mxu1 %vm447_vm2, %v5414_v4 }
0x30aa   :  { %6908 = vmatpush3.bf16.msra.mxu1 %v8193_v6 }
0x30ab   :  { %6921 = vmatprep.subr.bf16.mxu1 %v7400_v50 }
0x3157   :  { %v6889_v54 = vpop.f32.mrf.mxu1 }
0x3158   :  { %v5311_v20 = vadd.f32 %v6889_v54, %v5087_v8 }
0x3159   :  { %v5295_v19 = vpop.f32.mrf.mxu1 }
0x315a   :  { %v5309_v29 = vadd.f32 %v5295_v19, %v5085_v28 }
0x315b   :  { %v6890_v57 = vpop.f32.mrf.mxu1 }
0x315d   :  { %v5298_v43 = vpop.f32.mrf.mxu1 }
0x315e   :  { %v5310_v14 = vadd.f32 %v5298_v43, %v5086_v9 }
0x3169   :  { %v6905_v49 = vpop.f32.mrf.mxu1 }
0x316a   :  { %v5478_v41 = vpack.c.bf16 %v6905_v49, %v6905_v49 }
0x316b   :  { %v5463_v42 = vpop.f32.mrf.mxu1 }
0x316d   :  { %v6906_v62 = vpop.f32.mrf.mxu1 }
0x316f   :  { %v5466_v6 = vpop.f32.mrf.mxu1 }
0x3170   :  { %v5477_v0 = vpack.c.bf16 %v5466_v6, %v5463_v42 }
0x3172   :  { %6909 = vmatprep.mubr.msk.bf16.mxu1 %vm386_vm1, %v5477_v0 }
0x3173   :  { %6910 = vmatmul.mubr.msk.bf16.vlgmr.msra.gmra.mxu1 %vm386_vm1, %v5478_v41 }
0x3174   :  { %6922 = vmatpush3.bf16.msra.mxu1 %v7400_v50 }
0x3175   :  { %6923 = vmatprep.subr.bf16.mxu1 %v7401_v45 }
0x3178   :  { %6924 = vmatpush3.bf16.msra.mxu1 %v7401_v45 }
0x3179   :  { %6925 = vmatprep.subr.bf16.mxu1 %v7402_v3 }
0x317c   :  { %6926 = vmatpush3.bf16.msra.mxu1 %v7402_v3 }
0x317d   :  { %6927 = vmatprep.subr.bf16.mxu1 %v7403_v32 }
0x3180   :  { %6928 = vmatpush3.bf16.msra.mxu1 %v7403_v32 }
0x3233   :  { %v6911_v25 = vpop.f32.mrf.mxu1 }
0x3234   :  { %v8929_v59 = vadd.f32 %v6911_v25, %v5311_v20 }
0x3235   :  { %v5519_v55 = vpop.f32.mrf.mxu1 }
0x3236   :  { %v8931_v27 = vadd.f32 %v5519_v55, %v5309_v29  ;;  %v5538_v38 = vmul.f32 %v8929_v59, %v8929_v59 }
0x3237   :  { %v6912_v51 = vpop.f32.mrf.mxu1 }
0x3238   :  { %v5536_v37 = vmul.f32 %v8931_v27, %v8931_v27  ;;  %v5545_v13 = vsel %vm96_vm0, %v5538_v38, 0.0 }
0x3239   :  { %v5522_v63 = vpop.f32.mrf.mxu1 }
0x323a   :  { %v8935_v21 = vadd.f32 %v5522_v63, %v5310_v14  ;;  %v5539_v1 = vsel %vm96_vm0, %v5536_v37, 0.0 }
0x323b   :  { %5540 = vadd.xlane.f32.xlu1 %v5539_v1 }
0x323c   :  { %v5537_v5 = vmul.f32 %v8935_v21, %v8935_v21 }
0x323e   :  { %v5542_v30 = vsel %vm96_vm0, %v5537_v5, 0.0 }
0x323f   :  { %5546 = vadd.xlane.f32.xlu1 %v5545_v13  ;;  %5543 = vadd.xlane.f32.xlu0 %v5542_v30 }
0x32c4   :  { %v5541_v10 = vpop.xlane.xlu1 %5540 }
0x32c5   :  { %v5548_v52 = vmul.f32 0.03125, %v5541_v10 }
0x32c7   :  { %v5551_v8 = vadd.f32 1e-06, %v5548_v52 }
0x32c8   :  { %v5547_v11 = vpop.xlane.xlu1 %5546  ;;  %v5544_v28 = vpop.xlane.xlu0 %5543 }
0x32c9   :  { %v5550_v7 = vmul.f32 0.03125, %v5547_v11  ;;  %v5549_v36 = vmul.f32 0.03125, %v5544_v28  ;;  %7322 = vrsqrt.f32 %v5551_v8 }
0x32cb   :  { %v5553_v17 = vadd.f32 1e-06, %v5550_v7  ;;  %v5552_v31 = vadd.f32 1e-06, %v5549_v36 }
0x32cd   :  { %7324 = vrsqrt.f32 %v5553_v17 }
0x32ce   :  { %7326 = vrsqrt.f32 %v5552_v31 }
0x32d6   :  { %v7323_v39 = vpop.eup %7322 }
0x32d7   :  { %v5557_v46 = vmul.f32 %v7323_v39, %v8931_v27 }
0x32d9   :  { %v5560_v26 = vmul.f32 %v5557_v46, %v8226_v58 }
0x32da   :  { %v7325_v60 = vpop.eup %7324 }
0x32db   :  { %v7327_v33 = vpop.eup %7326  ;;  %v5559_v44 = vmul.f32 %v7325_v60, %v8929_v59 }
0x32dc   :  { %v5558_v15 = vmul.f32 %v7327_v33, %v8935_v21 }
0x32dd   :  { %v5562_v61 = vmul.f32 %v5559_v44, %v8226_v58 }
0x32de   :  { %v5561_v53 = vmul.f32 %v5558_v15, %v8226_v58 }
0x32df   :  { %v5564_v16 = vpack.c.bf16 %v5562_v61, %v5562_v61 }
0x32e0   :  { %v5563_v56 = vpack.c.bf16 %v5561_v53, %v5560_v26 }
0x32e2   :  { %6917 = vmatprep.mubr.msk.bf16.mxu0 %vm96_vm0, %v5563_v56 }
0x32e3   :  { %6918 = vmatmul.mubr.msk.bf16.vlgmr.msra.gmra.mxu0 %vm96_vm0, %v5564_v16 }
0x33a3   :  { %v6919_v18 = vpop.f32.mrf.mxu0 }
0x33a4   :  { %v6110_v58 = vmul.f32 -1.442695, %v6919_v18 }
0x33a5   :  { %v5605_v12 = vpop.f32.mrf.mxu0 }
0x33a6   :  { %5643 = vrot.lane.b32.xlu0 %v5605_v12, %s9082_s22  ;;  %v6108_v35 = vmul.f32 -1.442695, %v5605_v12 }
0x33a7   :  { %v6920_v34 = vpop.f32.mrf.mxu0 }
0x33a8   :  { %7328 = vpow2.f32 %v6108_v35 }
0x33a9   :  { %v5608_v40 = vpop.f32.mrf.mxu0 }
0x33aa   :  { %5645 = vrot.lane.b32.xlu1 %v5608_v40, %s9082_s22  ;;  %v6109_v47 = vmul.f32 -1.442695, %v5608_v40 }
0x33ac   :  { %7330 = vpow2.f32 %v6109_v47 }
0x33ad   :  { %7332 = vpow2.f32 %v6110_v58 }
0x33ae   :  { %5647 = vrot.lane.b32.xlu1 %v6919_v18, %s9082_s22 }
0x33b5   :  { %v7329_v48 = vpop.eup %7328 }
0x33b6   :  { %v5628_v50 = vadd.f32 1.0, %v7329_v48 }
0x33b8   :  { %7334 = vrcp.f32 %v5628_v50 }
0x33b9   :  { %v7331_v4 = vpop.eup %7330 }
0x33ba   :  { %v5629_v54 = vadd.f32 1.0, %v7331_v4  ;;  %v7333_v20 = vpop.eup %7332 }
0x33bb   :  { %v5630_v19 = vadd.f32 1.0, %v7333_v20 }
0x33bc   :  { %7336 = vrcp.f32 %v5629_v54 }
0x33bd   :  { %7338 = vrcp.f32 %v5630_v19 }
0x33c5   :  { %v7335_v2 = vpop.eup %7334 }
0x33c6   :  { %v5637_v9 = vmul.f32 %v7335_v2, %v5605_v12  ;;  %v8975_v12 = vand.u32 127, %v120_v22 }
0x33c8   :  { %vm5815_vm5 = vcmp.ge.s32.totalorder %v8975_v12, 64  ;;  %vm5895_vm8 = vcmp.eq.s32.totalorder %v8975_v12, 64 }
0x33c9   :  { %v7337_v29 = vpop.eup %7336  ;;  %vm5896_vm9 = vmand %vm5892_vm7, %vm5895_vm8 }
0x33ca   :  { %v5638_v43 = vmul.f32 %v7337_v29, %v5608_v40  ;;  %v7339_v14 = vpop.eup %7338 }
0x33cb   :  { %v5639_v0 = vmul.f32 %v7339_v14, %v6919_v18  ;;  %v5850_v14 = vld [vmem:[%s9085_s8 + $0x8] sm:$0xff] }
0x3418   :  { %v5644_v57 = vpop.permute.xlu0 %5643 }
0x3419   :  { %v5652_v42 = vmul.f32 %v5644_v57, %v5637_v9 }
0x341c   :  { %v5646_v49 = vpop.permute.xlu1 %5645 }
0x341d   :  { %v5653_v62 = vmul.f32 %v5646_v49, %v5638_v43 }
0x341f   :  { %v5655_v6 = vpack.c.bf16 %v5653_v62, %v5652_v42  ;;  %v5849_v42 = vld [vmem:[%s9085_s8] sm:$0xff] }
0x3420   :  { %v5648_v41 = vpop.permute.xlu1 %5647 }
0x3421   :  { %v5654_v45 = vmul.f32 %v5648_v41, %v5639_v0  ;;  %6929 = vmatprep.mubr.msk.bf16.mxu1 %vm1466_vm4, %v5655_v6  ;;  %v5851_v0 = vld [vmem:[%s9085_s8 + $0x10] sm:$0xff] }
0x3423   :  { %v5656_v3 = vpack.c.bf16 %v5654_v45, %v5654_v45 }
0x3425   :  { %6930 = vmatmul.mubr.msk.bf16.vlgmr.msra.gmra.mxu1 %vm1466_vm4, %v5656_v3 }
0x34e5   :  { %v6931_v32 = vpop.f32.mrf.mxu1 }
0x34e6   :  { %v5713_v1 = vadd.f32 %v6931_v32, %v8929_v59  ;;  %v7045_v59 = vld [vmem:[%s9023_s19] sm:$0xff]  }
0x34e7   :  { %v5697_v25 = vpop.f32.mrf.mxu1 }
0x34e8   :  { %v5711_v55 = vadd.f32 %v5697_v25, %v8931_v27  ;;  %v5716_v30 = vmul.f32 %v5713_v1, %v5713_v1  ;;  %v7044_v27 = vld [vmem:[%s9023_s19 + $0x8] sm:$0xff]  }
0x34e9   :  { %v6932_v51 = vpop.f32.mrf.mxu1  ;;  %6933 = vmatprep.subr.bf16.mxu0 %v7044_v27 }
0x34ea   :  { %v5714_v37 = vmul.f32 %v5711_v55, %v5711_v55  ;;  %v5723_v52 = vsel %vm96_vm0, %v5716_v30, 0.0  ;;  %6934 = vmatpush3.bf16.msra.mxu0 %v7044_v27 }
0x34eb   :  { %v5700_v63 = vpop.f32.mrf.mxu1  ;;  %6935 = vmatprep.subr.bf16.mxu0 %v7045_v59 }
0x34ec   :  { %v5712_v38 = vadd.f32 %v5700_v63, %v8935_v21  ;;  %v5717_v5 = vsel %vm96_vm0, %v5714_v37, 0.0 }
0x34ed   :  { %5718 = vadd.xlane.f32.xlu1 %v5717_v5 }
0x34ee   :  { %v5715_v13 = vmul.f32 %v5712_v38, %v5712_v38  ;;  %6936 = vmatpush3.bf16.msra.mxu0 %v7045_v59 }
0x34f0   :  { %v5720_v10 = vsel %vm96_vm0, %v5715_v13, 0.0 }
0x34f1   :  { %5721 = vadd.xlane.f32.xlu0 %v5720_v10 }
0x34f5   :  { %5724 = vadd.xlane.f32.xlu0 %v5723_v52 }
0x3576   :  { %v5719_v21 = vpop.xlane.xlu1 %5718 }
0x3577   :  { %v5726_v8 = vmul.f32 0.03125, %v5719_v21 }
0x3579   :  { %v5729_v11 = vadd.f32 1e-06, %v5726_v8 }
0x357a   :  { %v5722_v28 = vpop.xlane.xlu0 %5721 }
0x357b   :  { %7340 = vrsqrt.f32 %v5729_v11  ;;  %v5727_v7 = vmul.f32 0.03125, %v5722_v28 }
0x357d   :  { %v5730_v36 = vadd.f32 1e-06, %v5727_v7 }
0x357e   :  { %v5725_v17 = vpop.xlane.xlu0 %5724 }
0x357f   :  { %7342 = vrsqrt.f32 %v5730_v36  ;;  %v5728_v31 = vmul.f32 0.03125, %v5725_v17 }
0x3581   :  { %v5731_v39 = vadd.f32 1e-06, %v5728_v31 }
0x3583   :  { %7344 = vrsqrt.f32 %v5731_v39 }
0x3588   :  { %v7341_v60 = vpop.eup %7340 }
0x3589   :  { %v5735_v46 = vmul.f32 %v7341_v60, %v5711_v55 }
0x358b   :  { %v5738_v15 = vmul.f32 %v5735_v46, %v8280_v24 }
0x358c   :  { %v7343_v33 = vpop.eup %7342 }
0x358d   :  { %v5736_v44 = vmul.f32 %v7343_v33, %v5712_v38 }
0x358f   :  { %v5739_v61 = vmul.f32 %v5736_v44, %v8280_v24 }
0x3590   :  { %v7345_v26 = vpop.eup %7344 }
0x3591   :  { %v5737_v53 = vmul.f32 %v7345_v26, %v5713_v1  ;;  %v5745_v16 = vpack.c.bf16 %v5739_v61, %v5738_v15 }
0x3593   :  { %v5740_v56 = vmul.f32 %v5737_v53, %v8280_v24  ;;  %6937 = vmatprep.mubr.msk.bf16.mxu0 %vm96_vm0, %v5745_v16 }
0x3595   :  { %v5746_v18 = vpack.c.bf16 %v5740_v56, %v5740_v56 }
0x3597   :  { %6938 = vmatmul.mubr.msk.bf16.vlgmr.msra.gmra.mxu0 %vm96_vm0, %v5746_v18 }
0x3657   :  { %v6939_v34 = vpop.f32.mrf.mxu0 }
0x3658   :  { %v5818_v40 = vsel %vm5815_vm5, -1e+30, %v6939_v34 }
0x3659   :  { %5905 = vst [vmem:[%s9084_s7 + $0x10] sm:$0xff] %v5818_v40  ;;  %v5799_v35 = vpop.f32.mrf.mxu0  ;;  %v5854_v41 = vmul.f32 %v5851_v0, %v5818_v40 }
0x365a   :  { %v8981_v47 = vsel %vm5815_vm5, -1e+30, %v5799_v35 }
0x365b   :  { %5819 = vmax.xlane.f32.xlu0 %v8981_v47  ;;  %v6940_v24 = vpop.f32.mrf.mxu0  ;;  %v5852_v6 = vmul.f32 %v5849_v42, %v8981_v47 }
0x365d   :  { %v5802_v58 = vpop.f32.mrf.mxu0 }
0x365e   :  { %v5817_v48 = vsel %vm5815_vm5, -1e+30, %v5802_v58 }
0x365f   :  { %5904 = vst [vmem:[%s9084_s7 + $0x8] sm:$0xff] %v5817_v48  ;;  %5823 = vmax.xlane.f32.xlu0 %v5818_v40  ;;  %5821 = vmax.xlane.f32.xlu1 %v5817_v48  ;;  %v5853_v62 = vmul.f32 %v5850_v14, %v5817_v48 }
0x36e4   :  { %v5820_v22 = vpop.xlane.xlu0 %5819 }
0x36e5   :  { %v5825_v4 = vsub.f32 %v8981_v47, %v5820_v22 }
0x36e7   :  { %v5828_v50 = vmul.f32 1.442695, %v5825_v4 }
0x36e8   :  { %v5824_v54 = vpop.xlane.xlu0 %5823  ;;  %v5822_v20 = vpop.xlane.xlu1 %5821 }
0x36e9   :  { %7346 = vpow2.f32 %v5828_v50  ;;  %v5827_v19 = vsub.f32 %v5818_v40, %v5824_v54  ;;  %v5826_v2 = vsub.f32 %v5817_v48, %v5822_v20 }
0x36eb   :  { %v5832_v29 = vmul.f32 1.442695, %v5827_v19  ;;  %v5830_v57 = vmul.f32 1.442695, %v5826_v2 }
0x36ed   :  { %7348 = vpow2.f32 %v5832_v29 }
0x36ee   :  { %7350 = vpow2.f32 %v5830_v57 }
0x36f6   :  { %v7347_v9 = vpop.eup %7346 }
0x36f7   :  { %5834 = vadd.xlane.f32.xlu1 %v7347_v9 }
0x36fa   :  { %v7349_v43 = vpop.eup %7348 }
0x36fb   :  { %v7351_v49 = vpop.eup %7350  ;;  %5838 = vadd.xlane.f32.xlu1 %v7349_v43 }
0x36fc   :  { %5836 = vadd.xlane.f32.xlu0 %v7351_v49 }
0x36ff   :  { %5857 = vadd.xlane.f32.xlu1 %v5853_v62 }
0x3700   :  { %5855 = vadd.xlane.f32.xlu0 %v5852_v6 }
0x3703   :  { %5861 = vadd.xlane.f32.xlu1 %v5849_v42 }
0x3704   :  { %5859 = vadd.xlane.f32.xlu0 %v5854_v41 }
0x3707   :  { %5865 = vadd.xlane.f32.xlu1 %v5851_v0 }
0x3708   :  { %5863 = vadd.xlane.f32.xlu0 %v5850_v14 }
0x3780   :  { %v5835_v45 = vpop.xlane.xlu1 %5834 }
0x3781   :  { %7352 = vlog2.f32 %v5835_v45 }
0x3784   :  { %v5839_v3 = vpop.xlane.xlu1 %5838 }
0x3785   :  { %v5837_v32 = vpop.xlane.xlu0 %5836  ;;  %7354 = vlog2.f32 %v5839_v3 }
0x3786   :  { %7356 = vlog2.f32 %v5837_v32 }
0x3788   :  { %v5858_v55 = vpop.xlane.xlu1 %5857 }
0x3789   :  { %v5856_v25 = vpop.xlane.xlu0 %5855 }
0x378c   :  { %v5862_v1 = vpop.xlane.xlu1 %5861 }
0x378d   :  { %v5860_v30 = vpop.xlane.xlu0 %5859 }
0x378e   :  { %v7353_v51 = vpop.eup %7352 }
0x378f   :  { %v5841_v37 = vmul.f32 0.6931472, %v7353_v51 }
0x3790   :  { %v5866_v11 = vpop.xlane.xlu1 %5865 }
0x3791   :  { %v5846_v63 = vadd.f32 %v5841_v37, %v5820_v22  ;;  %v5864_v8 = vpop.xlane.xlu0 %5863 }
0x3792   :  { %v7355_v38 = vpop.eup %7354 }
0x3793   :  { %v7357_v5 = vpop.eup %7356  ;;  %v5845_v13 = vmul.f32 0.6931472, %v7355_v38  ;;  %v5867_v52 = vsub.f32 %v5846_v63, %v5856_v25 }
0x3794   :  { %v5843_v10 = vmul.f32 0.6931472, %v7357_v5 }
0x3795   :  { %v5848_v27 = vadd.f32 %v5845_v13, %v5824_v54  ;;  %v5870_v7 = vmul.f32 %v5867_v52, %v5862_v1 }
0x3796   :  { %v5847_v59 = vadd.f32 %v5843_v10, %v5822_v20 }
0x3797   :  { %v5869_v21 = vsub.f32 %v5848_v27, %v5860_v30  ;;  %v5874_v31 = vsel %vm5873_vm6, %v5870_v7, 0.0 }
0x3798   :  { %v5868_v28 = vsub.f32 %v5847_v59, %v5858_v55 }
0x3799   :  { %v5872_v17 = vmul.f32 %v5869_v21, %v5866_v11 }
0x379a   :  { %v5871_v36 = vmul.f32 %v5868_v28, %v5864_v8 }
0x379b   :  { %v5877_v46 = vsel %vm5873_vm6, %v5872_v17, 0.0 }
0x379c   :  { %v5875_v39 = vsel %vm5873_vm6, %v5871_v36, 0.0 }
0x379d   :  { %v5876_v60 = vadd.f32 %v5875_v39, %v5874_v31 }
0x379f   :  { %v5878_v33 = vadd.f32 %v5877_v46, %v5876_v60 }
0x37a1   :  { %5879 = vadd.xlane.f32.xlu0 %v5878_v33 }
0x382a   :  { %v5880_v44 = vpop.xlane.xlu0 %5879 }
0x382b   :  { %v5881_v15 = vrot.slane %v5880_v44, 4 }
0x382d   :  { %v5882_v61 = vadd.f32 %v5881_v15, %v5880_v44 }
0x382f   :  { %v5883_v26 = vrot.slane %v5882_v61, 2 }
0x3831   :  { %v5884_v53 = vadd.f32 %v5883_v26, %v5882_v61 }
0x3833   :  { %v5885_v16 = vrot.slane %v5884_v53, 1 }
0x3835   :  { %v5886_v56 = vadd.f32 %v5885_v16, %v5884_v53 }
0x3837   :  { %7006 = vpush %v5886_v56 }
0x3868   :  { %s7007_s12 = spop %7006 }
0x3869   :  { %v5899_v18 = vstv %s7007_s12 }
0x386a   :  { %v5900_v34 = vsel %vm5896_vm9, %v5899_v18, %v8981_v47 }
0x386b   :  { %5903 = vst [vmem:[%s9084_s7] sm:$0xff] %v5900_v34 }

</bundles_post_ra>
